<compile_context>
chip_gen: v7x
topology: tpu7x:2x2x1
jax: 0.10.0
libtpu: 0.0.40
codegen_flags: <defaults>
</compile_context>

<pallas_src>
import functools
import math

import jax
import jax.numpy as jnp
import numpy as np
from jax.experimental import pallas as pl
from jax.experimental.pallas import tpu as pltpu


def _round_up(x, m):
    return (x + m - 1) // m * m


def _num_tensorcores():
    """Best-effort TensorCores-per-device count (v7x / megacore chips report 2)."""
    try:
        dev = jax.devices()[0]
        n = getattr(dev, "num_cores", None)
        if n:
            return int(n)
        kind = str(getattr(dev, "device_kind", "")).lower()
        if any(t in kind for t in ("v4", "v5p", "v7", "7x")):
            return 2
    except Exception:
        pass
    return 1


def _choose_block_b(B, L, num_cores=1, row_align=8, target_rows=512):
    """Pick the batch block so bt*L rows feed the MXU.

    Generation-aware: on single-TensorCore chips the grid is a serial loop, so we
    take the largest block under the row target; only on multi-core chips do we
    force enough parallel steps to keep every core busy.  bt*L is also kept
    sublane-aligned (8 for f32, 16 for bf16) so the 2-D row blocking is layout-clean.
    """
    cap = max(1, min(B, max(1, target_rows // max(L, 1))))
    if num_cores > 1 and B >= num_cores:
        cap = min(cap, max(1, B // num_cores))
    for d in range(cap, 0, -1):
        if B % d == 0 and ((d * L) % row_align == 0 or d == B):
            return d
    return B  # full-extent block is always layout-legal


def _choose_heads_per_group(n_heads, d_k, d_v):
    """Group heads so the grouped projection width is lane-dense.

    The group width (g*d_k, g*d_v) is padded to a 128 multiple only at the group
    tail, so e.g. d_k=64, n_heads=2 projects with one 128-wide matmul instead of
    two zero-padded 128-wide ones (halves attention-projection FLOPs)."""
    best_g, best_key = 1, None
    for g in range(1, n_heads + 1):
        if n_heads % g:
            continue
        waste = (_round_up(g * d_k, 128) / (g * d_k)
                 + _round_up(g * d_v, 128) / (g * d_v))
        key = (waste, g)     # minimize padding waste; tie-break to smaller groups (more streaming)
        if best_key is None or key < best_key:
            best_key, best_g = key, g
    return best_g


def transformer_block_kernel(q_ref, k_ref, v_ref,
                             wq_ref, wk_ref, wv_ref, wo_ref,
                             w1_ref, b1_ref, w2_ref, b2_ref,
                             gamma_ref, beta_ref,
                             out_ref, att_ref,
                             *, bt, seq_len, heads_per_group, d_k, d_v, d_model,
                             mm_dtype, approx_recip, eps_ln):
    rows, Dp = q_ref.shape
    g = pl.program_id(1)
    n_g = pl.num_programs(1)

    # Residual / LayerNorm input stays f32; K/V arrive pre-cast (bf16 on the fast
    # path) so their HBM->VMEM DMA is half-width and no in-kernel cast is needed.
    q = q_ref[...]
    q_mm = q.astype(mm_dtype)
    k_mm = k_ref[...]
    v_mm = v_ref[...]

    # One lane-dense projection per head group (width = heads_per_group*d_k,
    # padded only at the group tail) instead of per-head zero-padded matmuls.
    qg = jnp.dot(q_mm, wq_ref[0], preferred_element_type=jnp.float32)
    kg = jnp.dot(k_mm, wk_ref[0], preferred_element_type=jnp.float32)
    vg = jnp.dot(v_mm, wv_ref[0], preferred_element_type=jnp.float32)
    wo_g = wo_ref[0]                                            # (Wgv, Dp)

    acc = jnp.zeros((rows, Dp), jnp.float32)
    for h in range(heads_per_group):                            # static, small
        qh = qg[:, h * d_k:(h + 1) * d_k].astype(mm_dtype).reshape(bt, seq_len, d_k)
        kh = kg[:, h * d_k:(h + 1) * d_k].astype(mm_dtype).reshape(bt, seq_len, d_k)
        vh = vg[:, h * d_v:(h + 1) * d_v].astype(mm_dtype).reshape(bt, seq_len, d_v)

        # TODO(synk): for large seq_len, tile K/V flash-style (online softmax)
        # instead of materializing the full (bt, L, L) score tensor per head.
        s = jnp.einsum('bqd,bkd->bqk', qh, kh, preferred_element_type=jnp.float32)
        s = s - jnp.max(s, axis=-1, keepdims=True)
        e = jnp.exp(s)
        den = jnp.sum(e, axis=-1, keepdims=True)
        if approx_recip:
            p = e * pl.reciprocal(den, approx=True)             # EUP slot, off the VPU
        else:
            p = e / den                                         # exact path (f32 check)
        o = jnp.einsum('bqk,bkd->bqd', p.astype(mm_dtype), vh,
                       preferred_element_type=jnp.float32)      # (bt, L, d_v)

        # Head merge without concatenate: concat(O_h) @ W_o == sum_h O_h @ W_o[h].
        # TODO(synk): on v7x, drive the MXU result buffer directly
        # (matmul_push_rhs / matmul_acc_lhs / matmul_pop) to accumulate across heads.
        acc = acc + jnp.dot(o.reshape(rows, d_v).astype(mm_dtype),
                            wo_g[h * d_v:(h + 1) * d_v, :],
                            preferred_element_type=jnp.float32)

    @pl.when(g == 0)
    def _():
        att_ref[...] = jnp.zeros_like(att_ref)

    att_ref[...] += acc

    # LayerNorm + FFN epilogue runs once per batch block, after the last head group.
    @pl.when(g == n_g - 1)
    def _():
        gamma = gamma_ref[...]                  # (1, Dp): cheap stride-0 operand
        beta = beta_ref[...]
        inv_d = jnp.float32(1.0 / d_model)
        if Dp == d_model:
            dmask = None
        else:
            dmask = jax.lax.broadcasted_iota(jnp.int32, (1, Dp), 1) < d_model

        def layer_norm(y):
            # Two-pass (centered) variance: no E[y^2]-mu^2 cancellation; the lane
            # mask keeps the zero-padded model-dim tail out of the statistics.
            mu = jnp.sum(y, axis=-1, keepdims=True) * inv_d
            yc = y - mu
            if dmask is not None:
                yc = jnp.where(dmask, yc, 0.0)
            var = jnp.sum(yc * yc, axis=-1, keepdims=True) * inv_d
            return yc * jax.lax.rsqrt(var + eps_ln) * gamma + beta

        x = layer_norm(q + att_ref[...])
        h1 = jnp.dot(x.astype(mm_dtype), w1_ref[...],
                     preferred_element_type=jnp.float32) + b1_ref[...]
        h1 = jnp.maximum(h1, 0.0)
        ffn = jnp.dot(h1.astype(mm_dtype), w2_ref[...],
                      preferred_element_type=jnp.float32) + b2_ref[...]
        out_ref[...] = layer_norm(ffn + x).astype(out_ref.dtype)


def prepare_params(params, *, n_heads, d_k, d_v, mm_dtype=jnp.bfloat16):
    """One-time host-side weight prep (reshape/group/pad/cast), hoisted out of the
    per-forward wrapper so each call pays no weight-relayout XLA passes."""
    D = params["W_q"].shape[0]
    H = n_heads
    hpg = _choose_heads_per_group(H, d_k, d_v)
    n_groups = H // hpg
    wgk_real, wgv_real = hpg * d_k, hpg * d_v
    Wgk, Wgv = _round_up(wgk_real, 128), _round_up(wgv_real, 128)
    Dp = _round_up(D, 128)
    f32 = jnp.float32

    def pad_last(x, target):
        padn = target - x.shape[-1]
        if padn == 0:
            return x
        return jnp.pad(x, [(0, 0)] * (x.ndim - 1) + [(0, padn)])

    # 1/temperature folded into W_q; head-group axis leading on every attention slab.
    inv_temp = 1.0 / (d_k ** 0.5 + 1e-6)
    wq = (params["W_q"] * inv_temp).reshape(D, n_groups, wgk_real).transpose(1, 0, 2)
    wk = params["W_k"].reshape(D, n_groups, wgk_real).transpose(1, 0, 2)
    wv = params["W_v"].reshape(D, n_groups, wgv_real).transpose(1, 0, 2)
    wo = params["W_o"].reshape(n_groups, wgv_real, D)

    prep = {
        "wq": jnp.pad(wq, ((0, 0), (0, Dp - D), (0, Wgk - wgk_real))).astype(mm_dtype),
        "wk": jnp.pad(wk, ((0, 0), (0, Dp - D), (0, Wgk - wgk_real))).astype(mm_dtype),
        "wv": jnp.pad(wv, ((0, 0), (0, Dp - D), (0, Wgv - wgv_real))).astype(mm_dtype),
        "wo": jnp.pad(wo, ((0, 0), (0, Wgv - wgv_real), (0, Dp - D))).astype(mm_dtype),
        "w1": jnp.pad(params["w1"], ((0, Dp - D), (0, Dp - D))).astype(mm_dtype),
        "w2": jnp.pad(params["w2"], ((0, Dp - D), (0, Dp - D))).astype(mm_dtype),
        "b1": pad_last(params["b1"], Dp).astype(f32),
        "b2": pad_last(params["b2"], Dp).astype(f32),
        "gamma": pad_last(params["gamma"], Dp).astype(f32),
        "beta": pad_last(params["beta"], Dp).astype(f32),
    }
    meta = dict(D=D, Dp=Dp, d_k=d_k, d_v=d_v, n_heads=H, heads_per_group=hpg,
                n_groups=n_groups, Wgk=Wgk, Wgv=Wgv, mm_dtype=mm_dtype)
    return prep, meta


def _estimate_vmem_limit(bt, L, Dp, Wgk, Wgv, mm_itemsize):
    rows = bt * L
    act = rows * Dp
    buffers = (2 * act * 4                                 # Q (f32), double-buffered
               + 2 * 2 * act * mm_itemsize                 # K, V
               + 2 * act * 4                               # out (f32)
               + 2 * Dp * (2 * Wgk + Wgv) * mm_itemsize    # wq/wk/wv (group-streamed)
               + 2 * Wgv * Dp * mm_itemsize                # wo
               + 2 * 2 * Dp * Dp * mm_itemsize             # w1/w2 (worst case double)
               + 2 * 4 * Dp * 4                            # b1/b2/gamma/beta
               + act * 4)                                  # att scratch
    temporaries = (6 * rows * max(Wgk, Wgv) * 4            # projections + head slices
                   + 6 * bt * L * L * 4                    # scores / exp / probs
                   + 6 * act * 4)                          # acc / LN / FFN temporaries
    est = int((buffers + temporaries) * 1.5) + (2 << 20)
    return max(32 << 20, min(64 << 20, est))               # cap under v7x physical VMEM


def transformer_block(Q, K, V, prep, meta, *, block_b=None):
    """Forward pass of TransformerBlock (eval mode, mask=None)."""
    B, L, D = Q.shape
    assert D == meta["D"]
    Dp, Wgk, Wgv = meta["Dp"], meta["Wgk"], meta["Wgv"]
    mm_dtype = meta["mm_dtype"]
    n_groups, hpg = meta["n_groups"], meta["heads_per_group"]
    row_align = 16 if jnp.dtype(mm_dtype).itemsize == 2 else 8

    if block_b is None:
        bt = _choose_block_b(B, L, num_cores=_num_tensorcores(), row_align=row_align)
    else:
        bt = block_b
        assert B % bt == 0, "block_b must divide batch size"
    rows = bt * L

    def pad_rows(x2d):
        if Dp == D:
            return x2d
        return jnp.pad(x2d, ((0, 0), (0, Dp - D)))

    # Activations as lane-dense (B*L, Dp) slabs: the batch fold into the matmul M
    # dimension is free, and the output store is a full-lane vst.  K/V go over the
    # DMA in bf16 (they never feed f32 math); Q stays f32 for residual/LayerNorm.
    Qp = pad_rows(Q.reshape(B * L, D))
    Kp = pad_rows(K.reshape(B * L, D)).astype(mm_dtype)
    Vp = pad_rows(V.reshape(B * L, D)).astype(mm_dtype)

    kernel = functools.partial(
        transformer_block_kernel,
        bt=bt, seq_len=L, heads_per_group=hpg, d_k=meta["d_k"], d_v=meta["d_v"],
        d_model=D, mm_dtype=mm_dtype,
        approx_recip=(jnp.dtype(mm_dtype) != jnp.dtype(jnp.float32)), eps_ln=1e-5)

    act_spec = pl.BlockSpec((rows, Dp), lambda i, g: (i, 0))
    grid = (B // bt, n_groups)
    vmem_limit = _estimate_vmem_limit(bt, L, Dp, Wgk, Wgv, jnp.dtype(mm_dtype).itemsize)

    def build(single_buffer_consts):
        def const_spec(shape):
            idx = lambda i, g, _n=len(shape): (0,) * _n
            if single_buffer_consts:
                # Constant-index blocks never change; double buffering them is waste.
                return pl.BlockSpec(shape, idx, pipeline_mode=pl.Buffered(1))
            return pl.BlockSpec(shape, idx)

        return pl.pallas_call(
            kernel,
            out_shape=jax.ShapeDtypeStruct((B * L, Dp), Q.dtype),
            grid=grid,
            in_specs=[
                act_spec, act_spec, act_spec,                        # Q, K, V
                pl.BlockSpec((1, Dp, Wgk), lambda i, g: (g, 0, 0)),  # W_q (scaled, grouped)
                pl.BlockSpec((1, Dp, Wgk), lambda i, g: (g, 0, 0)),  # W_k
                pl.BlockSpec((1, Dp, Wgv), lambda i, g: (g, 0, 0)),  # W_v
                pl.BlockSpec((1, Wgv, Dp), lambda i, g: (g, 0, 0)),  # W_o
                const_spec((Dp, Dp)), const_spec((1, Dp)),           # linear1 w, b
                const_spec((Dp, Dp)), const_spec((1, Dp)),           # linear2 w, b
                const_spec((1, Dp)), const_spec((1, Dp)),            # gamma, beta
            ],
            out_specs=act_spec,
            scratch_shapes=[pltpu.VMEM((rows, Dp), jnp.float32)],    # att accumulator
            compiler_params=pltpu.CompilerParams(
                dimension_semantics=("parallel", "arbitrary"),
                vmem_limit_bytes=vmem_limit),
        )

    args = (Qp, Kp, Vp, prep["wq"], prep["wk"], prep["wv"], prep["wo"],
            prep["w1"], prep["b1"], prep["w2"], prep["b2"],
            prep["gamma"], prep["beta"])
    try:
        out2d = build(True)(*args)
    except Exception:
        # Some jax versions reject pipeline_mode on top-level BlockSpecs; the
        # double-buffered fallback is functionally identical.
        out2d = build(False)(*args)

    if Dp != D:
        out2d = out2d[:, :D]
    return out2d.reshape(B, L, D)


def init_params(key, input_size, n_heads, d_k, d_v):
    """Deterministic xavier-normal-style init matching the module's shapes."""
    def xavier(k, shape):
        fan_in, fan_out = shape
        std = math.sqrt(2.0 / (fan_in + fan_out))
        return std * jax.random.normal(k, shape, dtype=jnp.float32)

    ks = jax.random.split(key, 8)
    D = input_size
    return {
        "W_q": xavier(ks[0], (D, n_heads * d_k)),
        "W_k": xavier(ks[1], (D, n_heads * d_k)),
        "W_v": xavier(ks[2], (D, n_heads * d_v)),
        "W_o": xavier(ks[3], (n_heads * d_v, D)),
        # nn.Linear stores (out, in); we keep (in, out) so the kernel does x @ W.
        "w1": xavier(ks[4], (D, D)),
        "b1": 0.01 * jax.random.normal(ks[5], (1, D), dtype=jnp.float32),
        "w2": xavier(ks[6], (D, D)),
        "b2": 0.01 * jax.random.normal(ks[7], (1, D), dtype=jnp.float32),
        "gamma": jnp.ones((1, D), dtype=jnp.float32),
        "beta": jnp.zeros((1, D), dtype=jnp.float32),
    }


def reference_forward(Q, K, V, params, *, n_heads, d_k, d_v):
    """Pure-JAX reference mirroring the PyTorch forward (eval mode, mask=None)."""
    B, L, D = Q.shape
    Qp = (Q @ params["W_q"]).reshape(B, L, n_heads, d_k).transpose(0, 2, 1, 3).reshape(B * n_heads, L, d_k)
    Kp = (K @ params["W_k"]).reshape(B, L, n_heads, d_k).transpose(0, 2, 1, 3).reshape(B * n_heads, L, d_k)
    Vp = (V @ params["W_v"]).reshape(B, L, n_heads, d_v).transpose(0, 2, 1, 3).reshape(B * n_heads, L, d_v)
    S = jnp.einsum("bqd,bkd->bqk", Qp, Kp) / (d_k ** 0.5 + 1e-6)
    P = jax.nn.softmax(S, axis=-1)
    att = jnp.einsum("bqk,bkd->bqd", P, Vp)
    att = att.reshape(B, n_heads, L, d_v).transpose(0, 2, 1, 3).reshape(B, L, n_heads * d_v)
    att = att @ params["W_o"]

    def ln(y):
        mu = jnp.mean(y, axis=-1, keepdims=True)
        var = jnp.mean((y - mu) ** 2, axis=-1, keepdims=True)
        return (y - mu) / jnp.sqrt(var + 1e-5) * params["gamma"] + params["beta"]

    X = ln(Q + att)
    ffn = jnp.maximum(X @ params["w1"] + params["b1"], 0.0) @ params["w2"] + params["b2"]
    return ln(ffn + X)


if __name__ == "__main__":
    B, L, D = 2, 8, 32
    n_heads, d_k, d_v = 2, 64, 64

    key = jax.random.PRNGKey(0)
    kq, kk, kv, kp = jax.random.split(key, 4)
    Q = jax.random.normal(kq, (B, L, D), dtype=jnp.float32)
    K = jax.random.normal(kk, (B, L, D), dtype=jnp.float32)
    V = jax.random.normal(kv, (B, L, D), dtype=jnp.float32)
    params = init_params(kp, D, n_heads, d_k, d_v)

    ref = jax.block_until_ready(
        reference_forward(Q, K, V, params, n_heads=n_heads, d_k=d_k, d_v=d_v))

    # Exact-semantics check: pure-f32 matmul path.
    prep32, meta32 = prepare_params(params, n_heads=n_heads, d_k=d_k, d_v=d_v,
                                    mm_dtype=jnp.float32)
    out_f32 = jax.block_until_ready(transformer_block(Q, K, V, prep32, meta32))
    np.testing.assert_allclose(np.asarray(out_f32), np.asarray(ref), rtol=2e-4, atol=2e-4)

    # Production path: bf16 MXU operands / bf16 K,V DMA; f32 accumulation,
    # softmax and LayerNorm.
    prep16, meta16 = prepare_params(params, n_heads=n_heads, d_k=d_k, d_v=d_v,
                                    mm_dtype=jnp.bfloat16)
    out_bf16 = jax.block_until_ready(transformer_block(Q, K, V, prep16, meta16))
    np.testing.assert_allclose(np.asarray(out_bf16), np.asarray(ref), rtol=8e-2, atol=8e-2)

    print("KERNEL_OK")
</pallas_src>

<mosaic_0001>
module attributes {stable_mosaic.version = 11 : i64} {
  func.func @transformer_block_kernel(%arg0: i32, %arg1: i32, %arg2: memref<16x128xf32, #tpu.memory_space<vmem>>, %arg3: memref<16x128xf32, #tpu.memory_space<vmem>>, %arg4: memref<16x128xf32, #tpu.memory_space<vmem>>, %arg5: memref<1x128x128xf32, #tpu.memory_space<vmem>>, %arg6: memref<1x128x128xf32, #tpu.memory_space<vmem>>, %arg7: memref<1x128x128xf32, #tpu.memory_space<vmem>>, %arg8: memref<1x128x128xf32, #tpu.memory_space<vmem>>, %arg9: memref<128x128xf32, #tpu.memory_space<vmem>>, %arg10: memref<1x128xf32, #tpu.memory_space<vmem>>, %arg11: memref<128x128xf32, #tpu.memory_space<vmem>>, %arg12: memref<1x128xf32, #tpu.memory_space<vmem>>, %arg13: memref<1x128xf32, #tpu.memory_space<vmem>>, %arg14: memref<1x128xf32, #tpu.memory_space<vmem>>, %arg15: memref<16x128xf32, #tpu.memory_space<vmem>>, %arg16: memref<16x128xf32, #tpu.memory_space<vmem>>) attributes {dimension_semantics = [#tpu.dimension_semantics<parallel>, #tpu.dimension_semantics<arbitrary>], iteration_bounds = array<i64: 1, 1>, scalar_prefetch = 0 : i64, scratch_operands = 1 : i64, tpu.core_type = #tpu.core_type<tc>, window_params = [{transform_indices = @transform_0, window_bounds = array<i64: 16, 128>}, {transform_indices = @transform_1, window_bounds = array<i64: 16, 128>}, {transform_indices = @transform_2, window_bounds = array<i64: 16, 128>}, {transform_indices = @transform_3, window_bounds = array<i64: 1, 128, 128>}, {transform_indices = @transform_4, window_bounds = array<i64: 1, 128, 128>}, {transform_indices = @transform_5, window_bounds = array<i64: 1, 128, 128>}, {transform_indices = @transform_6, window_bounds = array<i64: 1, 128, 128>}, {pipeline_mode = #tpu.pipeline_mode<synchronous>, transform_indices = @transform_7, window_bounds = array<i64: 128, 128>}, {pipeline_mode = #tpu.pipeline_mode<synchronous>, transform_indices = @transform_8, window_bounds = array<i64: 1, 128>}, {pipeline_mode = #tpu.pipeline_mode<synchronous>, transform_indices = @transform_9, window_bounds = array<i64: 128, 128>}, {pipeline_mode = #tpu.pipeline_mode<synchronous>, transform_indices = @transform_10, window_bounds = array<i64: 1, 128>}, {pipeline_mode = #tpu.pipeline_mode<synchronous>, transform_indices = @transform_11, window_bounds = array<i64: 1, 128>}, {pipeline_mode = #tpu.pipeline_mode<synchronous>, transform_indices = @transform_12, window_bounds = array<i64: 1, 128>}, {transform_indices = @transform_13, window_bounds = array<i64: 16, 128>}]} {
    %c0 = arith.constant 0 : index
    %c0_0 = arith.constant 0 : index
    %0 = vector.load %arg2[%c0, %c0_0] : memref<16x128xf32, #tpu.memory_space<vmem>>, vector<16x128xf32>
    %c0_1 = arith.constant 0 : index
    %c0_2 = arith.constant 0 : index
    %1 = vector.load %arg3[%c0_1, %c0_2] : memref<16x128xf32, #tpu.memory_space<vmem>>, vector<16x128xf32>
    %c0_3 = arith.constant 0 : index
    %c0_4 = arith.constant 0 : index
    %2 = vector.load %arg4[%c0_3, %c0_4] : memref<16x128xf32, #tpu.memory_space<vmem>>, vector<16x128xf32>
    %c0_5 = arith.constant 0 : index
    %c0_6 = arith.constant 0 : index
    %c0_7 = arith.constant 0 : index
    %3 = vector.load %arg5[%c0_5, %c0_6, %c0_7] : memref<1x128x128xf32, #tpu.memory_space<vmem>>, vector<1x128x128xf32>
    %4 = vector.shape_cast %3 : vector<1x128x128xf32> to vector<128x128xf32>
    %cst = arith.constant dense<0.000000e+00> : vector<16x128xf32>
    %5 = tpu.matmul %0, %4, %cst {dimension_numbers = #tpu.dot_dimension_numbers<[1], [0], [0], [1], [0, 0, 1, 1], [], []>} : vector<16x128xf32>, vector<128x128xf32>, vector<16x128xf32> -> vector<16x128xf32>
    %c0_8 = arith.constant 0 : index
    %c0_9 = arith.constant 0 : index
    %c0_10 = arith.constant 0 : index
    %6 = vector.load %arg6[%c0_8, %c0_9, %c0_10] : memref<1x128x128xf32, #tpu.memory_space<vmem>>, vector<1x128x128xf32>
    %7 = vector.shape_cast %6 : vector<1x128x128xf32> to vector<128x128xf32>
    %cst_11 = arith.constant dense<0.000000e+00> : vector<16x128xf32>
    %8 = tpu.matmul %1, %7, %cst_11 {dimension_numbers = #tpu.dot_dimension_numbers<[1], [0], [0], [1], [0, 0, 1, 1], [], []>} : vector<16x128xf32>, vector<128x128xf32>, vector<16x128xf32> -> vector<16x128xf32>
    %c0_12 = arith.constant 0 : index
    %c0_13 = arith.constant 0 : index
    %c0_14 = arith.constant 0 : index
    %9 = vector.load %arg7[%c0_12, %c0_13, %c0_14] : memref<1x128x128xf32, #tpu.memory_space<vmem>>, vector<1x128x128xf32>
    %10 = vector.shape_cast %9 : vector<1x128x128xf32> to vector<128x128xf32>
    %cst_15 = arith.constant dense<0.000000e+00> : vector<16x128xf32>
    %11 = tpu.matmul %2, %10, %cst_15 {dimension_numbers = #tpu.dot_dimension_numbers<[1], [0], [0], [1], [0, 0, 1, 1], [], []>} : vector<16x128xf32>, vector<128x128xf32>, vector<16x128xf32> -> vector<16x128xf32>
    %c0_16 = arith.constant 0 : index
    %c0_17 = arith.constant 0 : index
    %c0_18 = arith.constant 0 : index
    %12 = vector.load %arg8[%c0_16, %c0_17, %c0_18] : memref<1x128x128xf32, #tpu.memory_space<vmem>>, vector<1x128x128xf32>
    %13 = vector.shape_cast %12 : vector<1x128x128xf32> to vector<128x128xf32>
    %cst_19 = arith.constant 0.000000e+00 : f32
    %14 = vector.broadcast %cst_19 : f32 to vector<16x128xf32>
    %15 = vector.extract_strided_slice %5 {offsets = [0, 0], sizes = [16, 64], strides = [1, 1]} : vector<16x128xf32> to vector<16x64xf32>
    %16 = vector.shape_cast %15 : vector<16x64xf32> to vector<2x8x64xf32>
    %17 = vector.extract_strided_slice %8 {offsets = [0, 0], sizes = [16, 64], strides = [1, 1]} : vector<16x128xf32> to vector<16x64xf32>
    %18 = vector.shape_cast %17 : vector<16x64xf32> to vector<2x8x64xf32>
    %19 = vector.extract_strided_slice %11 {offsets = [0, 0], sizes = [16, 64], strides = [1, 1]} : vector<16x128xf32> to vector<16x64xf32>
    %20 = vector.shape_cast %19 : vector<16x64xf32> to vector<2x8x64xf32>
    "tpu.trace_start"() <{level = 10 : i32, message = "bqd,bkd->bqk"}> : () -> ()
    %cst_20 = arith.constant dense<0.000000e+00> : vector<2x8x8xf32>
    %21 = tpu.matmul %16, %18, %cst_20 {dimension_numbers = #tpu.dot_dimension_numbers<[2], [2], [1], [1], [0, 0, 0, 1, 1, 1], [0], [0]>} : vector<2x8x64xf32>, vector<2x8x64xf32>, vector<2x8x8xf32> -> vector<2x8x8xf32>
    "tpu.trace_stop"() : () -> ()
    %cst_21 = arith.constant dense<0xFF800000> : vector<2x8xf32>
    %22 = vector.multi_reduction <maximumf>, %21, %cst_21 [2] : vector<2x8x8xf32> to vector<2x8xf32>
    %23 = vector.shape_cast %22 : vector<2x8xf32> to vector<2x8x1xf32>
    %24 = vector.broadcast %23 : vector<2x8x1xf32> to vector<2x8x8xf32>
    %25 = arith.subf %21, %24 : vector<2x8x8xf32>
    %26 = math.exp %25 : vector<2x8x8xf32>
    %cst_22 = arith.constant dense<0.000000e+00> : vector<2x8xf32>
    %27 = vector.multi_reduction <add>, %26, %cst_22 [2] : vector<2x8x8xf32> to vector<2x8xf32>
    %28 = vector.shape_cast %27 : vector<2x8xf32> to vector<2x8x1xf32>
    %29 = vector.broadcast %28 : vector<2x8x1xf32> to vector<2x8x8xf32>
    %30 = arith.divf %26, %29 : vector<2x8x8xf32>
    "tpu.trace_start"() <{level = 10 : i32, message = "bqk,bkd->bqd"}> : () -> ()
    %cst_23 = arith.constant dense<0.000000e+00> : vector<2x8x64xf32>
    %31 = tpu.matmul %30, %20, %cst_23 {dimension_numbers = #tpu.dot_dimension_numbers<[2], [1], [1], [2], [0, 0, 0, 1, 1, 2], [0], [0]>} : vector<2x8x8xf32>, vector<2x8x64xf32>, vector<2x8x64xf32> -> vector<2x8x64xf32>
    "tpu.trace_stop"() : () -> ()
    %32 = vector.shape_cast %31 : vector<2x8x64xf32> to vector<16x64xf32>
    %33 = vector.extract_strided_slice %13 {offsets = [0, 0], sizes = [64, 128], strides = [1, 1]} : vector<128x128xf32> to vector<64x128xf32>
    %cst_24 = arith.constant dense<0.000000e+00> : vector<16x128xf32>
    %34 = tpu.matmul %32, %33, %cst_24 {dimension_numbers = #tpu.dot_dimension_numbers<[1], [0], [0], [1], [0, 0, 1, 1], [], []>} : vector<16x64xf32>, vector<64x128xf32>, vector<16x128xf32> -> vector<16x128xf32>
    %35 = arith.addf %14, %34 : vector<16x128xf32>
    %36 = vector.extract_strided_slice %5 {offsets = [0, 64], sizes = [16, 64], strides = [1, 1]} : vector<16x128xf32> to vector<16x64xf32>
    %37 = vector.shape_cast %36 : vector<16x64xf32> to vector<2x8x64xf32>
    %38 = vector.extract_strided_slice %8 {offsets = [0, 64], sizes = [16, 64], strides = [1, 1]} : vector<16x128xf32> to vector<16x64xf32>
    %39 = vector.shape_cast %38 : vector<16x64xf32> to vector<2x8x64xf32>
    %40 = vector.extract_strided_slice %11 {offsets = [0, 64], sizes = [16, 64], strides = [1, 1]} : vector<16x128xf32> to vector<16x64xf32>
    %41 = vector.shape_cast %40 : vector<16x64xf32> to vector<2x8x64xf32>
    "tpu.trace_start"() <{level = 10 : i32, message = "bqd,bkd->bqk"}> : () -> ()
    %cst_25 = arith.constant dense<0.000000e+00> : vector<2x8x8xf32>
    %42 = tpu.matmul %37, %39, %cst_25 {dimension_numbers = #tpu.dot_dimension_numbers<[2], [2], [1], [1], [0, 0, 0, 1, 1, 1], [0], [0]>} : vector<2x8x64xf32>, vector<2x8x64xf32>, vector<2x8x8xf32> -> vector<2x8x8xf32>
    "tpu.trace_stop"() : () -> ()
    %cst_26 = arith.constant dense<0xFF800000> : vector<2x8xf32>
    %43 = vector.multi_reduction <maximumf>, %42, %cst_26 [2] : vector<2x8x8xf32> to vector<2x8xf32>
    %44 = vector.shape_cast %43 : vector<2x8xf32> to vector<2x8x1xf32>
    %45 = vector.broadcast %44 : vector<2x8x1xf32> to vector<2x8x8xf32>
    %46 = arith.subf %42, %45 : vector<2x8x8xf32>
    %47 = math.exp %46 : vector<2x8x8xf32>
    %cst_27 = arith.constant dense<0.000000e+00> : vector<2x8xf32>
    %48 = vector.multi_reduction <add>, %47, %cst_27 [2] : vector<2x8x8xf32> to vector<2x8xf32>
    %49 = vector.shape_cast %48 : vector<2x8xf32> to vector<2x8x1xf32>
    %50 = vector.broadcast %49 : vector<2x8x1xf32> to vector<2x8x8xf32>
    %51 = arith.divf %47, %50 : vector<2x8x8xf32>
    "tpu.trace_start"() <{level = 10 : i32, message = "bqk,bkd->bqd"}> : () -> ()
    %cst_28 = arith.constant dense<0.000000e+00> : vector<2x8x64xf32>
    %52 = tpu.matmul %51, %41, %cst_28 {dimension_numbers = #tpu.dot_dimension_numbers<[2], [1], [1], [2], [0, 0, 0, 1, 1, 2], [0], [0]>} : vector<2x8x8xf32>, vector<2x8x64xf32>, vector<2x8x64xf32> -> vector<2x8x64xf32>
    "tpu.trace_stop"() : () -> ()
    %53 = vector.shape_cast %52 : vector<2x8x64xf32> to vector<16x64xf32>
    %54 = vector.extract_strided_slice %13 {offsets = [64, 0], sizes = [64, 128], strides = [1, 1]} : vector<128x128xf32> to vector<64x128xf32>
    %cst_29 = arith.constant dense<0.000000e+00> : vector<16x128xf32>
    %55 = tpu.matmul %53, %54, %cst_29 {dimension_numbers = #tpu.dot_dimension_numbers<[1], [0], [0], [1], [0, 0, 1, 1], [], []>} : vector<16x64xf32>, vector<64x128xf32>, vector<16x128xf32> -> vector<16x128xf32>
    %56 = arith.addf %35, %55 : vector<16x128xf32>
    %c0_i32 = arith.constant 0 : i32
    %57 = arith.cmpi eq, %arg1, %c0_i32 : i32
    %58 = arith.extui %57 : i1 to i32
    %c0_i32_30 = arith.constant 0 : i32
    %59 = arith.cmpi ne, %58, %c0_i32_30 : i32
    scf.if %59 {
      %cst_37 = arith.constant 0.000000e+00 : f32
      %66 = vector.broadcast %cst_37 : f32 to vector<16x128xf32>
      %c0_38 = arith.constant 0 : index
      %c0_39 = arith.constant 0 : index
      %67 = vector.load %arg16[%c0_38, %c0_39] : memref<16x128xf32, #tpu.memory_space<vmem>>, vector<16x128xf32>
      tpu.vector_store %arg16[%c0_38, %c0_39], %66 {strides = array<i32>} : memref<16x128xf32, #tpu.memory_space<vmem>>, vector<16x128xf32>,
    } else {
    }
    %c0_31 = arith.constant 0 : index
    %c0_32 = arith.constant 0 : index
    %60 = vector.load %arg16[%c0_31, %c0_32] : memref<16x128xf32, #tpu.memory_space<vmem>>, vector<16x128xf32>
    %61 = arith.addf %60, %56 : vector<16x128xf32>
    %c0_33 = arith.constant 0 : index
    %c0_34 = arith.constant 0 : index
    %62 = vector.load %arg16[%c0_33, %c0_34] : memref<16x128xf32, #tpu.memory_space<vmem>>, vector<16x128xf32>
    tpu.vector_store %arg16[%c0_33, %c0_34], %61 {strides = array<i32>} : memref<16x128xf32, #tpu.memory_space<vmem>>, vector<16x128xf32>,
    %c0_i32_35 = arith.constant 0 : i32
    %63 = arith.cmpi eq, %arg1, %c0_i32_35 : i32
    %64 = arith.extui %63 : i1 to i32
    %c0_i32_36 = arith.constant 0 : i32
    %65 = arith.cmpi ne, %64, %c0_i32_36 : i32
    scf.if %65 {
      %c0_37 = arith.constant 0 : index
      %c0_38 = arith.constant 0 : index
      %66 = vector.load %arg13[%c0_37, %c0_38] : memref<1x128xf32, #tpu.memory_space<vmem>>, vector<1x128xf32>
      %c0_39 = arith.constant 0 : index
      %c0_40 = arith.constant 0 : index
      %67 = vector.load %arg14[%c0_39, %c0_40] : memref<1x128xf32, #tpu.memory_space<vmem>>, vector<1x128xf32>
      %68 = tpu.iota {dimensions = array<i32: 1>} : vector<1x128xi32>
      %c32_i32 = arith.constant 32 : i32
      %69 = vector.broadcast %c32_i32 : i32 to vector<1x128xi32>
      %70 = arith.cmpi slt, %68, %69 : vector<1x128xi32>
      %c0_41 = arith.constant 0 : index
      %c0_42 = arith.constant 0 : index
      %71 = vector.load %arg16[%c0_41, %c0_42] : memref<16x128xf32, #tpu.memory_space<vmem>>, vector<16x128xf32>
      %72 = arith.addf %0, %71 : vector<16x128xf32>
      %cst_43 = arith.constant dense<0.000000e+00> : vector<16xf32>
      %73 = vector.multi_reduction <add>, %72, %cst_43 [1] : vector<16x128xf32> to vector<16xf32>
      %74 = vector.shape_cast %73 : vector<16xf32> to vector<16x1xf32>
      %cst_44 = arith.constant 3.125000e-02 : f32
      %75 = vector.broadcast %cst_44 : f32 to vector<16x1xf32>
      %76 = arith.mulf %74, %75 : vector<16x1xf32>
      %77 = vector.broadcast %76 : vector<16x1xf32> to vector<16x128xf32>
      %78 = arith.subf %72, %77 : vector<16x128xf32>
      %cst_45 = arith.constant 0.000000e+00 : f32
      %79 = vector.shape_cast %70 : vector<1x128xi1> to vector<1x128xi1>
      %80 = vector.broadcast %79 : vector<1x128xi1> to vector<16x128xi1>
      %81 = vector.broadcast %cst_45 : f32 to vector<16x128xf32>
      %82 = arith.select %80, %78, %81 : vector<16x128xi1>, vector<16x128xf32>
      %83 = arith.mulf %82, %82 : vector<16x128xf32>
      %cst_46 = arith.constant dense<0.000000e+00> : vector<16xf32>
      %84 = vector.multi_reduction <add>, %83, %cst_46 [1] : vector<16x128xf32> to vector<16xf32>
      %85 = vector.shape_cast %84 : vector<16xf32> to vector<16x1xf32>
      %cst_47 = arith.constant 3.125000e-02 : f32
      %86 = vector.broadcast %cst_47 : f32 to vector<16x1xf32>
      %87 = arith.mulf %85, %86 : vector<16x1xf32>
      %cst_48 = arith.constant 9.99999974E-6 : f32
      %88 = vector.broadcast %cst_48 : f32 to vector<16x1xf32>
      %89 = arith.addf %87, %88 : vector<16x1xf32>
      %90 = math.rsqrt %89 : vector<16x1xf32>
      %91 = vector.broadcast %90 : vector<16x1xf32> to vector<16x128xf32>
      %92 = arith.mulf %82, %91 : vector<16x128xf32>
      %93 = vector.broadcast %66 : vector<1x128xf32> to vector<16x128xf32>
      %94 = arith.mulf %92, %93 : vector<16x128xf32>
      %95 = vector.broadcast %67 : vector<1x128xf32> to vector<16x128xf32>
      %96 = arith.addf %94, %95 : vector<16x128xf32>
      %c0_49 = arith.constant 0 : index
      %c0_50 = arith.constant 0 : index
      %97 = vector.load %arg9[%c0_49, %c0_50] : memref<128x128xf32, #tpu.memory_space<vmem>>, vector<128x128xf32>
      %cst_51 = arith.constant dense<0.000000e+00> : vector<16x128xf32>
      %98 = tpu.matmul %96, %97, %cst_51 {dimension_numbers = #tpu.dot_dimension_numbers<[1], [0], [0], [1], [0, 0, 1, 1], [], []>} : vector<16x128xf32>, vector<128x128xf32>, vector<16x128xf32> -> vector<16x128xf32>
      %c0_52 = arith.constant 0 : index
      %c0_53 = arith.constant 0 : index
      %99 = vector.load %arg10[%c0_52, %c0_53] : memref<1x128xf32, #tpu.memory_space<vmem>>, vector<1x128xf32>
      %100 = vector.broadcast %99 : vector<1x128xf32> to vector<16x128xf32>
      %101 = arith.addf %98, %100 : vector<16x128xf32>
      %cst_54 = arith.constant 0.000000e+00 : f32
      %102 = vector.broadcast %cst_54 : f32 to vector<16x128xf32>
      %103 = arith.maximumf %101, %102 : vector<16x128xf32>
      %c0_55 = arith.constant 0 : index
      %c0_56 = arith.constant 0 : index
      %104 = vector.load %arg11[%c0_55, %c0_56] : memref<128x128xf32, #tpu.memory_space<vmem>>, vector<128x128xf32>
      %cst_57 = arith.constant dense<0.000000e+00> : vector<16x128xf32>
      %105 = tpu.matmul %103, %104, %cst_57 {dimension_numbers = #tpu.dot_dimension_numbers<[1], [0], [0], [1], [0, 0, 1, 1], [], []>} : vector<16x128xf32>, vector<128x128xf32>, vector<16x128xf32> -> vector<16x128xf32>
      %c0_58 = arith.constant 0 : index
      %c0_59 = arith.constant 0 : index
      %106 = vector.load %arg12[%c0_58, %c0_59] : memref<1x128xf32, #tpu.memory_space<vmem>>, vector<1x128xf32>
      %107 = vector.broadcast %106 : vector<1x128xf32> to vector<16x128xf32>
      %108 = arith.addf %105, %107 : vector<16x128xf32>
      %109 = arith.addf %108, %96 : vector<16x128xf32>
      %cst_60 = arith.constant dense<0.000000e+00> : vector<16xf32>
      %110 = vector.multi_reduction <add>, %109, %cst_60 [1] : vector<16x128xf32> to vector<16xf32>
      %111 = vector.shape_cast %110 : vector<16xf32> to vector<16x1xf32>
      %cst_61 = arith.constant 3.125000e-02 : f32
      %112 = vector.broadcast %cst_61 : f32 to vector<16x1xf32>
      %113 = arith.mulf %111, %112 : vector<16x1xf32>
      %114 = vector.broadcast %113 : vector<16x1xf32> to vector<16x128xf32>
      %115 = arith.subf %109, %114 : vector<16x128xf32>
      %cst_62 = arith.constant 0.000000e+00 : f32
      %116 = vector.shape_cast %70 : vector<1x128xi1> to vector<1x128xi1>
      %117 = vector.broadcast %116 : vector<1x128xi1> to vector<16x128xi1>
      %118 = vector.broadcast %cst_62 : f32 to vector<16x128xf32>
      %119 = arith.select %117, %115, %118 : vector<16x128xi1>, vector<16x128xf32>
      %120 = arith.mulf %119, %119 : vector<16x128xf32>
      %cst_63 = arith.constant dense<0.000000e+00> : vector<16xf32>
      %121 = vector.multi_reduction <add>, %120, %cst_63 [1] : vector<16x128xf32> to vector<16xf32>
      %122 = vector.shape_cast %121 : vector<16xf32> to vector<16x1xf32>
      %cst_64 = arith.constant 3.125000e-02 : f32
      %123 = vector.broadcast %cst_64 : f32 to vector<16x1xf32>
      %124 = arith.mulf %122, %123 : vector<16x1xf32>
      %cst_65 = arith.constant 9.99999974E-6 : f32
      %125 = vector.broadcast %cst_65 : f32 to vector<16x1xf32>
      %126 = arith.addf %124, %125 : vector<16x1xf32>
      %127 = math.rsqrt %126 : vector<16x1xf32>
      %128 = vector.broadcast %127 : vector<16x1xf32> to vector<16x128xf32>
      %129 = arith.mulf %119, %128 : vector<16x128xf32>
      %130 = vector.broadcast %66 : vector<1x128xf32> to vector<16x128xf32>
      %131 = arith.mulf %129, %130 : vector<16x128xf32>
      %132 = vector.broadcast %67 : vector<1x128xf32> to vector<16x128xf32>
      %133 = arith.addf %131, %132 : vector<16x128xf32>
      %c0_66 = arith.constant 0 : index
      %c0_67 = arith.constant 0 : index
      %134 = vector.load %arg15[%c0_66, %c0_67] : memref<16x128xf32, #tpu.memory_space<vmem>>, vector<16x128xf32>
      tpu.vector_store %arg15[%c0_66, %c0_67], %133 {strides = array<i32>} : memref<16x128xf32, #tpu.memory_space<vmem>>, vector<16x128xf32>,
    } else {
    }
    return
  }
  func.func @transform_0(%arg0: i32, %arg1: i32) -> (i32, i32) {
    %c0_i32 = arith.constant 0 : i32
    %c0_i32_0 = arith.constant 0 : i32
    return %arg0, %c0_i32 : i32, i32
  }
  func.func @transform_1(%arg0: i32, %arg1: i32) -> (i32, i32) {
    %c0_i32 = arith.constant 0 : i32
    %c0_i32_0 = arith.constant 0 : i32
    return %arg0, %c0_i32 : i32, i32
  }
  func.func @transform_2(%arg0: i32, %arg1: i32) -> (i32, i32) {
    %c0_i32 = arith.constant 0 : i32
    %c0_i32_0 = arith.constant 0 : i32
    return %arg0, %c0_i32 : i32, i32
  }
  func.func @transform_3(%arg0: i32, %arg1: i32) -> (i32, i32, i32) {
    %c0_i32 = arith.constant 0 : i32
    %c0_i32_0 = arith.constant 0 : i32
    %c0_i32_1 = arith.constant 0 : i32
    return %arg1, %c0_i32, %c0_i32_0 : i32, i32, i32
  }
  func.func @transform_4(%arg0: i32, %arg1: i32) -> (i32, i32, i32) {
    %c0_i32 = arith.constant 0 : i32
    %c0_i32_0 = arith.constant 0 : i32
    %c0_i32_1 = arith.constant 0 : i32
    return %arg1, %c0_i32, %c0_i32_0 : i32, i32, i32
  }
  func.func @transform_5(%arg0: i32, %arg1: i32) -> (i32, i32, i32) {
    %c0_i32 = arith.constant 0 : i32
    %c0_i32_0 = arith.constant 0 : i32
    %c0_i32_1 = arith.constant 0 : i32
    return %arg1, %c0_i32, %c0_i32_0 : i32, i32, i32
  }
  func.func @transform_6(%arg0: i32, %arg1: i32) -> (i32, i32, i32) {
    %c0_i32 = arith.constant 0 : i32
    %c0_i32_0 = arith.constant 0 : i32
    %c0_i32_1 = arith.constant 0 : i32
    return %arg1, %c0_i32, %c0_i32_0 : i32, i32, i32
  }
  func.func @transform_7(%arg0: i32, %arg1: i32) -> (i32, i32) {
    %c0_i32 = arith.constant 0 : i32
    %c0_i32_0 = arith.constant 0 : i32
    %c0_i32_1 = arith.constant 0 : i32
    return %c0_i32, %c0_i32_0 : i32, i32
  }
  func.func @transform_8(%arg0: i32, %arg1: i32) -> (i32, i32) {
    %c0_i32 = arith.constant 0 : i32
    %c0_i32_0 = arith.constant 0 : i32
    %c0_i32_1 = arith.constant 0 : i32
    return %c0_i32, %c0_i32_0 : i32, i32
  }
  func.func @transform_9(%arg0: i32, %arg1: i32) -> (i32, i32) {
    %c0_i32 = arith.constant 0 : i32
    %c0_i32_0 = arith.constant 0 : i32
    %c0_i32_1 = arith.constant 0 : i32
    return %c0_i32, %c0_i32_0 : i32, i32
  }
  func.func @transform_10(%arg0: i32, %arg1: i32) -> (i32, i32) {
    %c0_i32 = arith.constant 0 : i32
    %c0_i32_0 = arith.constant 0 : i32
    %c0_i32_1 = arith.constant 0 : i32
    return %c0_i32, %c0_i32_0 : i32, i32
  }
  func.func @transform_11(%arg0: i32, %arg1: i32) -> (i32, i32) {
    %c0_i32 = arith.constant 0 : i32
    %c0_i32_0 = arith.constant 0 : i32
    %c0_i32_1 = arith.constant 0 : i32
    return %c0_i32, %c0_i32_0 : i32, i32
  }
  func.func @transform_12(%arg0: i32, %arg1: i32) -> (i32, i32) {
    %c0_i32 = arith.constant 0 : i32
    %c0_i32_0 = arith.constant 0 : i32
    %c0_i32_1 = arith.constant 0 : i32
    return %c0_i32, %c0_i32_0 : i32, i32
  }
  func.func @transform_13(%arg0: i32, %arg1: i32) -> (i32, i32) {
    %c0_i32 = arith.constant 0 : i32
    %c0_i32_0 = arith.constant 0 : i32
    return %arg0, %c0_i32 : i32, i32
  }
}

module attributes {stable_mosaic.version = 11 : i64} {
  func.func @transformer_block_kernel(%arg0: i32, %arg1: i32, %arg2: memref<16x128xf32, #tpu.memory_space<vmem>>, %arg3: memref<16x128xf32, #tpu.memory_space<vmem>>, %arg4: memref<16x128xf32, #tpu.memory_space<vmem>>, %arg5: memref<1x128x128xf32, #tpu.memory_space<vmem>>, %arg6: memref<1x128x128xf32, #tpu.memory_space<vmem>>, %arg7: memref<1x128x128xf32, #tpu.memory_space<vmem>>, %arg8: memref<1x128x128xf32, #tpu.memory_space<vmem>>, %arg9: memref<128x128xf32, #tpu.memory_space<vmem>>, %arg10: memref<1x128xf32, #tpu.memory_space<vmem>>, %arg11: memref<128x128xf32, #tpu.memory_space<vmem>>, %arg12: memref<1x128xf32, #tpu.memory_space<vmem>>, %arg13: memref<1x128xf32, #tpu.memory_space<vmem>>, %arg14: memref<1x128xf32, #tpu.memory_space<vmem>>, %arg15: memref<16x128xf32, #tpu.memory_space<vmem>>, %arg16: memref<16x128xf32, #tpu.memory_space<vmem>>) attributes {dimension_semantics = [#tpu.dimension_semantics<parallel>, #tpu.dimension_semantics<arbitrary>], iteration_bounds = array<i64: 1, 1>, scalar_prefetch = 0 : i64, scratch_operands = 1 : i64, tpu.core_type = #tpu.core_type<tc>, window_params = [{transform_indices = @transform_0, window_bounds = array<i64: 16, 128>}, {transform_indices = @transform_1, window_bounds = array<i64: 16, 128>}, {transform_indices = @transform_2, window_bounds = array<i64: 16, 128>}, {transform_indices = @transform_3, window_bounds = array<i64: 1, 128, 128>}, {transform_indices = @transform_4, window_bounds = array<i64: 1, 128, 128>}, {transform_indices = @transform_5, window_bounds = array<i64: 1, 128, 128>}, {transform_indices = @transform_6, window_bounds = array<i64: 1, 128, 128>}, {pipeline_mode = #tpu.pipeline_mode<synchronous>, transform_indices = @transform_7, window_bounds = array<i64: 128, 128>}, {pipeline_mode = #tpu.pipeline_mode<synchronous>, transform_indices = @transform_8, window_bounds = array<i64: 1, 128>}, {pipeline_mode = #tpu.pipeline_mode<synchronous>, transform_indices = @transform_9, window_bounds = array<i64: 128, 128>}, {pipeline_mode = #tpu.pipeline_mode<synchronous>, transform_indices = @transform_10, window_bounds = array<i64: 1, 128>}, {pipeline_mode = #tpu.pipeline_mode<synchronous>, transform_indices = @transform_11, window_bounds = array<i64: 1, 128>}, {pipeline_mode = #tpu.pipeline_mode<synchronous>, transform_indices = @transform_12, window_bounds = array<i64: 1, 128>}, {transform_indices = @transform_13, window_bounds = array<i64: 16, 128>}]} {
    %c0 = arith.constant 0 : index
    %c0_0 = arith.constant 0 : index
    %0 = vector.load %arg2[%c0, %c0_0] : memref<16x128xf32, #tpu.memory_space<vmem>>, vector<16x128xf32>
    %c0_1 = arith.constant 0 : index
    %c0_2 = arith.constant 0 : index
    %1 = vector.load %arg3[%c0_1, %c0_2] : memref<16x128xf32, #tpu.memory_space<vmem>>, vector<16x128xf32>
    %c0_3 = arith.constant 0 : index
    %c0_4 = arith.constant 0 : index
    %2 = vector.load %arg4[%c0_3, %c0_4] : memref<16x128xf32, #tpu.memory_space<vmem>>, vector<16x128xf32>
    %c0_5 = arith.constant 0 : index
    %c0_6 = arith.constant 0 : index
    %c0_7 = arith.constant 0 : index
    %3 = vector.load %arg5[%c0_5, %c0_6, %c0_7] : memref<1x128x128xf32, #tpu.memory_space<vmem>>, vector<1x128x128xf32>
    %4 = vector.shape_cast %3 : vector<1x128x128xf32> to vector<128x128xf32>
    %cst = arith.constant dense<0.000000e+00> : vector<16x128xf32>
    %5 = tpu.matmul %0, %4, %cst {dimension_numbers = #tpu.dot_dimension_numbers<[1], [0], [0], [1], [0, 0, 1, 1], [], []>} : vector<16x128xf32>, vector<128x128xf32>, vector<16x128xf32> -> vector<16x128xf32>
    %c0_8 = arith.constant 0 : index
    %c0_9 = arith.constant 0 : index
    %c0_10 = arith.constant 0 : index
    %6 = vector.load %arg6[%c0_8, %c0_9, %c0_10] : memref<1x128x128xf32, #tpu.memory_space<vmem>>, vector<1x128x128xf32>
    %7 = vector.shape_cast %6 : vector<1x128x128xf32> to vector<128x128xf32>
    %cst_11 = arith.constant dense<0.000000e+00> : vector<16x128xf32>
    %8 = tpu.matmul %1, %7, %cst_11 {dimension_numbers = #tpu.dot_dimension_numbers<[1], [0], [0], [1], [0, 0, 1, 1], [], []>} : vector<16x128xf32>, vector<128x128xf32>, vector<16x128xf32> -> vector<16x128xf32>
    %c0_12 = arith.constant 0 : index
    %c0_13 = arith.constant 0 : index
    %c0_14 = arith.constant 0 : index
    %9 = vector.load %arg7[%c0_12, %c0_13, %c0_14] : memref<1x128x128xf32, #tpu.memory_space<vmem>>, vector<1x128x128xf32>
    %10 = vector.shape_cast %9 : vector<1x128x128xf32> to vector<128x128xf32>
    %cst_15 = arith.constant dense<0.000000e+00> : vector<16x128xf32>
    %11 = tpu.matmul %2, %10, %cst_15 {dimension_numbers = #tpu.dot_dimension_numbers<[1], [0], [0], [1], [0, 0, 1, 1], [], []>} : vector<16x128xf32>, vector<128x128xf32>, vector<16x128xf32> -> vector<16x128xf32>
    %c0_16 = arith.constant 0 : index
    %c0_17 = arith.constant 0 : index
    %c0_18 = arith.constant 0 : index
    %12 = vector.load %arg8[%c0_16, %c0_17, %c0_18] : memref<1x128x128xf32, #tpu.memory_space<vmem>>, vector<1x128x128xf32>
    %13 = vector.shape_cast %12 : vector<1x128x128xf32> to vector<128x128xf32>
    %cst_19 = arith.constant 0.000000e+00 : f32
    %14 = vector.broadcast %cst_19 : f32 to vector<16x128xf32>
    %15 = vector.extract_strided_slice %5 {offsets = [0, 0], sizes = [16, 64], strides = [1, 1]} : vector<16x128xf32> to vector<16x64xf32>
    %16 = vector.shape_cast %15 : vector<16x64xf32> to vector<2x8x64xf32>
    %17 = vector.extract_strided_slice %8 {offsets = [0, 0], sizes = [16, 64], strides = [1, 1]} : vector<16x128xf32> to vector<16x64xf32>
    %18 = vector.shape_cast %17 : vector<16x64xf32> to vector<2x8x64xf32>
    %19 = vector.extract_strided_slice %11 {offsets = [0, 0], sizes = [16, 64], strides = [1, 1]} : vector<16x128xf32> to vector<16x64xf32>
    %20 = vector.shape_cast %19 : vector<16x64xf32> to vector<2x8x64xf32>
    "tpu.trace_start"() <{level = 10 : i32, message = "bqd,bkd->bqk"}> : () -> ()
    %cst_20 = arith.constant dense<0.000000e+00> : vector<2x8x8xf32>
    %21 = tpu.matmul %16, %18, %cst_20 {dimension_numbers = #tpu.dot_dimension_numbers<[2], [2], [1], [1], [0, 0, 0, 1, 1, 1], [0], [0]>} : vector<2x8x64xf32>, vector<2x8x64xf32>, vector<2x8x8xf32> -> vector<2x8x8xf32>
    "tpu.trace_stop"() : () -> ()
    %cst_21 = arith.constant dense<0xFF800000> : vector<2x8xf32>
    %22 = vector.multi_reduction <maximumf>, %21, %cst_21 [2] : vector<2x8x8xf32> to vector<2x8xf32>
    %23 = vector.shape_cast %22 : vector<2x8xf32> to vector<2x8x1xf32>
    %24 = vector.broadcast %23 : vector<2x8x1xf32> to vector<2x8x8xf32>
    %25 = arith.subf %21, %24 : vector<2x8x8xf32>
    %26 = math.exp %25 : vector<2x8x8xf32>
    %cst_22 = arith.constant dense<0.000000e+00> : vector<2x8xf32>
    %27 = vector.multi_reduction <add>, %26, %cst_22 [2] : vector<2x8x8xf32> to vector<2x8xf32>
    %28 = vector.shape_cast %27 : vector<2x8xf32> to vector<2x8x1xf32>
    %29 = vector.broadcast %28 : vector<2x8x1xf32> to vector<2x8x8xf32>
    %30 = arith.divf %26, %29 : vector<2x8x8xf32>
    "tpu.trace_start"() <{level = 10 : i32, message = "bqk,bkd->bqd"}> : () -> ()
    %cst_23 = arith.constant dense<0.000000e+00> : vector<2x8x64xf32>
    %31 = tpu.matmul %30, %20, %cst_23 {dimension_numbers = #tpu.dot_dimension_numbers<[2], [1], [1], [2], [0, 0, 0, 1, 1, 2], [0], [0]>} : vector<2x8x8xf32>, vector<2x8x64xf32>, vector<2x8x64xf32> -> vector<2x8x64xf32>
    "tpu.trace_stop"() : () -> ()
    %32 = vector.shape_cast %31 : vector<2x8x64xf32> to vector<16x64xf32>
    %33 = vector.extract_strided_slice %13 {offsets = [0, 0], sizes = [64, 128], strides = [1, 1]} : vector<128x128xf32> to vector<64x128xf32>
    %cst_24 = arith.constant dense<0.000000e+00> : vector<16x128xf32>
    %34 = tpu.matmul %32, %33, %cst_24 {dimension_numbers = #tpu.dot_dimension_numbers<[1], [0], [0], [1], [0, 0, 1, 1], [], []>} : vector<16x64xf32>, vector<64x128xf32>, vector<16x128xf32> -> vector<16x128xf32>
    %35 = arith.addf %14, %34 : vector<16x128xf32>
    %36 = vector.extract_strided_slice %5 {offsets = [0, 64], sizes = [16, 64], strides = [1, 1]} : vector<16x128xf32> to vector<16x64xf32>
    %37 = vector.shape_cast %36 : vector<16x64xf32> to vector<2x8x64xf32>
    %38 = vector.extract_strided_slice %8 {offsets = [0, 64], sizes = [16, 64], strides = [1, 1]} : vector<16x128xf32> to vector<16x64xf32>
    %39 = vector.shape_cast %38 : vector<16x64xf32> to vector<2x8x64xf32>
    %40 = vector.extract_strided_slice %11 {offsets = [0, 64], sizes = [16, 64], strides = [1, 1]} : vector<16x128xf32> to vector<16x64xf32>
    %41 = vector.shape_cast %40 : vector<16x64xf32> to vector<2x8x64xf32>
    "tpu.trace_start"() <{level = 10 : i32, message = "bqd,bkd->bqk"}> : () -> ()
    %cst_25 = arith.constant dense<0.000000e+00> : vector<2x8x8xf32>
    %42 = tpu.matmul %37, %39, %cst_25 {dimension_numbers = #tpu.dot_dimension_numbers<[2], [2], [1], [1], [0, 0, 0, 1, 1, 1], [0], [0]>} : vector<2x8x64xf32>, vector<2x8x64xf32>, vector<2x8x8xf32> -> vector<2x8x8xf32>
    "tpu.trace_stop"() : () -> ()
    %cst_26 = arith.constant dense<0xFF800000> : vector<2x8xf32>
    %43 = vector.multi_reduction <maximumf>, %42, %cst_26 [2] : vector<2x8x8xf32> to vector<2x8xf32>
    %44 = vector.shape_cast %43 : vector<2x8xf32> to vector<2x8x1xf32>
    %45 = vector.broadcast %44 : vector<2x8x1xf32> to vector<2x8x8xf32>
    %46 = arith.subf %42, %45 : vector<2x8x8xf32>
    %47 = math.exp %46 : vector<2x8x8xf32>
    %cst_27 = arith.constant dense<0.000000e+00> : vector<2x8xf32>
    %48 = vector.multi_reduction <add>, %47, %cst_27 [2] : vector<2x8x8xf32> to vector<2x8xf32>
    %49 = vector.shape_cast %48 : vector<2x8xf32> to vector<2x8x1xf32>
    %50 = vector.broadcast %49 : vector<2x8x1xf32> to vector<2x8x8xf32>
    %51 = arith.divf %47, %50 : vector<2x8x8xf32>
    "tpu.trace_start"() <{level = 10 : i32, message = "bqk,bkd->bqd"}> : () -> ()
    %cst_28 = arith.constant dense<0.000000e+00> : vector<2x8x64xf32>
    %52 = tpu.matmul %51, %41, %cst_28 {dimension_numbers = #tpu.dot_dimension_numbers<[2], [1], [1], [2], [0, 0, 0, 1, 1, 2], [0], [0]>} : vector<2x8x8xf32>, vector<2x8x64xf32>, vector<2x8x64xf32> -> vector<2x8x64xf32>
    "tpu.trace_stop"() : () -> ()
    %53 = vector.shape_cast %52 : vector<2x8x64xf32> to vector<16x64xf32>
    %54 = vector.extract_strided_slice %13 {offsets = [64, 0], sizes = [64, 128], strides = [1, 1]} : vector<128x128xf32> to vector<64x128xf32>
    %cst_29 = arith.constant dense<0.000000e+00> : vector<16x128xf32>
    %55 = tpu.matmul %53, %54, %cst_29 {dimension_numbers = #tpu.dot_dimension_numbers<[1], [0], [0], [1], [0, 0, 1, 1], [], []>} : vector<16x64xf32>, vector<64x128xf32>, vector<16x128xf32> -> vector<16x128xf32>
    %56 = arith.addf %35, %55 : vector<16x128xf32>
    %c0_i32 = arith.constant 0 : i32
    %57 = arith.cmpi eq, %arg1, %c0_i32 : i32
    %58 = arith.extui %57 : i1 to i32
    %c0_i32_30 = arith.constant 0 : i32
    %59 = arith.cmpi ne, %58, %c0_i32_30 : i32
    scf.if %59 {
      %cst_37 = arith.constant 0.000000e+00 : f32
      %66 = vector.broadcast %cst_37 : f32 to vector<16x128xf32>
      %c0_38 = arith.constant 0 : index
      %c0_39 = arith.constant 0 : index
      %67 = vector.load %arg16[%c0_38, %c0_39] : memref<16x128xf32, #tpu.memory_space<vmem>>, vector<16x128xf32>
      tpu.vector_store %arg16[%c0_38, %c0_39], %66 {strides = array<i32>} : memref<16x128xf32, #tpu.memory_space<vmem>>, vector<16x128xf32>,
    } else {
    }
    %c0_31 = arith.constant 0 : index
    %c0_32 = arith.constant 0 : index
    %60 = vector.load %arg16[%c0_31, %c0_32] : memref<16x128xf32, #tpu.memory_space<vmem>>, vector<16x128xf32>
    %61 = arith.addf %60, %56 : vector<16x128xf32>
    %c0_33 = arith.constant 0 : index
    %c0_34 = arith.constant 0 : index
    %62 = vector.load %arg16[%c0_33, %c0_34] : memref<16x128xf32, #tpu.memory_space<vmem>>, vector<16x128xf32>
    tpu.vector_store %arg16[%c0_33, %c0_34], %61 {strides = array<i32>} : memref<16x128xf32, #tpu.memory_space<vmem>>, vector<16x128xf32>,
    %c0_i32_35 = arith.constant 0 : i32
    %63 = arith.cmpi eq, %arg1, %c0_i32_35 : i32
    %64 = arith.extui %63 : i1 to i32
    %c0_i32_36 = arith.constant 0 : i32
    %65 = arith.cmpi ne, %64, %c0_i32_36 : i32
    scf.if %65 {
      %c0_37 = arith.constant 0 : index
      %c0_38 = arith.constant 0 : index
      %66 = vector.load %arg13[%c0_37, %c0_38] : memref<1x128xf32, #tpu.memory_space<vmem>>, vector<1x128xf32>
      %c0_39 = arith.constant 0 : index
      %c0_40 = arith.constant 0 : index
      %67 = vector.load %arg14[%c0_39, %c0_40] : memref<1x128xf32, #tpu.memory_space<vmem>>, vector<1x128xf32>
      %68 = tpu.iota {dimensions = array<i32: 1>} : vector<1x128xi32>
      %c32_i32 = arith.constant 32 : i32
      %69 = vector.broadcast %c32_i32 : i32 to vector<1x128xi32>
      %70 = arith.cmpi slt, %68, %69 : vector<1x128xi32>
      %c0_41 = arith.constant 0 : index
      %c0_42 = arith.constant 0 : index
      %71 = vector.load %arg16[%c0_41, %c0_42] : memref<16x128xf32, #tpu.memory_space<vmem>>, vector<16x128xf32>
      %72 = arith.addf %0, %71 : vector<16x128xf32>
      %cst_43 = arith.constant dense<0.000000e+00> : vector<16xf32>
      %73 = vector.multi_reduction <add>, %72, %cst_43 [1] : vector<16x128xf32> to vector<16xf32>
      %74 = vector.shape_cast %73 : vector<16xf32> to vector<16x1xf32>
      %cst_44 = arith.constant 3.125000e-02 : f32
      %75 = vector.broadcast %cst_44 : f32 to vector<16x1xf32>
      %76 = arith.mulf %74, %75 : vector<16x1xf32>
      %77 = vector.broadcast %76 : vector<16x1xf32> to vector<16x128xf32>
      %78 = arith.subf %72, %77 : vector<16x128xf32>
      %cst_45 = arith.constant 0.000000e+00 : f32
      %79 = vector.shape_cast %70 : vector<1x128xi1> to vector<1x128xi1>
      %80 = vector.broadcast %79 : vector<1x128xi1> to vector<16x128xi1>
      %81 = vector.broadcast %cst_45 : f32 to vector<16x128xf32>
      %82 = arith.select %80, %78, %81 : vector<16x128xi1>, vector<16x128xf32>
      %83 = arith.mulf %82, %82 : vector<16x128xf32>
      %cst_46 = arith.constant dense<0.000000e+00> : vector<16xf32>
      %84 = vector.multi_reduction <add>, %83, %cst_46 [1] : vector<16x128xf32> to vector<16xf32>
      %85 = vector.shape_cast %84 : vector<16xf32> to vector<16x1xf32>
      %cst_47 = arith.constant 3.125000e-02 : f32
      %86 = vector.broadcast %cst_47 : f32 to vector<16x1xf32>
      %87 = arith.mulf %85, %86 : vector<16x1xf32>
      %cst_48 = arith.constant 9.99999974E-6 : f32
      %88 = vector.broadcast %cst_48 : f32 to vector<16x1xf32>
      %89 = arith.addf %87, %88 : vector<16x1xf32>
      %90 = math.rsqrt %89 : vector<16x1xf32>
      %91 = vector.broadcast %90 : vector<16x1xf32> to vector<16x128xf32>
      %92 = arith.mulf %82, %91 : vector<16x128xf32>
      %93 = vector.broadcast %66 : vector<1x128xf32> to vector<16x128xf32>
      %94 = arith.mulf %92, %93 : vector<16x128xf32>
      %95 = vector.broadcast %67 : vector<1x128xf32> to vector<16x128xf32>
      %96 = arith.addf %94, %95 : vector<16x128xf32>
      %c0_49 = arith.constant 0 : index
      %c0_50 = arith.constant 0 : index
      %97 = vector.load %arg9[%c0_49, %c0_50] : memref<128x128xf32, #tpu.memory_space<vmem>>, vector<128x128xf32>
      %cst_51 = arith.constant dense<0.000000e+00> : vector<16x128xf32>
      %98 = tpu.matmul %96, %97, %cst_51 {dimension_numbers = #tpu.dot_dimension_numbers<[1], [0], [0], [1], [0, 0, 1, 1], [], []>} : vector<16x128xf32>, vector<128x128xf32>, vector<16x128xf32> -> vector<16x128xf32>
      %c0_52 = arith.constant 0 : index
      %c0_53 = arith.constant 0 : index
      %99 = vector.load %arg10[%c0_52, %c0_53] : memref<1x128xf32, #tpu.memory_space<vmem>>, vector<1x128xf32>
      %100 = vector.broadcast %99 : vector<1x128xf32> to vector<16x128xf32>
      %101 = arith.addf %98, %100 : vector<16x128xf32>
      %cst_54 = arith.constant 0.000000e+00 : f32
      %102 = vector.broadcast %cst_54 : f32 to vector<16x128xf32>
      %103 = arith.maximumf %101, %102 : vector<16x128xf32>
      %c0_55 = arith.constant 0 : index
      %c0_56 = arith.constant 0 : index
      %104 = vector.load %arg11[%c0_55, %c0_56] : memref<128x128xf32, #tpu.memory_space<vmem>>, vector<128x128xf32>
      %cst_57 = arith.constant dense<0.000000e+00> : vector<16x128xf32>
      %105 = tpu.matmul %103, %104, %cst_57 {dimension_numbers = #tpu.dot_dimension_numbers<[1], [0], [0], [1], [0, 0, 1, 1], [], []>} : vector<16x128xf32>, vector<128x128xf32>, vector<16x128xf32> -> vector<16x128xf32>
      %c0_58 = arith.constant 0 : index
      %c0_59 = arith.constant 0 : index
      %106 = vector.load %arg12[%c0_58, %c0_59] : memref<1x128xf32, #tpu.memory_space<vmem>>, vector<1x128xf32>
      %107 = vector.broadcast %106 : vector<1x128xf32> to vector<16x128xf32>
      %108 = arith.addf %105, %107 : vector<16x128xf32>
      %109 = arith.addf %108, %96 : vector<16x128xf32>
      %cst_60 = arith.constant dense<0.000000e+00> : vector<16xf32>
      %110 = vector.multi_reduction <add>, %109, %cst_60 [1] : vector<16x128xf32> to vector<16xf32>
      %111 = vector.shape_cast %110 : vector<16xf32> to vector<16x1xf32>
      %cst_61 = arith.constant 3.125000e-02 : f32
      %112 = vector.broadcast %cst_61 : f32 to vector<16x1xf32>
      %113 = arith.mulf %111, %112 : vector<16x1xf32>
      %114 = vector.broadcast %113 : vector<16x1xf32> to vector<16x128xf32>
      %115 = arith.subf %109, %114 : vector<16x128xf32>
      %cst_62 = arith.constant 0.000000e+00 : f32
      %116 = vector.shape_cast %70 : vector<1x128xi1> to vector<1x128xi1>
      %117 = vector.broadcast %116 : vector<1x128xi1> to vector<16x128xi1>
      %118 = vector.broadcast %cst_62 : f32 to vector<16x128xf32>
      %119 = arith.select %117, %115, %118 : vector<16x128xi1>, vector<16x128xf32>
      %120 = arith.mulf %119, %119 : vector<16x128xf32>
      %cst_63 = arith.constant dense<0.000000e+00> : vector<16xf32>
      %121 = vector.multi_reduction <add>, %120, %cst_63 [1] : vector<16x128xf32> to vector<16xf32>
      %122 = vector.shape_cast %121 : vector<16xf32> to vector<16x1xf32>
      %cst_64 = arith.constant 3.125000e-02 : f32
      %123 = vector.broadcast %cst_64 : f32 to vector<16x1xf32>
      %124 = arith.mulf %122, %123 : vector<16x1xf32>
      %cst_65 = arith.constant 9.99999974E-6 : f32
      %125 = vector.broadcast %cst_65 : f32 to vector<16x1xf32>
      %126 = arith.addf %124, %125 : vector<16x1xf32>
      %127 = math.rsqrt %126 : vector<16x1xf32>
      %128 = vector.broadcast %127 : vector<16x1xf32> to vector<16x128xf32>
      %129 = arith.mulf %119, %128 : vector<16x128xf32>
      %130 = vector.broadcast %66 : vector<1x128xf32> to vector<16x128xf32>
      %131 = arith.mulf %129, %130 : vector<16x128xf32>
      %132 = vector.broadcast %67 : vector<1x128xf32> to vector<16x128xf32>
      %133 = arith.addf %131, %132 : vector<16x128xf32>
      %c0_66 = arith.constant 0 : index
      %c0_67 = arith.constant 0 : index
      %134 = vector.load %arg15[%c0_66, %c0_67] : memref<16x128xf32, #tpu.memory_space<vmem>>, vector<16x128xf32>
      tpu.vector_store %arg15[%c0_66, %c0_67], %133 {strides = array<i32>} : memref<16x128xf32, #tpu.memory_space<vmem>>, vector<16x128xf32>,
    } else {
    }
    return
  }
  func.func @transform_0(%arg0: i32, %arg1: i32) -> (i32, i32) {
    %c0_i32 = arith.constant 0 : i32
    %c0_i32_0 = arith.constant 0 : i32
    return %arg0, %c0_i32 : i32, i32
  }
  func.func @transform_1(%arg0: i32, %arg1: i32) -> (i32, i32) {
    %c0_i32 = arith.constant 0 : i32
    %c0_i32_0 = arith.constant 0 : i32
    return %arg0, %c0_i32 : i32, i32
  }
  func.func @transform_2(%arg0: i32, %arg1: i32) -> (i32, i32) {
    %c0_i32 = arith.constant 0 : i32
    %c0_i32_0 = arith.constant 0 : i32
    return %arg0, %c0_i32 : i32, i32
  }
  func.func @transform_3(%arg0: i32, %arg1: i32) -> (i32, i32, i32) {
    %c0_i32 = arith.constant 0 : i32
    %c0_i32_0 = arith.constant 0 : i32
    %c0_i32_1 = arith.constant 0 : i32
    return %arg1, %c0_i32, %c0_i32_0 : i32, i32, i32
  }
  func.func @transform_4(%arg0: i32, %arg1: i32) -> (i32, i32, i32) {
    %c0_i32 = arith.constant 0 : i32
    %c0_i32_0 = arith.constant 0 : i32
    %c0_i32_1 = arith.constant 0 : i32
    return %arg1, %c0_i32, %c0_i32_0 : i32, i32, i32
  }
  func.func @transform_5(%arg0: i32, %arg1: i32) -> (i32, i32, i32) {
    %c0_i32 = arith.constant 0 : i32
    %c0_i32_0 = arith.constant 0 : i32
    %c0_i32_1 = arith.constant 0 : i32
    return %arg1, %c0_i32, %c0_i32_0 : i32, i32, i32
  }
  func.func @transform_6(%arg0: i32, %arg1: i32) -> (i32, i32, i32) {
    %c0_i32 = arith.constant 0 : i32
    %c0_i32_0 = arith.constant 0 : i32
    %c0_i32_1 = arith.constant 0 : i32
    return %arg1, %c0_i32, %c0_i32_0 : i32, i32, i32
  }
  func.func @transform_7(%arg0: i32, %arg1: i32) -> (i32, i32) {
    %c0_i32 = arith.constant 0 : i32
    %c0_i32_0 = arith.constant 0 : i32
    %c0_i32_1 = arith.constant 0 : i32
    return %c0_i32, %c0_i32_0 : i32, i32
  }
  func.func @transform_8(%arg0: i32, %arg1: i32) -> (i32, i32) {
    %c0_i32 = arith.constant 0 : i32
    %c0_i32_0 = arith.constant 0 : i32
    %c0_i32_1 = arith.constant 0 : i32
    return %c0_i32, %c0_i32_0 : i32, i32
  }
  func.func @transform_9(%arg0: i32, %arg1: i32) -> (i32, i32) {
    %c0_i32 = arith.constant 0 : i32
    %c0_i32_0 = arith.constant 0 : i32
    %c0_i32_1 = arith.constant 0 : i32
    return %c0_i32, %c0_i32_0 : i32, i32
  }
  func.func @transform_10(%arg0: i32, %arg1: i32) -> (i32, i32) {
    %c0_i32 = arith.constant 0 : i32
    %c0_i32_0 = arith.constant 0 : i32
    %c0_i32_1 = arith.constant 0 : i32
    return %c0_i32, %c0_i32_0 : i32, i32
  }
  func.func @transform_11(%arg0: i32, %arg1: i32) -> (i32, i32) {
    %c0_i32 = arith.constant 0 : i32
    %c0_i32_0 = arith.constant 0 : i32
    %c0_i32_1 = arith.constant 0 : i32
    return %c0_i32, %c0_i32_0 : i32, i32
  }
  func.func @transform_12(%arg0: i32, %arg1: i32) -> (i32, i32) {
    %c0_i32 = arith.constant 0 : i32
    %c0_i32_0 = arith.constant 0 : i32
    %c0_i32_1 = arith.constant 0 : i32
    return %c0_i32, %c0_i32_0 : i32, i32
  }
  func.func @transform_13(%arg0: i32, %arg1: i32) -> (i32, i32) {
    %c0_i32 = arith.constant 0 : i32
    %c0_i32_0 = arith.constant 0 : i32
    return %arg0, %c0_i32 : i32, i32
  }
}

</mosaic_0001>

<bundles_post_ra>
// kernel: tpu_custom_call.1
= control target key start
LH: loop header
LB: loop body
LE: loop exit
PB: predicated region body
PF: predicated region fallthrough
CT: control target
= control target key end

     0   :  { %18 = vsyncpa [#allocation4], 0  ;;  %s2837_s0 = inlined_call_operand.hbm [shape: f32[16,128], index: 0, kind: input, shape index: {}]   ;;  %s2838_s1 = inlined_call_operand.hbm [shape: f32[16,128], index: 1, kind: input, shape index: {}]   ;;  %s2839_s2 = inlined_call_operand.hbm [shape: f32[16,128], index: 2, kind: input, shape index: {}]   ;;  %s2840_s3 = inlined_call_operand.hbm [shape: f32[1,128,128], index: 3, kind: input, shape index: {}]   ;;  %s2841_s4 = inlined_call_operand.hbm [shape: f32[1,128,128], index: 4, kind: input, shape index: {}]   ;;  %s2842_s5 = inlined_call_operand.hbm [shape: f32[1,128,128], index: 5, kind: input, shape index: {}]   ;;  %s2843_s6 = inlined_call_operand.hbm [shape: f32[1,128,128], index: 6, kind: input, shape index: {}]   ;;  %s2844_s7 = inlined_call_operand.hbm [shape: f32[128,128], index: 7, kind: input, shape index: {}]   ;;  %s2845_s8 = inlined_call_operand.vmem [shape: f32[1,128], index: 8, kind: input, shape index: {}]   ;;  %s2846_s9 = inlined_call_operand.hbm [shape: f32[128,128], index: 9, kind: input, shape index: {}]   ;;  %s2847_s10 = inlined_call_operand.vmem [shape: f32[1,128], index: 10, kind: input, shape index: {}]   ;;  %s2848_s11 = inlined_call_operand.vmem [shape: f32[1,128], index: 11, kind: input, shape index: {}]   ;;  %s2849_s12 = inlined_call_operand.vmem [shape: f32[1,128], index: 12, kind: input, shape index: {}]   ;;  %s2850_s13 = inlined_call_operand.hbm [shape: f32[16,128], index: 13, kind: output, shape index: {}]  }
   0x1   :  { %19 = vsyncpa [#allocation7], 0 }
   0x2   :  { %20 = vsyncpa [#allocation10], 0 }
   0x3   :  { %21 = vsyncpa [#allocation13], 0 }
   0x4   :  { %22 = vsyncpa [#allocation16], 0 }
   0x5   :  { %23 = vsyncpa [#allocation5], 0  ;;  %s2459_s25 = smov [#allocation6]   ;;  %s2460_s27 = smov [#allocation9]  }
   0x6   :  { %s41_s26 = sshll.u32 %s2459_s25, 4  ;;  %s65_s28 = sshll.u32 %s2460_s27, 4  ;;  %s42_s26 = int_to_ptr.vmem [resolvable:$true] %s41_s26  ;;  %s2544_s28 = int_to_ptr.vmem [resolvable:$true] %s65_s28 }
   0x7   :  { %s2227_s14 = scalar_lea.hbm %s2838_s1, 256 }
   0x8   :  { %p2228_p0 = scmp.ne.s32.totalorder %s2838_s1, %s2227_s14  ;;  %p2231_p1 = scmp.lt.u32.totalorder %s2227_s14, %s2838_s1 }
   0xa   :  { %p2233_p2 = pnand %p2231_p1, %p2228_p0 }
   0xc   :  { %2236 = shalt.err (!%p2233_p2)
}
   0xd   :  { %s2237_s19 = scalar_lea.vmem %s42_s26, 256  ;;  %p2242_p4 = scmp.lt.s32.totalorder %s42_s26, %s42_s26 }
   0xe   :  { %p2238_p3 = scmp.ne.s32.totalorder %s42_s26, %s2237_s19  ;;  %p2243_p5 = scmp.lt.s32.totalorder %s2237_s19, %s2237_s19 }
  0x10   :  { %p2244_p6 = por %p2243_p5, %p2242_p4 }
  0x12   :  { %p2245_p7 = pnand %p2244_p6, %p2238_p3 }
  0x14   :  { %2248 = shalt.err (!%p2245_p7)
}
  0x15   :  { %s2461_s20 = smov 128   ;;  %s2462_s21 = smov 8  }
  0x16   :  { %47 = dma.hbm_to_vmem [thread:$0]  %s2838_s1, 256, %s42_s26, [#allocation7], %s2461_s20, %s2461_s20, %s2462_s21  }
  0x17   :  { %s2249_s27 = scalar_lea.hbm %s2840_s3, 2048 }
  0x18   :  { %p2250_p8 = scmp.ne.s32.totalorder %s2840_s3, %s2249_s27  ;;  %p2253_p9 = scmp.lt.u32.totalorder %s2249_s27, %s2840_s3 }
  0x1a   :  { %p2255_p10 = pnand %p2253_p9, %p2250_p8 }
  0x1c   :  { %2258 = shalt.err (!%p2255_p10)
}
  0x1d   :  { %s2259_s16 = scalar_lea.vmem %s2544_s28, 2048  ;;  %p2264_p12 = scmp.lt.s32.totalorder %s2544_s28, %s2544_s28 }
  0x1e   :  { %p2260_p11 = scmp.ne.s32.totalorder %s2544_s28, %s2259_s16  ;;  %p2265_p13 = scmp.lt.s32.totalorder %s2259_s16, %s2259_s16 }
  0x20   :  { %p2266_p0 = por %p2265_p13, %p2264_p12 }
  0x22   :  { %p2267_p1 = pnand %p2266_p0, %p2260_p11 }
  0x24   :  { %2270 = shalt.err (!%p2267_p1)
}
  0x25   :  { %71 = dma.hbm_to_vmem [thread:$0]  %s2840_s3, 2048, %s2544_s28, [#allocation10], %s2461_s20, %s2461_s20, %s2462_s21  }
  0x26   :  { %s2463_s17 = smov [#allocation12]   ;;  %s2464_s19 = smov [#allocation15]  }
  0x27   :  { %s89_s18 = sshll.u32 %s2463_s17, 4  ;;  %s113_s22 = sshll.u32 %s2464_s19, 4  ;;  %s90_s18 = int_to_ptr.vmem [resolvable:$true] %s89_s18  ;;  %s2581_s22 = int_to_ptr.vmem [resolvable:$true] %s113_s22 }
  0x28   :  { %s2271_s25 = scalar_lea.hbm %s2842_s5, 2048 }
  0x29   :  { %p2272_p2 = scmp.ne.s32.totalorder %s2842_s5, %s2271_s25  ;;  %p2275_p3 = scmp.lt.u32.totalorder %s2271_s25, %s2842_s5 }
  0x2b   :  { %p2277_p4 = pnand %p2275_p3, %p2272_p2 }
  0x2d   :  { %2280 = shalt.err (!%p2277_p4)
}
  0x2e   :  { %s2281_s3 = scalar_lea.vmem %s90_s18, 2048  ;;  %p2286_p6 = scmp.lt.s32.totalorder %s90_s18, %s90_s18 }
  0x2f   :  { %p2282_p5 = scmp.ne.s32.totalorder %s90_s18, %s2281_s3  ;;  %p2287_p7 = scmp.lt.s32.totalorder %s2281_s3, %s2281_s3 }
  0x31   :  { %p2288_p8 = por %p2287_p7, %p2286_p6 }
  0x33   :  { %p2289_p9 = pnand %p2288_p8, %p2282_p5 }
  0x35   :  { %2292 = shalt.err (!%p2289_p9)
}
  0x36   :  { %95 = dma.hbm_to_vmem [thread:$0]  %s2842_s5, 2048, %s90_s18, [#allocation13], %s2461_s20, %s2461_s20, %s2462_s21  }
  0x37   :  { %s2293_s26 = scalar_lea.hbm %s2844_s7, 2048 }
  0x38   :  { %p2294_p10 = scmp.ne.s32.totalorder %s2844_s7, %s2293_s26  ;;  %p2297_p11 = scmp.lt.u32.totalorder %s2293_s26, %s2844_s7 }
  0x3a   :  { %p2299_p12 = pnand %p2297_p11, %p2294_p10 }
  0x3c   :  { %2302 = shalt.err (!%p2299_p12)
}
  0x3d   :  { %s2303_s25 = scalar_lea.vmem %s2581_s22, 2048  ;;  %p2308_p0 = scmp.lt.s32.totalorder %s2581_s22, %s2581_s22 }
  0x3e   :  { %p2304_p13 = scmp.ne.s32.totalorder %s2581_s22, %s2303_s25  ;;  %p2309_p1 = scmp.lt.s32.totalorder %s2303_s25, %s2303_s25 }
  0x40   :  { %p2310_p2 = por %p2309_p1, %p2308_p0 }
  0x42   :  { %p2311_p3 = pnand %p2310_p2, %p2304_p13 }
  0x44   :  { %2314 = shalt.err (!%p2311_p3)
}
  0x45   :  { %119 = dma.hbm_to_vmem [thread:$0]  %s2844_s7, 2048, %s2581_s22, [#allocation16], %s2461_s20, %s2461_s20, %s2462_s21  }
  0x46   :  { %s2465_s27 = smov [#allocation3]   ;;  %s2466_s30 = smov [#allocation8]  }
  0x47   :  { %s29_s29 = sshll.u32 %s2465_s27, 4  ;;  %s53_s14 = sshll.u32 %s2466_s30, 4  ;;  %s30_s29 = int_to_ptr.vmem [resolvable:$true] %s29_s29  ;;  %s2618_s14 = int_to_ptr.vmem [resolvable:$true] %s53_s14 }
  0x48   :  { %s2315_s15 = scalar_lea.hbm %s2837_s0, 256 }
  0x49   :  { %p2316_p4 = scmp.ne.s32.totalorder %s2837_s0, %s2315_s15  ;;  %p2319_p5 = scmp.lt.u32.totalorder %s2315_s15, %s2837_s0 }
  0x4b   :  { %p2321_p6 = pnand %p2319_p5, %p2316_p4 }
  0x4d   :  { %2324 = shalt.err (!%p2321_p6)
}
  0x4e   :  { %s2325_s7 = scalar_lea.vmem %s30_s29, 256  ;;  %p2330_p8 = scmp.lt.s32.totalorder %s30_s29, %s30_s29 }
  0x4f   :  { %p2326_p7 = scmp.ne.s32.totalorder %s30_s29, %s2325_s7  ;;  %p2331_p9 = scmp.lt.s32.totalorder %s2325_s7, %s2325_s7 }
  0x51   :  { %p2332_p10 = por %p2331_p9, %p2330_p8 }
  0x53   :  { %p2333_p11 = pnand %p2332_p10, %p2326_p7 }
  0x55   :  { %2336 = shalt.err (!%p2333_p11)
}
  0x56   :  { %35 = dma.hbm_to_vmem [thread:$0]  %s2837_s0, 256, %s30_s29, [#allocation4], %s2461_s20, %s2461_s20, %s2462_s21  }
  0x57   :  { %s2337_s25 = scalar_lea.hbm %s2839_s2, 256 }
  0x58   :  { %p2338_p12 = scmp.ne.s32.totalorder %s2839_s2, %s2337_s25  ;;  %p2341_p13 = scmp.lt.u32.totalorder %s2337_s25, %s2839_s2 }
  0x5a   :  { %p2343_p0 = pnand %p2341_p13, %p2338_p12 }
  0x5c   :  { %2346 = shalt.err (!%p2343_p0)
}
  0x5d   :  { %s2347_s3 = scalar_lea.vmem %s2618_s14, 256  ;;  %p2352_p2 = scmp.lt.s32.totalorder %s2618_s14, %s2618_s14 }
  0x5e   :  { %p2348_p1 = scmp.ne.s32.totalorder %s2618_s14, %s2347_s3  ;;  %p2353_p3 = scmp.lt.s32.totalorder %s2347_s3, %s2347_s3 }
  0x60   :  { %p2354_p4 = por %p2353_p3, %p2352_p2 }
  0x62   :  { %p2355_p5 = pnand %p2354_p4, %p2348_p1 }
  0x64   :  { %2358 = shalt.err (!%p2355_p5)
}
  0x65   :  { %59 = dma.hbm_to_vmem [thread:$0]  %s2839_s2, 256, %s2618_s14, [#allocation7], %s2461_s20, %s2461_s20, %s2462_s21  }
  0x66   :  { %s2467_s28 = smov [#allocation11]   ;;  %s2468_s16 = smov [#allocation14]  }
  0x67   :  { %s77_s15 = sshll.u32 %s2467_s28, 4  ;;  %s101_s1 = sshll.u32 %s2468_s16, 4  ;;  %s78_s15 = int_to_ptr.vmem [resolvable:$true] %s77_s15  ;;  %s2655_s1 = int_to_ptr.vmem [resolvable:$true] %s101_s1 }
  0x68   :  { %s2359_s7 = scalar_lea.hbm %s2841_s4, 2048 }
  0x69   :  { %p2360_p6 = scmp.ne.s32.totalorder %s2841_s4, %s2359_s7  ;;  %p2363_p7 = scmp.lt.u32.totalorder %s2359_s7, %s2841_s4 }
  0x6b   :  { %p2365_p8 = pnand %p2363_p7, %p2360_p6 }
  0x6d   :  { %2368 = shalt.err (!%p2365_p8)
}
  0x6e   :  { %s2369_s2 = scalar_lea.vmem %s78_s15, 2048  ;;  %p2374_p10 = scmp.lt.s32.totalorder %s78_s15, %s78_s15 }
  0x6f   :  { %p2370_p9 = scmp.ne.s32.totalorder %s78_s15, %s2369_s2  ;;  %p2375_p11 = scmp.lt.s32.totalorder %s2369_s2, %s2369_s2 }
  0x71   :  { %p2376_p12 = por %p2375_p11, %p2374_p10 }
  0x73   :  { %p2377_p13 = pnand %p2376_p12, %p2370_p9 }
  0x75   :  { %2380 = shalt.err (!%p2377_p13)
}
  0x76   :  { %83 = dma.hbm_to_vmem [thread:$0]  %s2841_s4, 2048, %s78_s15, [#allocation10], %s2461_s20, %s2461_s20, %s2462_s21  }
  0x77   :  { %s2381_s27 = scalar_lea.hbm %s2843_s6, 2048 }
  0x78   :  { %p2382_p0 = scmp.ne.s32.totalorder %s2843_s6, %s2381_s27  ;;  %p2385_p1 = scmp.lt.u32.totalorder %s2381_s27, %s2843_s6 }
  0x7a   :  { %p2387_p2 = pnand %p2385_p1, %p2382_p0 }
  0x7c   :  { %2390 = shalt.err (!%p2387_p2)
}
  0x7d   :  { %s2391_s28 = scalar_lea.vmem %s2655_s1, 2048  ;;  %p2396_p4 = scmp.lt.s32.totalorder %s2655_s1, %s2655_s1 }
  0x7e   :  { %p2392_p3 = scmp.ne.s32.totalorder %s2655_s1, %s2391_s28  ;;  %p2397_p5 = scmp.lt.s32.totalorder %s2391_s28, %s2391_s28 }
  0x80   :  { %p2398_p6 = por %p2397_p5, %p2396_p4 }
  0x82   :  { %p2399_p7 = pnand %p2398_p6, %p2392_p3 }
  0x84   :  { %2402 = shalt.err (!%p2399_p7)
}
  0x85   :  { %107 = dma.hbm_to_vmem [thread:$0]  %s2843_s6, 2048, %s2655_s1, [#allocation13], %s2461_s20, %s2461_s20, %s2462_s21  }
  0x86   :  { %s2469_s16 = smov [#allocation17]   ;;  %s2403_s22 = scalar_lea.hbm %s2846_s9, 2048 }
  0x87   :  { %s127_s26 = sshll.u32 %s2469_s16, 4  ;;  %p2404_p8 = scmp.ne.s32.totalorder %s2846_s9, %s2403_s22  ;;  %s128_s26 = int_to_ptr.vmem [resolvable:$true] %s127_s26 }
  0x88   :  { %p2407_p9 = scmp.lt.u32.totalorder %s2403_s22, %s2846_s9 }
  0x8a   :  { %p2409_p10 = pnand %p2407_p9, %p2404_p8 }
  0x8c   :  { %2412 = shalt.err (!%p2409_p10)
}
  0x8d   :  { %s2413_s14 = scalar_lea.vmem %s128_s26, 2048  ;;  %p2418_p12 = scmp.lt.s32.totalorder %s128_s26, %s128_s26 }
  0x8e   :  { %p2414_p11 = scmp.ne.s32.totalorder %s128_s26, %s2413_s14  ;;  %p2419_p13 = scmp.lt.s32.totalorder %s2413_s14, %s2413_s14 }
  0x90   :  { %p2420_p0 = por %p2419_p13, %p2418_p12 }
  0x92   :  { %p2421_p1 = pnand %p2420_p0, %p2414_p11 }
  0x94   :  { %2424 = shalt.err (!%p2421_p1)
}
  0x95   :  { %133 = dma.hbm_to_vmem [thread:$0]  %s2846_s9, 2048, %s128_s26, [#allocation16], %s2461_s20, %s2461_s20, %s2462_s21  }
  0x96   :  { %2447 = dma.done.wait [#allocation4], 256  }
  0x97   :  { %2448 = vsyncadd [#allocation4], 4294967040 }
  0x98   :  { %2449 = dma.done.wait [#allocation7], 512  }
  0x99   :  { %2450 = vsyncadd [#allocation7], 4294966784 }
  0x9a   :  { %2451 = dma.done.wait [#allocation10], 4096  }
  0x9b   :  { %2452 = vsyncadd [#allocation10], 4294963200 }
  0x9c   :  { %2453 = dma.done.wait [#allocation13], 4096  }
  0x9d   :  { %2454 = vsyncadd [#allocation13], 4294963200 }
  0x9e   :  { %2455 = dma.done.wait [#allocation16], 4096  }
  0x9f   :  { %2456 = vsyncadd [#allocation16], 4294963200  ;;  %v264_v0 = vld [vmem:[#allocation11] sm:$0xff]  ;;  %v265_v1 = vld [vmem:[#allocation11 + $0x8] sm:$0xff]  ;;  %v2470_v52 = vmov 0.0   ;;  %vm2471_vm0 = vmmov 0  }
  0xa0   :  { %v173_v2 = vld [vmem:[#allocation9] sm:$0xff]  ;;  %v2026_v3 = vpack.c.bf16 %v265_v1, %v264_v0  ;;  %v174_v4 = vld [vmem:[#allocation9 + $0x8] sm:$0xff]  ;;  %v266_v5 = vld [vmem:[#allocation11 + $0x10] sm:$0xff]  ;;  %vm462_vm1 = vcmask 523264   ;;  %s2472_s9 = smov 64   ;;  %vm615_vm2 = vcmask 64512  }
  0xa1   :  { %v267_v6 = vld [vmem:[#allocation11 + $0x18] sm:$0xff]  ;;  %v1994_v7 = vpack.c.bf16 %v174_v4, %v173_v2  ;;  %v175_v9 = vld [vmem:[#allocation9 + $0x10] sm:$0xff]  ;;  %v268_v11 = vld [vmem:[#allocation11 + $0x20] sm:$0xff] }
  0xa2   :  { %v2030_v8 = vpack.c.bf16 %v267_v6, %v266_v5  ;;  %v176_v10 = vld [vmem:[#allocation9 + $0x18] sm:$0xff]  ;;  %2027 = vmatprep.subr.bf16.mxu1 %v2026_v3  ;;  %v269_v13 = vld [vmem:[#allocation11 + $0x28] sm:$0xff]  ;;  %v177_v14 = vld [vmem:[#allocation9 + $0x20] sm:$0xff] }
  0xa3   :  { %v1998_v12 = vpack.c.bf16 %v176_v10, %v175_v9  ;;  %v178_v15 = vld [vmem:[#allocation9 + $0x28] sm:$0xff]  ;;  %2029 = vmatpush3.bf16.msra.mxu1 %v2026_v3  ;;  %1995 = vmatprep.subr.bf16.mxu0 %v1994_v7  ;;  %v2034_v16 = vpack.c.bf16 %v269_v13, %v268_v11  ;;  %v270_v18 = vld [vmem:[#allocation11 + $0x30] sm:$0xff]  ;;  %v271_v19 = vld [vmem:[#allocation11 + $0x38] sm:$0xff] }
  0xa4   :  { %1997 = vmatpush3.bf16.msra.mxu0 %v1994_v7  ;;  %2031 = vmatprep.subr.bf16.mxu1 %v2030_v8  ;;  %v2002_v17 = vpack.c.bf16 %v178_v15, %v177_v14  ;;  %v179_v20 = vld [vmem:[#allocation9 + $0x30] sm:$0xff]  ;;  %v180_v21 = vld [vmem:[#allocation9 + $0x38] sm:$0xff]  ;;  %v2038_v22 = vpack.c.bf16 %v271_v19, %v270_v18  ;;  %v272_v24 = vld [vmem:[#allocation11 + $0x40] sm:$0xff] }
  0xa5   :  { %1999 = vmatprep.subr.bf16.mxu0 %v1998_v12  ;;  %v2006_v23 = vpack.c.bf16 %v180_v21, %v179_v20  ;;  %v273_v25 = vld [vmem:[#allocation11 + $0x48] sm:$0xff]  ;;  %v169_v26 = vld [vmem:[#allocation6] sm:$0xff]  ;;  %v2707_v29 = vld [vmem:[#allocation3] sm:$0xff] }
  0xa6   :  { %v181_v27 = vld [vmem:[#allocation9 + $0x40] sm:$0xff]  ;;  %v182_v28 = vld [vmem:[#allocation9 + $0x48] sm:$0xff]  ;;  %1808 = vmatprep.mubr.f32.mxu1 %v169_v26  ;;  %1773 = vmatprep.mubr.f32.mxu0 %v2707_v29  ;;  %v2042_v30 = vpack.c.bf16 %v273_v25, %v272_v24  ;;  %v274_v32 = vld [vmem:[#allocation11 + $0x50] sm:$0xff] }
  0xa7   :  { %2033 = vmatpush3.bf16.msra.mxu1 %v2030_v8  ;;  %v2010_v31 = vpack.c.bf16 %v182_v28, %v181_v27  ;;  %v275_v33 = vld [vmem:[#allocation11 + $0x58] sm:$0xff]  ;;  %v183_v34 = vld [vmem:[#allocation9 + $0x50] sm:$0xff]  ;;  %v276_v38 = vld [vmem:[#allocation11 + $0x60] sm:$0xff] }
  0xa8   :  { %2001 = vmatpush3.bf16.msra.mxu0 %v1998_v12  ;;  %2035 = vmatprep.subr.bf16.mxu1 %v2034_v16  ;;  %v184_v35 = vld [vmem:[#allocation9 + $0x58] sm:$0xff]  ;;  %v2046_v36 = vpack.c.bf16 %v275_v33, %v274_v32  ;;  %v277_v39 = vld [vmem:[#allocation11 + $0x68] sm:$0xff]  ;;  %v185_v40 = vld [vmem:[#allocation9 + $0x60] sm:$0xff] }
  0xa9   :  { %2003 = vmatprep.subr.bf16.mxu0 %v2002_v17  ;;  %v2014_v37 = vpack.c.bf16 %v184_v35, %v183_v34  ;;  %v186_v41 = vld [vmem:[#allocation9 + $0x68] sm:$0xff]  ;;  %v2050_v42 = vpack.c.bf16 %v277_v39, %v276_v38  ;;  %v278_v44 = vld [vmem:[#allocation11 + $0x70] sm:$0xff]  ;;  %v279_v45 = vld [vmem:[#allocation11 + $0x78] sm:$0xff] }
  0xaa   :  { %v2018_v43 = vpack.c.bf16 %v186_v41, %v185_v40  ;;  %v187_v46 = vld [vmem:[#allocation9 + $0x70] sm:$0xff]  ;;  %v188_v47 = vld [vmem:[#allocation9 + $0x78] sm:$0xff]  ;;  %v2054_v48 = vpack.c.bf16 %v279_v45, %v278_v44  ;;  %v170_v50 = vld [vmem:[#allocation6 + $0x8] sm:$0xff] }
  0xab   :  { %2037 = vmatpush3.bf16.msra.mxu1 %v2034_v16  ;;  %v2022_v49 = vpack.c.bf16 %v188_v47, %v187_v46  ;;  %v2710_v51 = vld [vmem:[#allocation3 + $0x8] sm:$0xff]  ;;  %v355_v57 = vld [vmem:[#allocation12] sm:$0xff]  ;;  %v356_v58 = vld [vmem:[#allocation12 + $0x8] sm:$0xff] }
  0xac   :  { %2005 = vmatpush3.bf16.msra.mxu0 %v2002_v17  ;;  %2039 = vmatprep.subr.bf16.mxu1 %v2038_v22  ;;  %v357_v59 = vld [vmem:[#allocation12 + $0x10] sm:$0xff]  ;;  %v2058_v60 = vpack.c.bf16 %v356_v58, %v355_v57  ;;  %v358_v61 = vld [vmem:[#allocation12 + $0x18] sm:$0xff]  ;;  %v359_v63 = vld [vmem:[#allocation12 + $0x20] sm:$0xff] }
  0xad   :  { %2007 = vmatprep.subr.bf16.mxu0 %v2006_v23  ;;  %v2062_v62 = vpack.c.bf16 %v358_v61, %v357_v59  ;;  %v360_v0 = vld [vmem:[#allocation12 + $0x28] sm:$0xff]  ;;  %v171_v2 = vld [vmem:[#allocation8] sm:$0xff]  ;;  %v362_v4 = vld [vmem:[#allocation12 + $0x38] sm:$0xff] }
  0xae   :  { %v2066_v1 = vpack.c.bf16 %v360_v0, %v359_v63  ;;  %v361_v3 = vld [vmem:[#allocation12 + $0x30] sm:$0xff]  ;;  %v363_v6 = vld [vmem:[#allocation12 + $0x40] sm:$0xff]  ;;  %v364_v7 = vld [vmem:[#allocation12 + $0x48] sm:$0xff] }
  0xaf   :  { %2041 = vmatpush3.bf16.msra.mxu1 %v2038_v22  ;;  %v2070_v5 = vpack.c.bf16 %v362_v4, %v361_v3  ;;  %v2074_v8 = vpack.c.bf16 %v364_v7, %v363_v6  ;;  %v365_v9 = vld [vmem:[#allocation12 + $0x50] sm:$0xff]  ;;  %v366_v10 = vld [vmem:[#allocation12 + $0x58] sm:$0xff]  ;;  %v367_v12 = vld [vmem:[#allocation12 + $0x60] sm:$0xff] }
  0xb0   :  { %2009 = vmatpush3.bf16.msra.mxu0 %v2006_v23  ;;  %2043 = vmatprep.subr.bf16.mxu1 %v2042_v30  ;;  %v2078_v11 = vpack.c.bf16 %v366_v10, %v365_v9  ;;  %v368_v13 = vld [vmem:[#allocation12 + $0x68] sm:$0xff]  ;;  %v369_v15 = vld [vmem:[#allocation12 + $0x70] sm:$0xff]  ;;  %v370_v16 = vld [vmem:[#allocation12 + $0x78] sm:$0xff] }
  0xb1   :  { %2011 = vmatprep.subr.bf16.mxu0 %v2010_v31  ;;  %v2082_v14 = vpack.c.bf16 %v368_v13, %v367_v12  ;;  %v2086_v17 = vpack.c.bf16 %v370_v16, %v369_v15  ;;  %v172_v18 = vld [vmem:[#allocation8 + $0x8] sm:$0xff]  ;;  %v451_v57 = vld [vmem:[#allocation14 + $0x28] sm:$0xff]  ;;  %v452_v59 = vld [vmem:[#allocation14 + $0x30] sm:$0xff] }
  0xb3   :  { %2045 = vmatpush3.bf16.msra.mxu1 %v2042_v30 }
  0xb4   :  { %2013 = vmatpush3.bf16.msra.mxu0 %v2010_v31  ;;  %2047 = vmatprep.subr.bf16.mxu1 %v2046_v36 }
  0xb5   :  { %2015 = vmatprep.subr.bf16.mxu0 %v2014_v37 }
  0xb7   :  { %2049 = vmatpush3.bf16.msra.mxu1 %v2046_v36 }
  0xb8   :  { %2017 = vmatpush3.bf16.msra.mxu0 %v2014_v37  ;;  %2051 = vmatprep.subr.bf16.mxu1 %v2050_v42 }
  0xb9   :  { %2019 = vmatprep.subr.bf16.mxu0 %v2018_v43 }
  0xbb   :  { %2053 = vmatpush3.bf16.msra.mxu1 %v2050_v42 }
  0xbc   :  { %2021 = vmatpush3.bf16.msra.mxu0 %v2018_v43  ;;  %2055 = vmatprep.subr.bf16.mxu1 %v2054_v48 }
  0xbd   :  { %2023 = vmatprep.subr.bf16.mxu0 %v2022_v49 }
  0xbf   :  { %2057 = vmatpush3.bf16.msra.mxu1 %v2054_v48  ;;  %v446_v48 = vld [vmem:[#allocation14] sm:$0xff] }
  0xc0   :  { %2025 = vmatpush3.bf16.msra.mxu0 %v2022_v49  ;;  %1846 = vmatprep.subr.mxu1 %v2470_v52  ;;  %v447_v49 = vld [vmem:[#allocation14 + $0x8] sm:$0xff] }
  0xc1   :  { %2059 = vmatprep.subr.bf16.mxu0 %v2058_v60 }
  0xc2   :  { %1809 = vmatmul.mubr.f32.vlgmr.msra.gmra.mrb[0].mxu1 %v170_v50  ;;  %v448_v50 = vld [vmem:[#allocation14 + $0x10] sm:$0xff] }
  0xc3   :  { %1774 = vmatmul.mubr.f32.vlgmr.msra.gmra.mrb[0].mxu0 %v2710_v51  ;;  %1848 = vmatprep.mubr.msk.f32.mxu1 %vm2471_vm0, %v2470_v52 }
  0xc4   :  { %2061 = vmatpush3.bf16.msra.mxu0 %v2058_v60  ;;  %1843 = vmatprep.mubr.f32.mxu0 %v171_v2  ;;  %v453_v60 = vld [vmem:[#allocation14 + $0x38] sm:$0xff] }
  0xc5   :  { %2063 = vmatprep.subr.bf16.mxu0 %v2062_v62  ;;  %v2118_v61 = vpack.c.bf16 %v453_v60, %v452_v59  ;;  %v1349_v59 = vld [vmem:[#allocation15 + $0x28] sm:$0xff] }
  0xc8   :  { %2065 = vmatpush3.bf16.msra.mxu0 %v2062_v62 }
  0xc9   :  { %2067 = vmatprep.subr.bf16.mxu0 %v2066_v1 }
  0xcc   :  { %2069 = vmatpush3.bf16.msra.mxu0 %v2066_v1 }
  0xcd   :  { %2071 = vmatprep.subr.bf16.mxu0 %v2070_v5 }
  0xd0   :  { %2073 = vmatpush3.bf16.msra.mxu0 %v2070_v5 }
  0xd1   :  { %2075 = vmatprep.subr.bf16.mxu0 %v2074_v8 }
  0xd4   :  { %2077 = vmatpush3.bf16.msra.mxu0 %v2074_v8 }
  0xd5   :  { %2079 = vmatprep.subr.bf16.mxu0 %v2078_v11 }
  0xd8   :  { %2081 = vmatpush3.bf16.msra.mxu0 %v2078_v11 }
  0xd9   :  { %2083 = vmatprep.subr.bf16.mxu0 %v2082_v14 }
  0xdc   :  { %2085 = vmatpush3.bf16.msra.mxu0 %v2082_v14 }
  0xdd   :  { %2087 = vmatprep.subr.bf16.mxu0 %v2086_v17 }
  0xe0   :  { %2089 = vmatpush3.bf16.msra.mxu0 %v2086_v17 }
  0xe3   :  { %1844 = vmatmul.mubr.f32.vlgmr.msra.gmra.mrb[2].mxu0 %v172_v18 }
 0x195   :  { %v2716_v53 = vpop.f32.mrb[0].mxu1 }
 0x196   :  { %v2718_v54 = vpop.f32.mrb[1].mxu1  ;;  %v2720_v55 = vpop.f32.mrb[0].mxu0 }
 0x197   :  { %1847 = vmatpush3.xpose.msk.msra.mxu1 %vm462_vm1, %v2718_v54  ;;  %v255_v56 = vpop.f32.mrb[1].mxu0 }
 0x198   :  { %1851 = vmatprep.subr.mxu1 %v2470_v52  ;;  %784 = vrot.lane.b32.xlu1 %v255_v56, %s2472_s9 }
 0x19a   :  { %1849 = vmatmul.mubr.msk.f32.vlgmr.msra.gmra.mrb[2].mxu1 %vm462_vm1, %v255_v56  ;;  %v450_v56 = vld [vmem:[#allocation14 + $0x20] sm:$0xff] }
 0x19b   :  { %1852 = vmatpush3.xpose.msk.msra.mxu1 %vm462_vm1, %v2716_v53  ;;  %1853 = vmatprep.mubr.msk.f32.mxu1 %vm2471_vm0, %v2470_v52  ;;  %v2114_v58 = vpack.c.bf16 %v451_v57, %v450_v56  ;;  %v1347_v56 = vld [vmem:[#allocation15 + $0x18] sm:$0xff] }
 0x19c   :  { %1856 = vmatprep.subr.mxu1 %v2470_v52 }
 0x19e   :  { %1854 = vmatmul.mubr.msk.f32.vlgmr.msra.gmra.mrb[4].mxu1 %vm462_vm1, %v2720_v55 }
 0x19f   :  { %1858 = vmatprep.mubr.msk.f32.mxu1 %vm2471_vm0, %v2470_v52 }
 0x1b6   :  { %v2743_v31 = vpop.f32.mrb[2].mxu0 }
 0x1b7   :  { %v2745_v32 = vpop.f32.mrb[3].mxu0 }
 0x1b8   :  { %1857 = vmatpush3.msra.mxu1 %v2745_v32 }
 0x1b9   :  { %1861 = vmatprep.subr.mxu1 %v2470_v52 }
 0x20a   :  { %v785_v38 = vpop.permute.xlu1 %784 }
 0x26d   :  { %v535_v19 = vpop.f32.mrb[2].mxu1 }
 0x26e   :  { %v1850_v20 = vpop.f32.mrb[3].mxu1  ;;  %v616_v21 = vsel %vm615_vm2, %v535_v19, -inf }
 0x26f   :  { %617 = vmax.xlane.f32.xlu0 %v616_v21 }
 0x271   :  { %v611_v22 = vpop.f32.mrb[4].mxu1 }
 0x272   :  { %v1855_v23 = vpop.f32.mrb[5].mxu1  ;;  %v619_v24 = vsel %vm615_vm2, %v611_v22, -inf }
 0x273   :  { %620 = vmax.xlane.f32.xlu0 %v619_v24  ;;  %v454_v23 = vld [vmem:[#allocation14 + $0x40] sm:$0xff]  ;;  %v455_v24 = vld [vmem:[#allocation14 + $0x48] sm:$0xff] }
 0x289   :  { %786 = vrot.lane.b32.xlu0 %v2718_v54, %s2472_s9  ;;  %v449_v54 = vld [vmem:[#allocation14 + $0x18] sm:$0xff] }
 0x2fc   :  { %v618_v25 = vpop.xlane.xlu0 %617 }
 0x2fd   :  { %v622_v26 = vsub.f32 %v535_v19, %v618_v25 }
 0x2ff   :  { %v624_v27 = vmul.f32 1.442695, %v622_v26 }
 0x300   :  { %v621_v33 = vpop.xlane.xlu0 %620 }
 0x301   :  { %2203 = vpow2.f32 %v624_v27  ;;  %v623_v34 = vsub.f32 %v611_v22, %v621_v33  ;;  %v2090_v27 = vpack.c.bf16 %v455_v24, %v454_v23  ;;  %v1445_v23 = vld [vmem:[#allocation17 + $0x8] sm:$0xff]  ;;  %v1446_v24 = vld [vmem:[#allocation17 + $0x10] sm:$0xff] }
 0x303   :  { %v626_v35 = vmul.f32 1.442695, %v623_v34 }
 0x304   :  { %v787_v46 = vpop.permute.xlu0 %786 }
 0x305   :  { %2205 = vpow2.f32 %v626_v35  ;;  %v458_v35 = vld [vmem:[#allocation14 + $0x60] sm:$0xff] }
 0x30b   :  { %v2204_v28 = vpop.eup %2203 }
 0x30c   :  { %v628_v30 = vsel %vm615_vm2, %v2204_v28, 0.0 }
 0x30d   :  { %629 = vadd.xlane.f32.xlu1 %v628_v30  ;;  %v457_v30 = vld [vmem:[#allocation14 + $0x58] sm:$0xff] }
 0x30f   :  { %v2206_v36 = vpop.eup %2205 }
 0x310   :  { %v631_v37 = vsel %vm615_vm2, %v2206_v36, 0.0 }
 0x31e   :  { %864 = vrot.lane.b32.xlu1 %v2716_v53, %s2472_s9  ;;  %v2106_v53 = vpack.c.bf16 %v447_v49, %v446_v48 }
 0x320   :  { %2107 = vmatprep.subr.bf16.mxu0 %v2106_v53 }
 0x321   :  { %2109 = vmatpush3.bf16.msra.mxu0 %v2106_v53  ;;  %v1345_v53 = vld [vmem:[#allocation15 + $0x8] sm:$0xff] }
 0x342   :  { %632 = vadd.xlane.f32.xlu1 %v631_v37 }
 0x353   :  { %862 = vrot.lane.b32.xlu1 %v2720_v55, %s2472_s9  ;;  %v2110_v55 = vpack.c.bf16 %v449_v54, %v448_v50  ;;  %v1344_v50 = vld [vmem:[#allocation15] sm:$0xff]  ;;  %v1346_v54 = vld [vmem:[#allocation15 + $0x10] sm:$0xff] }
 0x354   :  { %v2126_v57 = vpack.c.bf16 %v1347_v56, %v1346_v54  ;;  %v1612_v56 = vld [vmem:[%s2849_s12] ss:$0 sm:$0xff] }
 0x355   :  { %2111 = vmatprep.subr.bf16.mxu0 %v2110_v55 }
 0x356   :  { %2113 = vmatpush3.bf16.msra.mxu0 %v2110_v55  ;;  %v2122_v55 = vpack.c.bf16 %v1345_v53, %v1344_v50  ;;  %v1611_v50 = vld [vmem:[%s2848_s11] ss:$0 sm:$0xff] }
 0x357   :  { %2115 = vmatprep.subr.bf16.mxu0 %v2114_v58 }
 0x35a   :  { %2117 = vmatpush3.bf16.msra.mxu0 %v2114_v58  ;;  %v1348_v58 = vld [vmem:[#allocation15 + $0x20] sm:$0xff] }
 0x35b   :  { %2119 = vmatprep.subr.bf16.mxu0 %v2118_v61  ;;  %v2130_v60 = vpack.c.bf16 %v1349_v59, %v1348_v58 }
 0x35e   :  { %2121 = vmatpush3.bf16.msra.mxu0 %v2118_v61 }
 0x39a   :  { %v630_v39 = vpop.xlane.xlu1 %629 }
 0x39b   :  { %2207 = vrcp.f32 %v630_v39  ;;  %v461_v39 = vld [vmem:[#allocation14 + $0x78] sm:$0xff] }
 0x39e   :  { %v865_v42 = vpop.permute.xlu1 %864 }
 0x3a5   :  { %v2208_v40 = vpop.eup %2207 }
 0x3a6   :  { %v635_v41 = vmul.f32 %v2208_v40, %v2204_v28  ;;  %v456_v28 = vld [vmem:[#allocation14 + $0x50] sm:$0xff] }
 0x3a7   :  { %v2094_v34 = vpack.c.bf16 %v457_v30, %v456_v28  ;;  %v1448_v28 = vld [vmem:[#allocation17 + $0x20] sm:$0xff]  ;;  %v1449_v30 = vld [vmem:[#allocation17 + $0x28] sm:$0xff] }
 0x3a8   :  { %1859 = vmatmul.mubr.msk.f32.vlgmr.msra.gmra.mrb[6].mxu1 %vm615_vm2, %v635_v41 }
 0x3a9   :  { %1862 = vmatpush3.msra.mxu1 %v2743_v31  ;;  %1863 = vmatprep.mubr.msk.f32.mxu1 %vm2471_vm0, %v2470_v52 }
 0x3aa   :  { %1866 = vmatprep.subr.mxu1 %v2470_v52 }
 0x3cf   :  { %v633_v43 = vpop.xlane.xlu1 %632 }
 0x3d0   :  { %2209 = vrcp.f32 %v633_v43 }
 0x3d3   :  { %v863_v47 = vpop.permute.xlu1 %862 }
 0x3da   :  { %v2210_v44 = vpop.eup %2209 }
 0x3db   :  { %v637_v45 = vmul.f32 %v2210_v44, %v2206_v36  ;;  %v459_v36 = vld [vmem:[#allocation14 + $0x68] sm:$0xff] }
 0x3dc   :  { %v2098_v37 = vpack.c.bf16 %v459_v36, %v458_v35  ;;  %v1452_v35 = vld [vmem:[#allocation17 + $0x40] sm:$0xff]  ;;  %v1453_v36 = vld [vmem:[#allocation17 + $0x48] sm:$0xff] }
 0x3dd   :  { %1864 = vmatmul.mubr.msk.f32.vlgmr.msra.gmra.mrb[8].mxu1 %vm615_vm2, %v637_v45 }
 0x3de   :  { %1867 = vmatpush3.xpose.msk.msra.mxu1 %vm462_vm1, %v787_v46  ;;  %1868 = vmatprep.mubr.msk.f32.mxu1 %vm2471_vm0, %v2470_v52 }
 0x3df   :  { %1871 = vmatprep.subr.mxu1 %v2470_v52 }
 0x3e1   :  { %1869 = vmatmul.mubr.msk.f32.vlgmr.msra.gmra.mrb[10].mxu1 %vm462_vm1, %v785_v38  ;;  %v460_v38 = vld [vmem:[#allocation14 + $0x70] sm:$0xff] }
 0x3e2   :  { %1872 = vmatpush3.xpose.msk.msra.mxu1 %vm462_vm1, %v865_v42  ;;  %1873 = vmatprep.mubr.msk.f32.mxu1 %vm2471_vm0, %v2470_v52  ;;  %v2102_v40 = vpack.c.bf16 %v461_v39, %v460_v38  ;;  %v1454_v38 = vld [vmem:[#allocation17 + $0x50] sm:$0xff]  ;;  %v1455_v39 = vld [vmem:[#allocation17 + $0x58] sm:$0xff] }
 0x3e3   :  { %1876 = vmatprep.subr.mxu1 %v2470_v52 }
 0x3e5   :  { %1874 = vmatmul.mubr.msk.f32.vlgmr.msra.gmra.mrb[12].mxu1 %vm462_vm1, %v863_v47 }
 0x3e6   :  { %1878 = vmatprep.mubr.msk.f32.mxu1 %vm2471_vm0, %v2470_v52 }
 0x47b   :  { %v707_v62 = vpop.f32.mrb[6].mxu1 }
 0x47c   :  { %v1860_v63 = vpop.f32.mrb[7].mxu1  ;;  %1921 = vmatprep.mubr.msk.f32.mxu0 %vm462_vm1, %v707_v62 }
 0x4b0   :  { %v780_v0 = vpop.f32.mrb[8].mxu1 }
 0x4b1   :  { %v1865_v1 = vpop.f32.mrb[9].mxu1  ;;  %1922 = vmatmul.mubr.msk.f32.vlgmr.msra.gmra.mrb[4].mxu0 %vm462_vm1, %v780_v0 }
 0x4b4   :  { %v858_v2 = vpop.f32.mrb[10].mxu1 }
 0x4b5   :  { %v1870_v3 = vpop.f32.mrb[11].mxu1  ;;  %v940_v4 = vsel %vm615_vm2, %v858_v2, -inf }
 0x4b6   :  { %941 = vmax.xlane.f32.xlu0 %v940_v4 }
 0x4b8   :  { %v936_v5 = vpop.f32.mrb[12].mxu1 }
 0x4b9   :  { %v1875_v6 = vpop.f32.mrb[13].mxu1  ;;  %v943_v7 = vsel %vm615_vm2, %v936_v5, -inf }
 0x4ba   :  { %944 = vmax.xlane.f32.xlu1 %v943_v7  ;;  %v1350_v7 = vld [vmem:[#allocation15 + $0x30] sm:$0xff] }
 0x4cb   :  { %1040 = vrot.lane.b32.xlu1 %v2743_v31, %s2472_s9 }
 0x543   :  { %v942_v8 = vpop.xlane.xlu0 %941 }
 0x544   :  { %v946_v9 = vsub.f32 %v858_v2, %v942_v8  ;;  %v1351_v8 = vld [vmem:[#allocation15 + $0x38] sm:$0xff] }
 0x546   :  { %v948_v10 = vmul.f32 1.442695, %v946_v9  ;;  %v2134_v9 = vpack.c.bf16 %v1351_v8, %v1350_v7 }
 0x547   :  { %v945_v11 = vpop.xlane.xlu1 %944 }
 0x548   :  { %2211 = vpow2.f32 %v948_v10  ;;  %v947_v12 = vsub.f32 %v936_v5, %v945_v11  ;;  %v1352_v10 = vld [vmem:[#allocation15 + $0x40] sm:$0xff]  ;;  %v1353_v11 = vld [vmem:[#allocation15 + $0x48] sm:$0xff] }
 0x54a   :  { %v950_v13 = vmul.f32 1.442695, %v947_v12  ;;  %v1354_v12 = vld [vmem:[#allocation15 + $0x50] sm:$0xff] }
 0x54b   :  { %v1041_v31 = vpop.permute.xlu1 %1040 }
 0x54c   :  { %2213 = vpow2.f32 %v950_v13  ;;  %v2138_v13 = vpack.c.bf16 %v1353_v11, %v1352_v10 }
 0x552   :  { %v2212_v14 = vpop.eup %2211 }
 0x553   :  { %v952_v15 = vsel %vm615_vm2, %v2212_v14, 0.0 }
 0x554   :  { %953 = vadd.xlane.f32.xlu0 %v952_v15 }
 0x556   :  { %v2214_v16 = vpop.eup %2213 }
 0x557   :  { %v955_v17 = vsel %vm615_vm2, %v2214_v16, 0.0 }
 0x558   :  { %956 = vadd.xlane.f32.xlu0 %v955_v17  ;;  %v1357_v17 = vld [vmem:[#allocation15 + $0x68] sm:$0xff] }
 0x56e   :  { %963 = vrot.lane.b32.xlu0 %v2745_v32, %s2472_s9 }
 0x584   :  { %v1923_v18 = vpop.f32.mrb[4].mxu0 }
 0x585   :  { %v1269_v19 = vpop.f32.mrb[5].mxu0 }
 0x5e1   :  { %v954_v20 = vpop.xlane.xlu0 %953 }
 0x5e2   :  { %2215 = vrcp.f32 %v954_v20  ;;  %v1359_v20 = vld [vmem:[#allocation15 + $0x78] sm:$0xff] }
 0x5e5   :  { %v957_v21 = vpop.xlane.xlu0 %956 }
 0x5e6   :  { %2217 = vrcp.f32 %v957_v21 }
 0x5e9   :  { %v964_v22 = vpop.permute.xlu0 %963 }
 0x5ea   :  { %1877 = vmatpush3.msra.mxu1 %v964_v22  ;;  %v1444_v22 = vld [vmem:[#allocation17] sm:$0xff] }
 0x5eb   :  { %1881 = vmatprep.subr.mxu1 %v2470_v52 }
 0x5ec   :  { %v2216_v25 = vpop.eup %2215 }
 0x5ed   :  { %v959_v26 = vmul.f32 %v2216_v25, %v2212_v14  ;;  %v1355_v14 = vld [vmem:[#allocation15 + $0x58] sm:$0xff]  ;;  %v2154_v25 = vpack.c.bf16 %v1445_v23, %v1444_v22 }
 0x5ee   :  { %v2142_v15 = vpack.c.bf16 %v1355_v14, %v1354_v12 }
 0x5ef   :  { %1879 = vmatmul.mubr.msk.f32.vlgmr.msra.gmra.mrb[14].mxu1 %vm615_vm2, %v959_v26  ;;  %v1447_v26 = vld [vmem:[#allocation17 + $0x18] sm:$0xff]  ;;  %2155 = vmatprep.subr.bf16.mxu0 %v2154_v25 }
 0x5f0   :  { %v2218_v32 = vpop.eup %2217  ;;  %1882 = vmatpush3.msra.mxu1 %v1041_v31  ;;  %1883 = vmatprep.mubr.msk.f32.mxu1 %vm2471_vm0, %v2470_v52  ;;  %v2162_v31 = vpack.c.bf16 %v1449_v30, %v1448_v28 }
 0x5f1   :  { %v961_v33 = vmul.f32 %v2218_v32, %v2214_v16  ;;  %2091 = vmatprep.subr.bf16.mxu1 %v2090_v27  ;;  %v1356_v16 = vld [vmem:[#allocation15 + $0x60] sm:$0xff]  ;;  %2157 = vmatpush3.bf16.msra.mxu0 %v2154_v25  ;;  %v1450_v32 = vld [vmem:[#allocation17 + $0x30] sm:$0xff] }
 0x5f3   :  { %1884 = vmatmul.mubr.msk.f32.vlgmr.msra.gmra.mrb[16].mxu1 %vm615_vm2, %v961_v33  ;;  %v1451_v33 = vld [vmem:[#allocation17 + $0x38] sm:$0xff] }
 0x5f4   :  { %2093 = vmatpush3.bf16.msra.mxu1 %v2090_v27  ;;  %v2158_v27 = vpack.c.bf16 %v1447_v26, %v1446_v24 }
 0x5f5   :  { %2095 = vmatprep.subr.bf16.mxu1 %v2094_v34 }
 0x5f6   :  { %2159 = vmatprep.subr.bf16.mxu0 %v2158_v27 }
 0x5f7   :  { %2161 = vmatpush3.bf16.msra.mxu0 %v2158_v27 }
 0x5f8   :  { %2097 = vmatpush3.bf16.msra.mxu1 %v2094_v34  ;;  %2163 = vmatprep.subr.bf16.mxu0 %v2162_v31  ;;  %v2166_v34 = vpack.c.bf16 %v1451_v33, %v1450_v32 }
 0x5f9   :  { %2099 = vmatprep.subr.bf16.mxu1 %v2098_v37 }
 0x5fb   :  { %2165 = vmatpush3.bf16.msra.mxu0 %v2162_v31 }
 0x5fc   :  { %2101 = vmatpush3.bf16.msra.mxu1 %v2098_v37  ;;  %2167 = vmatprep.subr.bf16.mxu0 %v2166_v34  ;;  %v2170_v37 = vpack.c.bf16 %v1453_v36, %v1452_v35 }
 0x5fd   :  { %2103 = vmatprep.subr.bf16.mxu1 %v2102_v40 }
 0x5ff   :  { %2169 = vmatpush3.bf16.msra.mxu0 %v2166_v34 }
 0x600   :  { %2105 = vmatpush3.bf16.msra.mxu1 %v2102_v40  ;;  %2171 = vmatprep.subr.bf16.mxu0 %v2170_v37  ;;  %v2174_v40 = vpack.c.bf16 %v1455_v39, %v1454_v38 }
 0x601   :  { %2123 = vmatprep.subr.bf16.mxu1 %v2122_v55 }
 0x603   :  { %2173 = vmatpush3.bf16.msra.mxu0 %v2170_v37 }
 0x604   :  { %2175 = vmatprep.subr.bf16.mxu0 %v2174_v40 }
 0x607   :  { %2177 = vmatpush3.bf16.msra.mxu0 %v2174_v40 }
 0x6c2   :  { %v1035_v41 = vpop.f32.mrb[14].mxu1 }
 0x6c3   :  { %v1880_v52 = vpop.f32.mrb[15].mxu1  ;;  %1902 = vmatprep.mubr.msk.f32.mxu1 %vm462_vm1, %v1035_v41  ;;  %v1456_v41 = vld [vmem:[#allocation17 + $0x60] sm:$0xff] }
 0x6c4   :  { %v1457_v52 = vld [vmem:[#allocation17 + $0x68] sm:$0xff] }
 0x6c6   :  { %v1112_v42 = vpop.f32.mrb[16].mxu1 }
 0x6c7   :  { %v1885_v43 = vpop.f32.mrb[17].mxu1  ;;  %1903 = vmatmul.mubr.msk.f32.vlgmr.msra.gmra.mrb[18].mxu1 %vm462_vm1, %v1112_v42  ;;  %v2178_v42 = vpack.c.bf16 %v1457_v52, %v1456_v41 }
 0x6c8   :  { %2125 = vmatpush3.bf16.msra.mxu1 %v2122_v55 }
 0x6c9   :  { %2127 = vmatprep.subr.bf16.mxu1 %v2126_v57  ;;  %2179 = vmatprep.subr.bf16.mxu0 %v2178_v42 }
 0x6ca   :  { %2181 = vmatpush3.bf16.msra.mxu0 %v2178_v42 }
 0x6cc   :  { %2129 = vmatpush3.bf16.msra.mxu1 %v2126_v57 }
 0x6cd   :  { %2131 = vmatprep.subr.bf16.mxu1 %v2130_v60 }
 0x6d0   :  { %2133 = vmatpush3.bf16.msra.mxu1 %v2130_v60 }
 0x6d1   :  { %2135 = vmatprep.subr.bf16.mxu1 %v2134_v9 }
 0x6d4   :  { %2137 = vmatpush3.bf16.msra.mxu1 %v2134_v9 }
 0x6d5   :  { %2139 = vmatprep.subr.bf16.mxu1 %v2138_v13 }
 0x6d8   :  { %2141 = vmatpush3.bf16.msra.mxu1 %v2138_v13 }
 0x6d9   :  { %2143 = vmatprep.subr.bf16.mxu1 %v2142_v15 }
 0x6dc   :  { %2145 = vmatpush3.bf16.msra.mxu1 %v2142_v15 }
 0x79a   :  { %v1904_v44 = vpop.f32.mrb[18].mxu1 }
 0x79b   :  { %v1275_v45 = vadd.f32 %v1923_v18, %v1904_v44  ;;  %v1188_v46 = vpop.f32.mrb[19].mxu1  ;;  %v2146_v18 = vpack.c.bf16 %v1357_v17, %v1356_v16 }
 0x79c   :  { %v1270_v47 = vadd.f32 %v1269_v19, %v1188_v46  ;;  %v1358_v19 = vld [vmem:[#allocation15 + $0x70] sm:$0xff] }
 0x79d   :  { %v1301_v48 = vadd.f32 %v1275_v45, %v2710_v51  ;;  %v1295_v51 = vlaneseq  ;;  %2147 = vmatprep.subr.bf16.mxu1 %v2146_v18  ;;  %v2150_v21 = vpack.c.bf16 %v1359_v20, %v1358_v19 }
 0x79e   :  { %v1300_v49 = vadd.f32 %v1270_v47, %v2707_v29  ;;  %2149 = vmatpush3.bf16.msra.mxu1 %v2146_v18 }
 0x79f   :  { %1304 = vadd.xlane.f32.xlu0 %v1301_v48  ;;  %v2789_v61 = vand.u32 127, %v1295_v51  ;;  %2151 = vmatprep.subr.bf16.mxu1 %v2150_v21  ;;  %v1458_v51 = vld [vmem:[#allocation17 + $0x70] sm:$0xff] }
 0x7a0   :  { %1302 = vadd.xlane.f32.xlu1 %v1300_v49 }
 0x7a1   :  { %vm1297_vm3 = vcmp.lt.s32.totalorder %v2789_v61, 32 }
 0x7a2   :  { %2153 = vmatpush3.bf16.msra.mxu1 %v2150_v21 }
 0x82c   :  { %v1305_v29 = vpop.xlane.xlu0 %1304 }
 0x82d   :  { %v1307_v62 = vmul.f32 0.03125, %v1305_v29  ;;  %v1303_v63 = vpop.xlane.xlu1 %1302  ;;  %v1459_v29 = vld [vmem:[#allocation17 + $0x78] sm:$0xff] }
 0x82e   :  { %v1306_v0 = vmul.f32 0.03125, %v1303_v63  ;;  %v1613_v63 = vld [vmem:[%s2845_s8] ss:$0 sm:$0xff]  ;;  %s2473_s8 = smov [#allocation18]  }
 0x82f   :  { %v1309_v1 = vsub.f32 %v1301_v48, %v1307_v62  ;;  %v2182_v62 = vpack.c.bf16 %v1459_v29, %v1458_v51 }
 0x830   :  { %v1308_v2 = vsub.f32 %v1300_v49, %v1306_v0 }
 0x831   :  { %v2794_v3 = vsel %vm1297_vm3, %v1309_v1, 0.0  ;;  %2183 = vmatprep.subr.bf16.mxu0 %v2182_v62 }
 0x832   :  { %v1315_v4 = vmul.f32 %v2794_v3, %v2794_v3  ;;  %v2800_v5 = vsel %vm1297_vm3, %v1308_v2, 0.0  ;;  %2185 = vmatpush3.bf16.msra.mxu0 %v2182_v62 }
 0x833   :  { %v1314_v6 = vmul.f32 %v2800_v5, %v2800_v5 }
 0x834   :  { %1318 = vadd.xlane.f32.xlu1 %v1315_v4 }
 0x835   :  { %1316 = vadd.xlane.f32.xlu0 %v1314_v6  ;;  %v1614_v6 = vld [vmem:[%s2847_s10] ss:$0 sm:$0xff]  ;;  %s1579_s10 = sshll.u32 %s2473_s8, 4  ;;  %s1580_s10 = int_to_ptr.vmem [resolvable:$true] %s1579_s10 }
 0x836   :  { %s2425_s0 = scalar_lea.vmem %s1580_s10, 256  ;;  %p2430_p3 = scmp.lt.s32.totalorder %s1580_s10, %s1580_s10 }
 0x837   :  { %p2426_p2 = scmp.ne.s32.totalorder %s1580_s10, %s2425_s0  ;;  %p2431_p4 = scmp.lt.s32.totalorder %s2425_s0, %s2425_s0 }
 0x839   :  { %p2432_p5 = por %p2431_p4, %p2430_p3 }
 0x83b   :  { %p2433_p6 = pnand %p2432_p5, %p2426_p2 }
 0x8c1   :  { %v1319_v43 = vpop.xlane.xlu1 %1318 }
 0x8c2   :  { %v1321_v44 = vmul.f32 0.03125, %v1319_v43  ;;  %v1317_v45 = vpop.xlane.xlu0 %1316 }
 0x8c3   :  { %v1320_v46 = vmul.f32 0.03125, %v1317_v45 }
 0x8c4   :  { %v1323_v47 = vadd.f32 1e-05, %v1321_v44 }
 0x8c5   :  { %v1322_v48 = vadd.f32 1e-05, %v1320_v46 }
 0x8c6   :  { %2219 = vrsqrt.f32 %v1323_v47 }
 0x8c7   :  { %2221 = vrsqrt.f32 %v1322_v48 }
 0x8d0   :  { %v2220_v49 = vpop.eup %2219 }
 0x8d1   :  { %v2222_v53 = vpop.eup %2221  ;;  %v1327_v54 = vmul.f32 %v2220_v49, %v2794_v3 }
 0x8d2   :  { %v1326_v55 = vmul.f32 %v2222_v53, %v2800_v5 }
 0x8d3   :  { %v1335_v57 = vmul.f32 %v1611_v50, %v1327_v54 }
 0x8d4   :  { %v1334_v58 = vmul.f32 %v1611_v50, %v1326_v55 }
 0x8d5   :  { %v1343_v60 = vadd.f32 %v1612_v56, %v1335_v57 }
 0x8d6   :  { %v1342_v59 = vadd.f32 %v1612_v56, %v1334_v58 }
 0x8d8   :  { %1956 = vmatprep.mubr.f32.mxu1 %v1342_v59 }
 0x8d9   :  { %1957 = vmatmul.mubr.f32.vlgmr.msra.gmra.mrb[20].mxu1 %v1343_v60 }
 0x9ac   :  { %v1958_v0 = vpop.f32.mrb[20].mxu1 }
 0x9ad   :  { %v1439_v1 = vadd.f32 %v1958_v0, %v1613_v63  ;;  %v1433_v2 = vpop.f32.mrb[21].mxu1 }
 0x9ae   :  { %v1434_v3 = vadd.f32 %v1613_v63, %v1433_v2 }
 0x9af   :  { %v1443_v5 = vmax.f32 %v1439_v1, 0.0 }
 0x9b0   :  { %v1442_v4 = vmax.f32 %v1434_v3, 0.0 }
 0x9b2   :  { %1991 = vmatprep.mubr.f32.mxu0 %v1442_v4 }
 0x9b3   :  { %1992 = vmatmul.mubr.f32.vlgmr.msra.gmra.mrb[6].mxu0 %v1443_v5 }
 0xa86   :  { %v1993_v7 = vpop.f32.mrb[6].mxu0 }
 0xa87   :  { %v1539_v8 = vadd.f32 %v1993_v7, %v1614_v6  ;;  %v1533_v9 = vpop.f32.mrb[7].mxu0 }
 0xa88   :  { %v1534_v10 = vadd.f32 %v1614_v6, %v1533_v9 }
 0xa89   :  { %v1543_v11 = vadd.f32 %v1539_v8, %v1343_v60 }
 0xa8a   :  { %v1542_v12 = vadd.f32 %v1534_v10, %v1342_v59 }
 0xa8b   :  { %1546 = vadd.xlane.f32.xlu1 %v1543_v11 }
 0xa8c   :  { %1544 = vadd.xlane.f32.xlu0 %v1542_v12 }
 0xb18   :  { %v1547_v13 = vpop.xlane.xlu1 %1546 }
 0xb19   :  { %v1549_v14 = vmul.f32 0.03125, %v1547_v13  ;;  %v1545_v15 = vpop.xlane.xlu0 %1544 }
 0xb1a   :  { %v1548_v16 = vmul.f32 0.03125, %v1545_v15 }
 0xb1b   :  { %v1551_v17 = vsub.f32 %v1543_v11, %v1549_v14 }
 0xb1c   :  { %v1550_v18 = vsub.f32 %v1542_v12, %v1548_v16 }
 0xb1d   :  { %v1553_v19 = vsel %vm1297_vm3, %v1551_v17, 0.0 }
 0xb1e   :  { %v1555_v20 = vmul.f32 %v1553_v19, %v1553_v19  ;;  %v1552_v21 = vsel %vm1297_vm3, %v1550_v18, 0.0 }
 0xb1f   :  { %v1554_v22 = vmul.f32 %v1552_v21, %v1552_v21 }
 0xb20   :  { %1558 = vadd.xlane.f32.xlu1 %v1555_v20 }
 0xb21   :  { %1556 = vadd.xlane.f32.xlu0 %v1554_v22 }
 0xbad   :  { %v1559_v23 = vpop.xlane.xlu1 %1558 }
 0xbae   :  { %v1561_v24 = vmul.f32 0.03125, %v1559_v23  ;;  %v1557_v25 = vpop.xlane.xlu0 %1556 }
 0xbaf   :  { %v1560_v26 = vmul.f32 0.03125, %v1557_v25 }
 0xbb0   :  { %v1563_v27 = vadd.f32 1e-05, %v1561_v24 }
 0xbb1   :  { %v1562_v28 = vadd.f32 1e-05, %v1560_v26 }
 0xbb2   :  { %2223 = vrsqrt.f32 %v1563_v27 }
 0xbb3   :  { %2225 = vrsqrt.f32 %v1562_v28 }
 0xbbc   :  { %v2224_v30 = vpop.eup %2223 }
 0xbbd   :  { %v2226_v31 = vpop.eup %2225  ;;  %v1567_v32 = vmul.f32 %v2224_v30, %v1553_v19 }
 0xbbe   :  { %v1566_v33 = vmul.f32 %v2226_v31, %v1552_v21 }
 0xbbf   :  { %v1569_v34 = vmul.f32 %v1611_v50, %v1567_v32 }
 0xbc0   :  { %v1568_v61 = vmul.f32 %v1611_v50, %v1566_v33 }
 0xbc1   :  { %v1571_v35 = vadd.f32 %v1612_v56, %v1569_v34 }
 0xbc2   :  { %v1570_v36 = vadd.f32 %v1612_v56, %v1568_v61 }
 0xbc3   :  { %1573 = vst [vmem:[#allocation18 + $0x8] sm:$0xff] %v1571_v35 }
 0xbc4   :  { %1572 = vst [vmem:[#allocation18] sm:$0xff] %v1570_v36 }
 0xbc5   :  { %2436 = shalt.err (!%p2433_p6)
}
 0xbc6   :  { %s2437_s4 = scalar_lea.hbm %s2850_s13, 256 }
 0xbc7   :  { %p2438_p7 = scmp.ne.s32.totalorder %s2850_s13, %s2437_s4  ;;  %p2441_p8 = scmp.lt.u32.totalorder %s2437_s4, %s2850_s13 }
 0xbc9   :  { %p2443_p9 = pnand %p2441_p8, %p2438_p7 }
 0xbcb   :  { %2446 = shalt.err (!%p2443_p9)
}
 0xbcc   :  { %1585 = dma.vmem_to_hbm [thread:$0]  %s1580_s10, 256, %s2850_s13, [#allocation5], %s2461_s20, %s2461_s20, %s2462_s21  }
 0xbcd   :  { %2457 = dma.done.wait [#allocation5], 256  }
 0xbce   :  { %2458 = vsyncadd [#allocation5], 4294967040 }
 0xbcf   :  { %1589 = vsyncpa [#allocation4], 1 }
 0xbd0   :  { %1590 = vsyncpa [#allocation7], 1 }
 0xbd1   :  { %1591 = vsyncpa [#allocation10], 1 }
 0xbd2   :  { %1592 = vsyncpa [#allocation13], 1 }
 0xbd3   :  { %1593 = vsyncpa [#allocation16], 1 }
 0xbd4   :  { %1594 = vsyncpa [#allocation5], 1 }

// kernel: tpu_custom_call.1
= control target key start
LH: loop header
LB: loop body
LE: loop exit
PB: predicated region body
PF: predicated region fallthrough
CT: control target
= control target key end

     0   :  { %18 = vsyncpa [#allocation4], 0  ;;  %s2837_s0 = inlined_call_operand.hbm [shape: f32[16,128], index: 0, kind: input, shape index: {}]   ;;  %s2838_s1 = inlined_call_operand.hbm [shape: f32[16,128], index: 1, kind: input, shape index: {}]   ;;  %s2839_s2 = inlined_call_operand.hbm [shape: f32[16,128], index: 2, kind: input, shape index: {}]   ;;  %s2840_s3 = inlined_call_operand.hbm [shape: f32[1,128,128], index: 3, kind: input, shape index: {}]   ;;  %s2841_s4 = inlined_call_operand.hbm [shape: f32[1,128,128], index: 4, kind: input, shape index: {}]   ;;  %s2842_s5 = inlined_call_operand.hbm [shape: f32[1,128,128], index: 5, kind: input, shape index: {}]   ;;  %s2843_s6 = inlined_call_operand.hbm [shape: f32[1,128,128], index: 6, kind: input, shape index: {}]   ;;  %s2844_s7 = inlined_call_operand.hbm [shape: f32[128,128], index: 7, kind: input, shape index: {}]   ;;  %s2845_s8 = inlined_call_operand.vmem [shape: f32[1,128], index: 8, kind: input, shape index: {}]   ;;  %s2846_s9 = inlined_call_operand.hbm [shape: f32[128,128], index: 9, kind: input, shape index: {}]   ;;  %s2847_s10 = inlined_call_operand.vmem [shape: f32[1,128], index: 10, kind: input, shape index: {}]   ;;  %s2848_s11 = inlined_call_operand.vmem [shape: f32[1,128], index: 11, kind: input, shape index: {}]   ;;  %s2849_s12 = inlined_call_operand.vmem [shape: f32[1,128], index: 12, kind: input, shape index: {}]   ;;  %s2850_s13 = inlined_call_operand.hbm [shape: f32[16,128], index: 13, kind: output, shape index: {}]  }
   0x1   :  { %19 = vsyncpa [#allocation7], 0 }
   0x2   :  { %20 = vsyncpa [#allocation10], 0 }
   0x3   :  { %21 = vsyncpa [#allocation13], 0 }
   0x4   :  { %22 = vsyncpa [#allocation16], 0 }
   0x5   :  { %23 = vsyncpa [#allocation5], 0  ;;  %s2459_s25 = smov [#allocation6]   ;;  %s2460_s27 = smov [#allocation9]  }
   0x6   :  { %s41_s26 = sshll.u32 %s2459_s25, 4  ;;  %s65_s28 = sshll.u32 %s2460_s27, 4  ;;  %s42_s26 = int_to_ptr.vmem [resolvable:$true] %s41_s26  ;;  %s2544_s28 = int_to_ptr.vmem [resolvable:$true] %s65_s28 }
   0x7   :  { %s2227_s14 = scalar_lea.hbm %s2838_s1, 256 }
   0x8   :  { %p2228_p0 = scmp.ne.s32.totalorder %s2838_s1, %s2227_s14  ;;  %p2231_p1 = scmp.lt.u32.totalorder %s2227_s14, %s2838_s1 }
   0xa   :  { %p2233_p2 = pnand %p2231_p1, %p2228_p0 }
   0xc   :  { %2236 = shalt.err (!%p2233_p2)
}
   0xd   :  { %s2237_s19 = scalar_lea.vmem %s42_s26, 256  ;;  %p2242_p4 = scmp.lt.s32.totalorder %s42_s26, %s42_s26 }
   0xe   :  { %p2238_p3 = scmp.ne.s32.totalorder %s42_s26, %s2237_s19  ;;  %p2243_p5 = scmp.lt.s32.totalorder %s2237_s19, %s2237_s19 }
  0x10   :  { %p2244_p6 = por %p2243_p5, %p2242_p4 }
  0x12   :  { %p2245_p7 = pnand %p2244_p6, %p2238_p3 }
  0x14   :  { %2248 = shalt.err (!%p2245_p7)
}
  0x15   :  { %s2461_s20 = smov 128   ;;  %s2462_s21 = smov 8  }
  0x16   :  { %47 = dma.hbm_to_vmem [thread:$0]  %s2838_s1, 256, %s42_s26, [#allocation7], %s2461_s20, %s2461_s20, %s2462_s21  }
  0x17   :  { %s2249_s27 = scalar_lea.hbm %s2840_s3, 2048 }
  0x18   :  { %p2250_p8 = scmp.ne.s32.totalorder %s2840_s3, %s2249_s27  ;;  %p2253_p9 = scmp.lt.u32.totalorder %s2249_s27, %s2840_s3 }
  0x1a   :  { %p2255_p10 = pnand %p2253_p9, %p2250_p8 }
  0x1c   :  { %2258 = shalt.err (!%p2255_p10)
}
  0x1d   :  { %s2259_s16 = scalar_lea.vmem %s2544_s28, 2048  ;;  %p2264_p12 = scmp.lt.s32.totalorder %s2544_s28, %s2544_s28 }
  0x1e   :  { %p2260_p11 = scmp.ne.s32.totalorder %s2544_s28, %s2259_s16  ;;  %p2265_p13 = scmp.lt.s32.totalorder %s2259_s16, %s2259_s16 }
  0x20   :  { %p2266_p0 = por %p2265_p13, %p2264_p12 }
  0x22   :  { %p2267_p1 = pnand %p2266_p0, %p2260_p11 }
  0x24   :  { %2270 = shalt.err (!%p2267_p1)
}
  0x25   :  { %71 = dma.hbm_to_vmem [thread:$0]  %s2840_s3, 2048, %s2544_s28, [#allocation10], %s2461_s20, %s2461_s20, %s2462_s21  }
  0x26   :  { %s2463_s17 = smov [#allocation12]   ;;  %s2464_s19 = smov [#allocation15]  }
  0x27   :  { %s89_s18 = sshll.u32 %s2463_s17, 4  ;;  %s113_s22 = sshll.u32 %s2464_s19, 4  ;;  %s90_s18 = int_to_ptr.vmem [resolvable:$true] %s89_s18  ;;  %s2581_s22 = int_to_ptr.vmem [resolvable:$true] %s113_s22 }
  0x28   :  { %s2271_s25 = scalar_lea.hbm %s2842_s5, 2048 }
  0x29   :  { %p2272_p2 = scmp.ne.s32.totalorder %s2842_s5, %s2271_s25  ;;  %p2275_p3 = scmp.lt.u32.totalorder %s2271_s25, %s2842_s5 }
  0x2b   :  { %p2277_p4 = pnand %p2275_p3, %p2272_p2 }
  0x2d   :  { %2280 = shalt.err (!%p2277_p4)
}
  0x2e   :  { %s2281_s3 = scalar_lea.vmem %s90_s18, 2048  ;;  %p2286_p6 = scmp.lt.s32.totalorder %s90_s18, %s90_s18 }
  0x2f   :  { %p2282_p5 = scmp.ne.s32.totalorder %s90_s18, %s2281_s3  ;;  %p2287_p7 = scmp.lt.s32.totalorder %s2281_s3, %s2281_s3 }
  0x31   :  { %p2288_p8 = por %p2287_p7, %p2286_p6 }
  0x33   :  { %p2289_p9 = pnand %p2288_p8, %p2282_p5 }
  0x35   :  { %2292 = shalt.err (!%p2289_p9)
}
  0x36   :  { %95 = dma.hbm_to_vmem [thread:$0]  %s2842_s5, 2048, %s90_s18, [#allocation13], %s2461_s20, %s2461_s20, %s2462_s21  }
  0x37   :  { %s2293_s26 = scalar_lea.hbm %s2844_s7, 2048 }
  0x38   :  { %p2294_p10 = scmp.ne.s32.totalorder %s2844_s7, %s2293_s26  ;;  %p2297_p11 = scmp.lt.u32.totalorder %s2293_s26, %s2844_s7 }
  0x3a   :  { %p2299_p12 = pnand %p2297_p11, %p2294_p10 }
  0x3c   :  { %2302 = shalt.err (!%p2299_p12)
}
  0x3d   :  { %s2303_s25 = scalar_lea.vmem %s2581_s22, 2048  ;;  %p2308_p0 = scmp.lt.s32.totalorder %s2581_s22, %s2581_s22 }
  0x3e   :  { %p2304_p13 = scmp.ne.s32.totalorder %s2581_s22, %s2303_s25  ;;  %p2309_p1 = scmp.lt.s32.totalorder %s2303_s25, %s2303_s25 }
  0x40   :  { %p2310_p2 = por %p2309_p1, %p2308_p0 }
  0x42   :  { %p2311_p3 = pnand %p2310_p2, %p2304_p13 }
  0x44   :  { %2314 = shalt.err (!%p2311_p3)
}
  0x45   :  { %119 = dma.hbm_to_vmem [thread:$0]  %s2844_s7, 2048, %s2581_s22, [#allocation16], %s2461_s20, %s2461_s20, %s2462_s21  }
  0x46   :  { %s2465_s27 = smov [#allocation3]   ;;  %s2466_s30 = smov [#allocation8]  }
  0x47   :  { %s29_s29 = sshll.u32 %s2465_s27, 4  ;;  %s53_s14 = sshll.u32 %s2466_s30, 4  ;;  %s30_s29 = int_to_ptr.vmem [resolvable:$true] %s29_s29  ;;  %s2618_s14 = int_to_ptr.vmem [resolvable:$true] %s53_s14 }
  0x48   :  { %s2315_s15 = scalar_lea.hbm %s2837_s0, 256 }
  0x49   :  { %p2316_p4 = scmp.ne.s32.totalorder %s2837_s0, %s2315_s15  ;;  %p2319_p5 = scmp.lt.u32.totalorder %s2315_s15, %s2837_s0 }
  0x4b   :  { %p2321_p6 = pnand %p2319_p5, %p2316_p4 }
  0x4d   :  { %2324 = shalt.err (!%p2321_p6)
}
  0x4e   :  { %s2325_s7 = scalar_lea.vmem %s30_s29, 256  ;;  %p2330_p8 = scmp.lt.s32.totalorder %s30_s29, %s30_s29 }
  0x4f   :  { %p2326_p7 = scmp.ne.s32.totalorder %s30_s29, %s2325_s7  ;;  %p2331_p9 = scmp.lt.s32.totalorder %s2325_s7, %s2325_s7 }
  0x51   :  { %p2332_p10 = por %p2331_p9, %p2330_p8 }
  0x53   :  { %p2333_p11 = pnand %p2332_p10, %p2326_p7 }
  0x55   :  { %2336 = shalt.err (!%p2333_p11)
}
  0x56   :  { %35 = dma.hbm_to_vmem [thread:$0]  %s2837_s0, 256, %s30_s29, [#allocation4], %s2461_s20, %s2461_s20, %s2462_s21  }
  0x57   :  { %s2337_s25 = scalar_lea.hbm %s2839_s2, 256 }
  0x58   :  { %p2338_p12 = scmp.ne.s32.totalorder %s2839_s2, %s2337_s25  ;;  %p2341_p13 = scmp.lt.u32.totalorder %s2337_s25, %s2839_s2 }
  0x5a   :  { %p2343_p0 = pnand %p2341_p13, %p2338_p12 }
  0x5c   :  { %2346 = shalt.err (!%p2343_p0)
}
  0x5d   :  { %s2347_s3 = scalar_lea.vmem %s2618_s14, 256  ;;  %p2352_p2 = scmp.lt.s32.totalorder %s2618_s14, %s2618_s14 }
  0x5e   :  { %p2348_p1 = scmp.ne.s32.totalorder %s2618_s14, %s2347_s3  ;;  %p2353_p3 = scmp.lt.s32.totalorder %s2347_s3, %s2347_s3 }
  0x60   :  { %p2354_p4 = por %p2353_p3, %p2352_p2 }
  0x62   :  { %p2355_p5 = pnand %p2354_p4, %p2348_p1 }
  0x64   :  { %2358 = shalt.err (!%p2355_p5)
}
  0x65   :  { %59 = dma.hbm_to_vmem [thread:$0]  %s2839_s2, 256, %s2618_s14, [#allocation7], %s2461_s20, %s2461_s20, %s2462_s21  }
  0x66   :  { %s2467_s28 = smov [#allocation11]   ;;  %s2468_s16 = smov [#allocation14]  }
  0x67   :  { %s77_s15 = sshll.u32 %s2467_s28, 4  ;;  %s101_s1 = sshll.u32 %s2468_s16, 4  ;;  %s78_s15 = int_to_ptr.vmem [resolvable:$true] %s77_s15  ;;  %s2655_s1 = int_to_ptr.vmem [resolvable:$true] %s101_s1 }
  0x68   :  { %s2359_s7 = scalar_lea.hbm %s2841_s4, 2048 }
  0x69   :  { %p2360_p6 = scmp.ne.s32.totalorder %s2841_s4, %s2359_s7  ;;  %p2363_p7 = scmp.lt.u32.totalorder %s2359_s7, %s2841_s4 }
  0x6b   :  { %p2365_p8 = pnand %p2363_p7, %p2360_p6 }
  0x6d   :  { %2368 = shalt.err (!%p2365_p8)
}
  0x6e   :  { %s2369_s2 = scalar_lea.vmem %s78_s15, 2048  ;;  %p2374_p10 = scmp.lt.s32.totalorder %s78_s15, %s78_s15 }
  0x6f   :  { %p2370_p9 = scmp.ne.s32.totalorder %s78_s15, %s2369_s2  ;;  %p2375_p11 = scmp.lt.s32.totalorder %s2369_s2, %s2369_s2 }
  0x71   :  { %p2376_p12 = por %p2375_p11, %p2374_p10 }
  0x73   :  { %p2377_p13 = pnand %p2376_p12, %p2370_p9 }
  0x75   :  { %2380 = shalt.err (!%p2377_p13)
}
  0x76   :  { %83 = dma.hbm_to_vmem [thread:$0]  %s2841_s4, 2048, %s78_s15, [#allocation10], %s2461_s20, %s2461_s20, %s2462_s21  }
  0x77   :  { %s2381_s27 = scalar_lea.hbm %s2843_s6, 2048 }
  0x78   :  { %p2382_p0 = scmp.ne.s32.totalorder %s2843_s6, %s2381_s27  ;;  %p2385_p1 = scmp.lt.u32.totalorder %s2381_s27, %s2843_s6 }
  0x7a   :  { %p2387_p2 = pnand %p2385_p1, %p2382_p0 }
  0x7c   :  { %2390 = shalt.err (!%p2387_p2)
}
  0x7d   :  { %s2391_s28 = scalar_lea.vmem %s2655_s1, 2048  ;;  %p2396_p4 = scmp.lt.s32.totalorder %s2655_s1, %s2655_s1 }
  0x7e   :  { %p2392_p3 = scmp.ne.s32.totalorder %s2655_s1, %s2391_s28  ;;  %p2397_p5 = scmp.lt.s32.totalorder %s2391_s28, %s2391_s28 }
  0x80   :  { %p2398_p6 = por %p2397_p5, %p2396_p4 }
  0x82   :  { %p2399_p7 = pnand %p2398_p6, %p2392_p3 }
  0x84   :  { %2402 = shalt.err (!%p2399_p7)
}
  0x85   :  { %107 = dma.hbm_to_vmem [thread:$0]  %s2843_s6, 2048, %s2655_s1, [#allocation13], %s2461_s20, %s2461_s20, %s2462_s21  }
  0x86   :  { %s2469_s16 = smov [#allocation17]   ;;  %s2403_s22 = scalar_lea.hbm %s2846_s9, 2048 }
  0x87   :  { %s127_s26 = sshll.u32 %s2469_s16, 4  ;;  %p2404_p8 = scmp.ne.s32.totalorder %s2846_s9, %s2403_s22  ;;  %s128_s26 = int_to_ptr.vmem [resolvable:$true] %s127_s26 }
  0x88   :  { %p2407_p9 = scmp.lt.u32.totalorder %s2403_s22, %s2846_s9 }
  0x8a   :  { %p2409_p10 = pnand %p2407_p9, %p2404_p8 }
  0x8c   :  { %2412 = shalt.err (!%p2409_p10)
}
  0x8d   :  { %s2413_s14 = scalar_lea.vmem %s128_s26, 2048  ;;  %p2418_p12 = scmp.lt.s32.totalorder %s128_s26, %s128_s26 }
  0x8e   :  { %p2414_p11 = scmp.ne.s32.totalorder %s128_s26, %s2413_s14  ;;  %p2419_p13 = scmp.lt.s32.totalorder %s2413_s14, %s2413_s14 }
  0x90   :  { %p2420_p0 = por %p2419_p13, %p2418_p12 }
  0x92   :  { %p2421_p1 = pnand %p2420_p0, %p2414_p11 }
  0x94   :  { %2424 = shalt.err (!%p2421_p1)
}
  0x95   :  { %133 = dma.hbm_to_vmem [thread:$0]  %s2846_s9, 2048, %s128_s26, [#allocation16], %s2461_s20, %s2461_s20, %s2462_s21  }
  0x96   :  { %2447 = dma.done.wait [#allocation4], 256  }
  0x97   :  { %2448 = vsyncadd [#allocation4], 4294967040 }
  0x98   :  { %2449 = dma.done.wait [#allocation7], 512  }
  0x99   :  { %2450 = vsyncadd [#allocation7], 4294966784 }
  0x9a   :  { %2451 = dma.done.wait [#allocation10], 4096  }
  0x9b   :  { %2452 = vsyncadd [#allocation10], 4294963200 }
  0x9c   :  { %2453 = dma.done.wait [#allocation13], 4096  }
  0x9d   :  { %2454 = vsyncadd [#allocation13], 4294963200 }
  0x9e   :  { %2455 = dma.done.wait [#allocation16], 4096  }
  0x9f   :  { %2456 = vsyncadd [#allocation16], 4294963200  ;;  %v264_v0 = vld [vmem:[#allocation11] sm:$0xff]  ;;  %v265_v1 = vld [vmem:[#allocation11 + $0x8] sm:$0xff]  ;;  %v2470_v52 = vmov 0.0   ;;  %vm2471_vm0 = vmmov 0  }
  0xa0   :  { %v173_v2 = vld [vmem:[#allocation9] sm:$0xff]  ;;  %v2026_v3 = vpack.c.bf16 %v265_v1, %v264_v0  ;;  %v174_v4 = vld [vmem:[#allocation9 + $0x8] sm:$0xff]  ;;  %v266_v5 = vld [vmem:[#allocation11 + $0x10] sm:$0xff]  ;;  %vm462_vm1 = vcmask 523264   ;;  %s2472_s9 = smov 64   ;;  %vm615_vm2 = vcmask 64512  }
  0xa1   :  { %v267_v6 = vld [vmem:[#allocation11 + $0x18] sm:$0xff]  ;;  %v1994_v7 = vpack.c.bf16 %v174_v4, %v173_v2  ;;  %v175_v9 = vld [vmem:[#allocation9 + $0x10] sm:$0xff]  ;;  %v268_v11 = vld [vmem:[#allocation11 + $0x20] sm:$0xff] }
  0xa2   :  { %v2030_v8 = vpack.c.bf16 %v267_v6, %v266_v5  ;;  %v176_v10 = vld [vmem:[#allocation9 + $0x18] sm:$0xff]  ;;  %2027 = vmatprep.subr.bf16.mxu1 %v2026_v3  ;;  %v269_v13 = vld [vmem:[#allocation11 + $0x28] sm:$0xff]  ;;  %v177_v14 = vld [vmem:[#allocation9 + $0x20] sm:$0xff] }
  0xa3   :  { %v1998_v12 = vpack.c.bf16 %v176_v10, %v175_v9  ;;  %v178_v15 = vld [vmem:[#allocation9 + $0x28] sm:$0xff]  ;;  %2029 = vmatpush3.bf16.msra.mxu1 %v2026_v3  ;;  %1995 = vmatprep.subr.bf16.mxu0 %v1994_v7  ;;  %v2034_v16 = vpack.c.bf16 %v269_v13, %v268_v11  ;;  %v270_v18 = vld [vmem:[#allocation11 + $0x30] sm:$0xff]  ;;  %v271_v19 = vld [vmem:[#allocation11 + $0x38] sm:$0xff] }
  0xa4   :  { %1997 = vmatpush3.bf16.msra.mxu0 %v1994_v7  ;;  %2031 = vmatprep.subr.bf16.mxu1 %v2030_v8  ;;  %v2002_v17 = vpack.c.bf16 %v178_v15, %v177_v14  ;;  %v179_v20 = vld [vmem:[#allocation9 + $0x30] sm:$0xff]  ;;  %v180_v21 = vld [vmem:[#allocation9 + $0x38] sm:$0xff]  ;;  %v2038_v22 = vpack.c.bf16 %v271_v19, %v270_v18  ;;  %v272_v24 = vld [vmem:[#allocation11 + $0x40] sm:$0xff] }
  0xa5   :  { %1999 = vmatprep.subr.bf16.mxu0 %v1998_v12  ;;  %v2006_v23 = vpack.c.bf16 %v180_v21, %v179_v20  ;;  %v273_v25 = vld [vmem:[#allocation11 + $0x48] sm:$0xff]  ;;  %v169_v26 = vld [vmem:[#allocation6] sm:$0xff]  ;;  %v2707_v29 = vld [vmem:[#allocation3] sm:$0xff] }
  0xa6   :  { %v181_v27 = vld [vmem:[#allocation9 + $0x40] sm:$0xff]  ;;  %v182_v28 = vld [vmem:[#allocation9 + $0x48] sm:$0xff]  ;;  %1808 = vmatprep.mubr.f32.mxu1 %v169_v26  ;;  %1773 = vmatprep.mubr.f32.mxu0 %v2707_v29  ;;  %v2042_v30 = vpack.c.bf16 %v273_v25, %v272_v24  ;;  %v274_v32 = vld [vmem:[#allocation11 + $0x50] sm:$0xff] }
  0xa7   :  { %2033 = vmatpush3.bf16.msra.mxu1 %v2030_v8  ;;  %v2010_v31 = vpack.c.bf16 %v182_v28, %v181_v27  ;;  %v275_v33 = vld [vmem:[#allocation11 + $0x58] sm:$0xff]  ;;  %v183_v34 = vld [vmem:[#allocation9 + $0x50] sm:$0xff]  ;;  %v276_v38 = vld [vmem:[#allocation11 + $0x60] sm:$0xff] }
  0xa8   :  { %2001 = vmatpush3.bf16.msra.mxu0 %v1998_v12  ;;  %2035 = vmatprep.subr.bf16.mxu1 %v2034_v16  ;;  %v184_v35 = vld [vmem:[#allocation9 + $0x58] sm:$0xff]  ;;  %v2046_v36 = vpack.c.bf16 %v275_v33, %v274_v32  ;;  %v277_v39 = vld [vmem:[#allocation11 + $0x68] sm:$0xff]  ;;  %v185_v40 = vld [vmem:[#allocation9 + $0x60] sm:$0xff] }
  0xa9   :  { %2003 = vmatprep.subr.bf16.mxu0 %v2002_v17  ;;  %v2014_v37 = vpack.c.bf16 %v184_v35, %v183_v34  ;;  %v186_v41 = vld [vmem:[#allocation9 + $0x68] sm:$0xff]  ;;  %v2050_v42 = vpack.c.bf16 %v277_v39, %v276_v38  ;;  %v278_v44 = vld [vmem:[#allocation11 + $0x70] sm:$0xff]  ;;  %v279_v45 = vld [vmem:[#allocation11 + $0x78] sm:$0xff] }
  0xaa   :  { %v2018_v43 = vpack.c.bf16 %v186_v41, %v185_v40  ;;  %v187_v46 = vld [vmem:[#allocation9 + $0x70] sm:$0xff]  ;;  %v188_v47 = vld [vmem:[#allocation9 + $0x78] sm:$0xff]  ;;  %v2054_v48 = vpack.c.bf16 %v279_v45, %v278_v44  ;;  %v170_v50 = vld [vmem:[#allocation6 + $0x8] sm:$0xff] }
  0xab   :  { %2037 = vmatpush3.bf16.msra.mxu1 %v2034_v16  ;;  %v2022_v49 = vpack.c.bf16 %v188_v47, %v187_v46  ;;  %v2710_v51 = vld [vmem:[#allocation3 + $0x8] sm:$0xff]  ;;  %v355_v57 = vld [vmem:[#allocation12] sm:$0xff]  ;;  %v356_v58 = vld [vmem:[#allocation12 + $0x8] sm:$0xff] }
  0xac   :  { %2005 = vmatpush3.bf16.msra.mxu0 %v2002_v17  ;;  %2039 = vmatprep.subr.bf16.mxu1 %v2038_v22  ;;  %v357_v59 = vld [vmem:[#allocation12 + $0x10] sm:$0xff]  ;;  %v2058_v60 = vpack.c.bf16 %v356_v58, %v355_v57  ;;  %v358_v61 = vld [vmem:[#allocation12 + $0x18] sm:$0xff]  ;;  %v359_v63 = vld [vmem:[#allocation12 + $0x20] sm:$0xff] }
  0xad   :  { %2007 = vmatprep.subr.bf16.mxu0 %v2006_v23  ;;  %v2062_v62 = vpack.c.bf16 %v358_v61, %v357_v59  ;;  %v360_v0 = vld [vmem:[#allocation12 + $0x28] sm:$0xff]  ;;  %v171_v2 = vld [vmem:[#allocation8] sm:$0xff]  ;;  %v362_v4 = vld [vmem:[#allocation12 + $0x38] sm:$0xff] }
  0xae   :  { %v2066_v1 = vpack.c.bf16 %v360_v0, %v359_v63  ;;  %v361_v3 = vld [vmem:[#allocation12 + $0x30] sm:$0xff]  ;;  %v363_v6 = vld [vmem:[#allocation12 + $0x40] sm:$0xff]  ;;  %v364_v7 = vld [vmem:[#allocation12 + $0x48] sm:$0xff] }
  0xaf   :  { %2041 = vmatpush3.bf16.msra.mxu1 %v2038_v22  ;;  %v2070_v5 = vpack.c.bf16 %v362_v4, %v361_v3  ;;  %v2074_v8 = vpack.c.bf16 %v364_v7, %v363_v6  ;;  %v365_v9 = vld [vmem:[#allocation12 + $0x50] sm:$0xff]  ;;  %v366_v10 = vld [vmem:[#allocation12 + $0x58] sm:$0xff]  ;;  %v367_v12 = vld [vmem:[#allocation12 + $0x60] sm:$0xff] }
  0xb0   :  { %2009 = vmatpush3.bf16.msra.mxu0 %v2006_v23  ;;  %2043 = vmatprep.subr.bf16.mxu1 %v2042_v30  ;;  %v2078_v11 = vpack.c.bf16 %v366_v10, %v365_v9  ;;  %v368_v13 = vld [vmem:[#allocation12 + $0x68] sm:$0xff]  ;;  %v369_v15 = vld [vmem:[#allocation12 + $0x70] sm:$0xff]  ;;  %v370_v16 = vld [vmem:[#allocation12 + $0x78] sm:$0xff] }
  0xb1   :  { %2011 = vmatprep.subr.bf16.mxu0 %v2010_v31  ;;  %v2082_v14 = vpack.c.bf16 %v368_v13, %v367_v12  ;;  %v2086_v17 = vpack.c.bf16 %v370_v16, %v369_v15  ;;  %v172_v18 = vld [vmem:[#allocation8 + $0x8] sm:$0xff]  ;;  %v451_v57 = vld [vmem:[#allocation14 + $0x28] sm:$0xff]  ;;  %v452_v59 = vld [vmem:[#allocation14 + $0x30] sm:$0xff] }
  0xb3   :  { %2045 = vmatpush3.bf16.msra.mxu1 %v2042_v30 }
  0xb4   :  { %2013 = vmatpush3.bf16.msra.mxu0 %v2010_v31  ;;  %2047 = vmatprep.subr.bf16.mxu1 %v2046_v36 }
  0xb5   :  { %2015 = vmatprep.subr.bf16.mxu0 %v2014_v37 }
  0xb7   :  { %2049 = vmatpush3.bf16.msra.mxu1 %v2046_v36 }
  0xb8   :  { %2017 = vmatpush3.bf16.msra.mxu0 %v2014_v37  ;;  %2051 = vmatprep.subr.bf16.mxu1 %v2050_v42 }
  0xb9   :  { %2019 = vmatprep.subr.bf16.mxu0 %v2018_v43 }
  0xbb   :  { %2053 = vmatpush3.bf16.msra.mxu1 %v2050_v42 }
  0xbc   :  { %2021 = vmatpush3.bf16.msra.mxu0 %v2018_v43  ;;  %2055 = vmatprep.subr.bf16.mxu1 %v2054_v48 }
  0xbd   :  { %2023 = vmatprep.subr.bf16.mxu0 %v2022_v49 }
  0xbf   :  { %2057 = vmatpush3.bf16.msra.mxu1 %v2054_v48  ;;  %v446_v48 = vld [vmem:[#allocation14] sm:$0xff] }
  0xc0   :  { %2025 = vmatpush3.bf16.msra.mxu0 %v2022_v49  ;;  %1846 = vmatprep.subr.mxu1 %v2470_v52  ;;  %v447_v49 = vld [vmem:[#allocation14 + $0x8] sm:$0xff] }
  0xc1   :  { %2059 = vmatprep.subr.bf16.mxu0 %v2058_v60 }
  0xc2   :  { %1809 = vmatmul.mubr.f32.vlgmr.msra.gmra.mrb[0].mxu1 %v170_v50  ;;  %v448_v50 = vld [vmem:[#allocation14 + $0x10] sm:$0xff] }
  0xc3   :  { %1774 = vmatmul.mubr.f32.vlgmr.msra.gmra.mrb[0].mxu0 %v2710_v51  ;;  %1848 = vmatprep.mubr.msk.f32.mxu1 %vm2471_vm0, %v2470_v52 }
  0xc4   :  { %2061 = vmatpush3.bf16.msra.mxu0 %v2058_v60  ;;  %1843 = vmatprep.mubr.f32.mxu0 %v171_v2  ;;  %v453_v60 = vld [vmem:[#allocation14 + $0x38] sm:$0xff] }
  0xc5   :  { %2063 = vmatprep.subr.bf16.mxu0 %v2062_v62  ;;  %v2118_v61 = vpack.c.bf16 %v453_v60, %v452_v59  ;;  %v1349_v59 = vld [vmem:[#allocation15 + $0x28] sm:$0xff] }
  0xc8   :  { %2065 = vmatpush3.bf16.msra.mxu0 %v2062_v62 }
  0xc9   :  { %2067 = vmatprep.subr.bf16.mxu0 %v2066_v1 }
  0xcc   :  { %2069 = vmatpush3.bf16.msra.mxu0 %v2066_v1 }
  0xcd   :  { %2071 = vmatprep.subr.bf16.mxu0 %v2070_v5 }
  0xd0   :  { %2073 = vmatpush3.bf16.msra.mxu0 %v2070_v5 }
  0xd1   :  { %2075 = vmatprep.subr.bf16.mxu0 %v2074_v8 }
  0xd4   :  { %2077 = vmatpush3.bf16.msra.mxu0 %v2074_v8 }
  0xd5   :  { %2079 = vmatprep.subr.bf16.mxu0 %v2078_v11 }
  0xd8   :  { %2081 = vmatpush3.bf16.msra.mxu0 %v2078_v11 }
  0xd9   :  { %2083 = vmatprep.subr.bf16.mxu0 %v2082_v14 }
  0xdc   :  { %2085 = vmatpush3.bf16.msra.mxu0 %v2082_v14 }
  0xdd   :  { %2087 = vmatprep.subr.bf16.mxu0 %v2086_v17 }
  0xe0   :  { %2089 = vmatpush3.bf16.msra.mxu0 %v2086_v17 }
  0xe3   :  { %1844 = vmatmul.mubr.f32.vlgmr.msra.gmra.mrb[2].mxu0 %v172_v18 }
 0x195   :  { %v2716_v53 = vpop.f32.mrb[0].mxu1 }
 0x196   :  { %v2718_v54 = vpop.f32.mrb[1].mxu1  ;;  %v2720_v55 = vpop.f32.mrb[0].mxu0 }
 0x197   :  { %1847 = vmatpush3.xpose.msk.msra.mxu1 %vm462_vm1, %v2718_v54  ;;  %v255_v56 = vpop.f32.mrb[1].mxu0 }
 0x198   :  { %1851 = vmatprep.subr.mxu1 %v2470_v52  ;;  %784 = vrot.lane.b32.xlu1 %v255_v56, %s2472_s9 }
 0x19a   :  { %1849 = vmatmul.mubr.msk.f32.vlgmr.msra.gmra.mrb[2].mxu1 %vm462_vm1, %v255_v56  ;;  %v450_v56 = vld [vmem:[#allocation14 + $0x20] sm:$0xff] }
 0x19b   :  { %1852 = vmatpush3.xpose.msk.msra.mxu1 %vm462_vm1, %v2716_v53  ;;  %1853 = vmatprep.mubr.msk.f32.mxu1 %vm2471_vm0, %v2470_v52  ;;  %v2114_v58 = vpack.c.bf16 %v451_v57, %v450_v56  ;;  %v1347_v56 = vld [vmem:[#allocation15 + $0x18] sm:$0xff] }
 0x19c   :  { %1856 = vmatprep.subr.mxu1 %v2470_v52 }
 0x19e   :  { %1854 = vmatmul.mubr.msk.f32.vlgmr.msra.gmra.mrb[4].mxu1 %vm462_vm1, %v2720_v55 }
 0x19f   :  { %1858 = vmatprep.mubr.msk.f32.mxu1 %vm2471_vm0, %v2470_v52 }
 0x1b6   :  { %v2743_v31 = vpop.f32.mrb[2].mxu0 }
 0x1b7   :  { %v2745_v32 = vpop.f32.mrb[3].mxu0 }
 0x1b8   :  { %1857 = vmatpush3.msra.mxu1 %v2745_v32 }
 0x1b9   :  { %1861 = vmatprep.subr.mxu1 %v2470_v52 }
 0x20a   :  { %v785_v38 = vpop.permute.xlu1 %784 }
 0x26d   :  { %v535_v19 = vpop.f32.mrb[2].mxu1 }
 0x26e   :  { %v1850_v20 = vpop.f32.mrb[3].mxu1  ;;  %v616_v21 = vsel %vm615_vm2, %v535_v19, -inf }
 0x26f   :  { %617 = vmax.xlane.f32.xlu0 %v616_v21 }
 0x271   :  { %v611_v22 = vpop.f32.mrb[4].mxu1 }
 0x272   :  { %v1855_v23 = vpop.f32.mrb[5].mxu1  ;;  %v619_v24 = vsel %vm615_vm2, %v611_v22, -inf }
 0x273   :  { %620 = vmax.xlane.f32.xlu0 %v619_v24  ;;  %v454_v23 = vld [vmem:[#allocation14 + $0x40] sm:$0xff]  ;;  %v455_v24 = vld [vmem:[#allocation14 + $0x48] sm:$0xff] }
 0x289   :  { %786 = vrot.lane.b32.xlu0 %v2718_v54, %s2472_s9  ;;  %v449_v54 = vld [vmem:[#allocation14 + $0x18] sm:$0xff] }
 0x2fc   :  { %v618_v25 = vpop.xlane.xlu0 %617 }
 0x2fd   :  { %v622_v26 = vsub.f32 %v535_v19, %v618_v25 }
 0x2ff   :  { %v624_v27 = vmul.f32 1.442695, %v622_v26 }
 0x300   :  { %v621_v33 = vpop.xlane.xlu0 %620 }
 0x301   :  { %2203 = vpow2.f32 %v624_v27  ;;  %v623_v34 = vsub.f32 %v611_v22, %v621_v33  ;;  %v2090_v27 = vpack.c.bf16 %v455_v24, %v454_v23  ;;  %v1445_v23 = vld [vmem:[#allocation17 + $0x8] sm:$0xff]  ;;  %v1446_v24 = vld [vmem:[#allocation17 + $0x10] sm:$0xff] }
 0x303   :  { %v626_v35 = vmul.f32 1.442695, %v623_v34 }
 0x304   :  { %v787_v46 = vpop.permute.xlu0 %786 }
 0x305   :  { %2205 = vpow2.f32 %v626_v35  ;;  %v458_v35 = vld [vmem:[#allocation14 + $0x60] sm:$0xff] }
 0x30b   :  { %v2204_v28 = vpop.eup %2203 }
 0x30c   :  { %v628_v30 = vsel %vm615_vm2, %v2204_v28, 0.0 }
 0x30d   :  { %629 = vadd.xlane.f32.xlu1 %v628_v30  ;;  %v457_v30 = vld [vmem:[#allocation14 + $0x58] sm:$0xff] }
 0x30f   :  { %v2206_v36 = vpop.eup %2205 }
 0x310   :  { %v631_v37 = vsel %vm615_vm2, %v2206_v36, 0.0 }
 0x31e   :  { %864 = vrot.lane.b32.xlu1 %v2716_v53, %s2472_s9  ;;  %v2106_v53 = vpack.c.bf16 %v447_v49, %v446_v48 }
 0x320   :  { %2107 = vmatprep.subr.bf16.mxu0 %v2106_v53 }
 0x321   :  { %2109 = vmatpush3.bf16.msra.mxu0 %v2106_v53  ;;  %v1345_v53 = vld [vmem:[#allocation15 + $0x8] sm:$0xff] }
 0x342   :  { %632 = vadd.xlane.f32.xlu1 %v631_v37 }
 0x353   :  { %862 = vrot.lane.b32.xlu1 %v2720_v55, %s2472_s9  ;;  %v2110_v55 = vpack.c.bf16 %v449_v54, %v448_v50  ;;  %v1344_v50 = vld [vmem:[#allocation15] sm:$0xff]  ;;  %v1346_v54 = vld [vmem:[#allocation15 + $0x10] sm:$0xff] }
 0x354   :  { %v2126_v57 = vpack.c.bf16 %v1347_v56, %v1346_v54  ;;  %v1612_v56 = vld [vmem:[%s2849_s12] ss:$0 sm:$0xff] }
 0x355   :  { %2111 = vmatprep.subr.bf16.mxu0 %v2110_v55 }
 0x356   :  { %2113 = vmatpush3.bf16.msra.mxu0 %v2110_v55  ;;  %v2122_v55 = vpack.c.bf16 %v1345_v53, %v1344_v50  ;;  %v1611_v50 = vld [vmem:[%s2848_s11] ss:$0 sm:$0xff] }
 0x357   :  { %2115 = vmatprep.subr.bf16.mxu0 %v2114_v58 }
 0x35a   :  { %2117 = vmatpush3.bf16.msra.mxu0 %v2114_v58  ;;  %v1348_v58 = vld [vmem:[#allocation15 + $0x20] sm:$0xff] }
 0x35b   :  { %2119 = vmatprep.subr.bf16.mxu0 %v2118_v61  ;;  %v2130_v60 = vpack.c.bf16 %v1349_v59, %v1348_v58 }
 0x35e   :  { %2121 = vmatpush3.bf16.msra.mxu0 %v2118_v61 }
 0x39a   :  { %v630_v39 = vpop.xlane.xlu1 %629 }
 0x39b   :  { %2207 = vrcp.f32 %v630_v39  ;;  %v461_v39 = vld [vmem:[#allocation14 + $0x78] sm:$0xff] }
 0x39e   :  { %v865_v42 = vpop.permute.xlu1 %864 }
 0x3a5   :  { %v2208_v40 = vpop.eup %2207 }
 0x3a6   :  { %v635_v41 = vmul.f32 %v2208_v40, %v2204_v28  ;;  %v456_v28 = vld [vmem:[#allocation14 + $0x50] sm:$0xff] }
 0x3a7   :  { %v2094_v34 = vpack.c.bf16 %v457_v30, %v456_v28  ;;  %v1448_v28 = vld [vmem:[#allocation17 + $0x20] sm:$0xff]  ;;  %v1449_v30 = vld [vmem:[#allocation17 + $0x28] sm:$0xff] }
 0x3a8   :  { %1859 = vmatmul.mubr.msk.f32.vlgmr.msra.gmra.mrb[6].mxu1 %vm615_vm2, %v635_v41 }
 0x3a9   :  { %1862 = vmatpush3.msra.mxu1 %v2743_v31  ;;  %1863 = vmatprep.mubr.msk.f32.mxu1 %vm2471_vm0, %v2470_v52 }
 0x3aa   :  { %1866 = vmatprep.subr.mxu1 %v2470_v52 }
 0x3cf   :  { %v633_v43 = vpop.xlane.xlu1 %632 }
 0x3d0   :  { %2209 = vrcp.f32 %v633_v43 }
 0x3d3   :  { %v863_v47 = vpop.permute.xlu1 %862 }
 0x3da   :  { %v2210_v44 = vpop.eup %2209 }
 0x3db   :  { %v637_v45 = vmul.f32 %v2210_v44, %v2206_v36  ;;  %v459_v36 = vld [vmem:[#allocation14 + $0x68] sm:$0xff] }
 0x3dc   :  { %v2098_v37 = vpack.c.bf16 %v459_v36, %v458_v35  ;;  %v1452_v35 = vld [vmem:[#allocation17 + $0x40] sm:$0xff]  ;;  %v1453_v36 = vld [vmem:[#allocation17 + $0x48] sm:$0xff] }
 0x3dd   :  { %1864 = vmatmul.mubr.msk.f32.vlgmr.msra.gmra.mrb[8].mxu1 %vm615_vm2, %v637_v45 }
 0x3de   :  { %1867 = vmatpush3.xpose.msk.msra.mxu1 %vm462_vm1, %v787_v46  ;;  %1868 = vmatprep.mubr.msk.f32.mxu1 %vm2471_vm0, %v2470_v52 }
 0x3df   :  { %1871 = vmatprep.subr.mxu1 %v2470_v52 }
 0x3e1   :  { %1869 = vmatmul.mubr.msk.f32.vlgmr.msra.gmra.mrb[10].mxu1 %vm462_vm1, %v785_v38  ;;  %v460_v38 = vld [vmem:[#allocation14 + $0x70] sm:$0xff] }
 0x3e2   :  { %1872 = vmatpush3.xpose.msk.msra.mxu1 %vm462_vm1, %v865_v42  ;;  %1873 = vmatprep.mubr.msk.f32.mxu1 %vm2471_vm0, %v2470_v52  ;;  %v2102_v40 = vpack.c.bf16 %v461_v39, %v460_v38  ;;  %v1454_v38 = vld [vmem:[#allocation17 + $0x50] sm:$0xff]  ;;  %v1455_v39 = vld [vmem:[#allocation17 + $0x58] sm:$0xff] }
 0x3e3   :  { %1876 = vmatprep.subr.mxu1 %v2470_v52 }
 0x3e5   :  { %1874 = vmatmul.mubr.msk.f32.vlgmr.msra.gmra.mrb[12].mxu1 %vm462_vm1, %v863_v47 }
 0x3e6   :  { %1878 = vmatprep.mubr.msk.f32.mxu1 %vm2471_vm0, %v2470_v52 }
 0x47b   :  { %v707_v62 = vpop.f32.mrb[6].mxu1 }
 0x47c   :  { %v1860_v63 = vpop.f32.mrb[7].mxu1  ;;  %1921 = vmatprep.mubr.msk.f32.mxu0 %vm462_vm1, %v707_v62 }
 0x4b0   :  { %v780_v0 = vpop.f32.mrb[8].mxu1 }
 0x4b1   :  { %v1865_v1 = vpop.f32.mrb[9].mxu1  ;;  %1922 = vmatmul.mubr.msk.f32.vlgmr.msra.gmra.mrb[4].mxu0 %vm462_vm1, %v780_v0 }
 0x4b4   :  { %v858_v2 = vpop.f32.mrb[10].mxu1 }
 0x4b5   :  { %v1870_v3 = vpop.f32.mrb[11].mxu1  ;;  %v940_v4 = vsel %vm615_vm2, %v858_v2, -inf }
 0x4b6   :  { %941 = vmax.xlane.f32.xlu0 %v940_v4 }
 0x4b8   :  { %v936_v5 = vpop.f32.mrb[12].mxu1 }
 0x4b9   :  { %v1875_v6 = vpop.f32.mrb[13].mxu1  ;;  %v943_v7 = vsel %vm615_vm2, %v936_v5, -inf }
 0x4ba   :  { %944 = vmax.xlane.f32.xlu1 %v943_v7  ;;  %v1350_v7 = vld [vmem:[#allocation15 + $0x30] sm:$0xff] }
 0x4cb   :  { %1040 = vrot.lane.b32.xlu1 %v2743_v31, %s2472_s9 }
 0x543   :  { %v942_v8 = vpop.xlane.xlu0 %941 }
 0x544   :  { %v946_v9 = vsub.f32 %v858_v2, %v942_v8  ;;  %v1351_v8 = vld [vmem:[#allocation15 + $0x38] sm:$0xff] }
 0x546   :  { %v948_v10 = vmul.f32 1.442695, %v946_v9  ;;  %v2134_v9 = vpack.c.bf16 %v1351_v8, %v1350_v7 }
 0x547   :  { %v945_v11 = vpop.xlane.xlu1 %944 }
 0x548   :  { %2211 = vpow2.f32 %v948_v10  ;;  %v947_v12 = vsub.f32 %v936_v5, %v945_v11  ;;  %v1352_v10 = vld [vmem:[#allocation15 + $0x40] sm:$0xff]  ;;  %v1353_v11 = vld [vmem:[#allocation15 + $0x48] sm:$0xff] }
 0x54a   :  { %v950_v13 = vmul.f32 1.442695, %v947_v12  ;;  %v1354_v12 = vld [vmem:[#allocation15 + $0x50] sm:$0xff] }
 0x54b   :  { %v1041_v31 = vpop.permute.xlu1 %1040 }
 0x54c   :  { %2213 = vpow2.f32 %v950_v13  ;;  %v2138_v13 = vpack.c.bf16 %v1353_v11, %v1352_v10 }
 0x552   :  { %v2212_v14 = vpop.eup %2211 }
 0x553   :  { %v952_v15 = vsel %vm615_vm2, %v2212_v14, 0.0 }
 0x554   :  { %953 = vadd.xlane.f32.xlu0 %v952_v15 }
 0x556   :  { %v2214_v16 = vpop.eup %2213 }
 0x557   :  { %v955_v17 = vsel %vm615_vm2, %v2214_v16, 0.0 }
 0x558   :  { %956 = vadd.xlane.f32.xlu0 %v955_v17  ;;  %v1357_v17 = vld [vmem:[#allocation15 + $0x68] sm:$0xff] }
 0x56e   :  { %963 = vrot.lane.b32.xlu0 %v2745_v32, %s2472_s9 }
 0x584   :  { %v1923_v18 = vpop.f32.mrb[4].mxu0 }
 0x585   :  { %v1269_v19 = vpop.f32.mrb[5].mxu0 }
 0x5e1   :  { %v954_v20 = vpop.xlane.xlu0 %953 }
 0x5e2   :  { %2215 = vrcp.f32 %v954_v20  ;;  %v1359_v20 = vld [vmem:[#allocation15 + $0x78] sm:$0xff] }
 0x5e5   :  { %v957_v21 = vpop.xlane.xlu0 %956 }
 0x5e6   :  { %2217 = vrcp.f32 %v957_v21 }
 0x5e9   :  { %v964_v22 = vpop.permute.xlu0 %963 }
 0x5ea   :  { %1877 = vmatpush3.msra.mxu1 %v964_v22  ;;  %v1444_v22 = vld [vmem:[#allocation17] sm:$0xff] }
 0x5eb   :  { %1881 = vmatprep.subr.mxu1 %v2470_v52 }
 0x5ec   :  { %v2216_v25 = vpop.eup %2215 }
 0x5ed   :  { %v959_v26 = vmul.f32 %v2216_v25, %v2212_v14  ;;  %v1355_v14 = vld [vmem:[#allocation15 + $0x58] sm:$0xff]  ;;  %v2154_v25 = vpack.c.bf16 %v1445_v23, %v1444_v22 }
 0x5ee   :  { %v2142_v15 = vpack.c.bf16 %v1355_v14, %v1354_v12 }
 0x5ef   :  { %1879 = vmatmul.mubr.msk.f32.vlgmr.msra.gmra.mrb[14].mxu1 %vm615_vm2, %v959_v26  ;;  %v1447_v26 = vld [vmem:[#allocation17 + $0x18] sm:$0xff]  ;;  %2155 = vmatprep.subr.bf16.mxu0 %v2154_v25 }
 0x5f0   :  { %v2218_v32 = vpop.eup %2217  ;;  %1882 = vmatpush3.msra.mxu1 %v1041_v31  ;;  %1883 = vmatprep.mubr.msk.f32.mxu1 %vm2471_vm0, %v2470_v52  ;;  %v2162_v31 = vpack.c.bf16 %v1449_v30, %v1448_v28 }
 0x5f1   :  { %v961_v33 = vmul.f32 %v2218_v32, %v2214_v16  ;;  %2091 = vmatprep.subr.bf16.mxu1 %v2090_v27  ;;  %v1356_v16 = vld [vmem:[#allocation15 + $0x60] sm:$0xff]  ;;  %2157 = vmatpush3.bf16.msra.mxu0 %v2154_v25  ;;  %v1450_v32 = vld [vmem:[#allocation17 + $0x30] sm:$0xff] }
 0x5f3   :  { %1884 = vmatmul.mubr.msk.f32.vlgmr.msra.gmra.mrb[16].mxu1 %vm615_vm2, %v961_v33  ;;  %v1451_v33 = vld [vmem:[#allocation17 + $0x38] sm:$0xff] }
 0x5f4   :  { %2093 = vmatpush3.bf16.msra.mxu1 %v2090_v27  ;;  %v2158_v27 = vpack.c.bf16 %v1447_v26, %v1446_v24 }
 0x5f5   :  { %2095 = vmatprep.subr.bf16.mxu1 %v2094_v34 }
 0x5f6   :  { %2159 = vmatprep.subr.bf16.mxu0 %v2158_v27 }
 0x5f7   :  { %2161 = vmatpush3.bf16.msra.mxu0 %v2158_v27 }
 0x5f8   :  { %2097 = vmatpush3.bf16.msra.mxu1 %v2094_v34  ;;  %2163 = vmatprep.subr.bf16.mxu0 %v2162_v31  ;;  %v2166_v34 = vpack.c.bf16 %v1451_v33, %v1450_v32 }
 0x5f9   :  { %2099 = vmatprep.subr.bf16.mxu1 %v2098_v37 }
 0x5fb   :  { %2165 = vmatpush3.bf16.msra.mxu0 %v2162_v31 }
 0x5fc   :  { %2101 = vmatpush3.bf16.msra.mxu1 %v2098_v37  ;;  %2167 = vmatprep.subr.bf16.mxu0 %v2166_v34  ;;  %v2170_v37 = vpack.c.bf16 %v1453_v36, %v1452_v35 }
 0x5fd   :  { %2103 = vmatprep.subr.bf16.mxu1 %v2102_v40 }
 0x5ff   :  { %2169 = vmatpush3.bf16.msra.mxu0 %v2166_v34 }
 0x600   :  { %2105 = vmatpush3.bf16.msra.mxu1 %v2102_v40  ;;  %2171 = vmatprep.subr.bf16.mxu0 %v2170_v37  ;;  %v2174_v40 = vpack.c.bf16 %v1455_v39, %v1454_v38 }
 0x601   :  { %2123 = vmatprep.subr.bf16.mxu1 %v2122_v55 }
 0x603   :  { %2173 = vmatpush3.bf16.msra.mxu0 %v2170_v37 }
 0x604   :  { %2175 = vmatprep.subr.bf16.mxu0 %v2174_v40 }
 0x607   :  { %2177 = vmatpush3.bf16.msra.mxu0 %v2174_v40 }
 0x6c2   :  { %v1035_v41 = vpop.f32.mrb[14].mxu1 }
 0x6c3   :  { %v1880_v52 = vpop.f32.mrb[15].mxu1  ;;  %1902 = vmatprep.mubr.msk.f32.mxu1 %vm462_vm1, %v1035_v41  ;;  %v1456_v41 = vld [vmem:[#allocation17 + $0x60] sm:$0xff] }
 0x6c4   :  { %v1457_v52 = vld [vmem:[#allocation17 + $0x68] sm:$0xff] }
 0x6c6   :  { %v1112_v42 = vpop.f32.mrb[16].mxu1 }
 0x6c7   :  { %v1885_v43 = vpop.f32.mrb[17].mxu1  ;;  %1903 = vmatmul.mubr.msk.f32.vlgmr.msra.gmra.mrb[18].mxu1 %vm462_vm1, %v1112_v42  ;;  %v2178_v42 = vpack.c.bf16 %v1457_v52, %v1456_v41 }
 0x6c8   :  { %2125 = vmatpush3.bf16.msra.mxu1 %v2122_v55 }
 0x6c9   :  { %2127 = vmatprep.subr.bf16.mxu1 %v2126_v57  ;;  %2179 = vmatprep.subr.bf16.mxu0 %v2178_v42 }
 0x6ca   :  { %2181 = vmatpush3.bf16.msra.mxu0 %v2178_v42 }
 0x6cc   :  { %2129 = vmatpush3.bf16.msra.mxu1 %v2126_v57 }
 0x6cd   :  { %2131 = vmatprep.subr.bf16.mxu1 %v2130_v60 }
 0x6d0   :  { %2133 = vmatpush3.bf16.msra.mxu1 %v2130_v60 }
 0x6d1   :  { %2135 = vmatprep.subr.bf16.mxu1 %v2134_v9 }
 0x6d4   :  { %2137 = vmatpush3.bf16.msra.mxu1 %v2134_v9 }
 0x6d5   :  { %2139 = vmatprep.subr.bf16.mxu1 %v2138_v13 }
 0x6d8   :  { %2141 = vmatpush3.bf16.msra.mxu1 %v2138_v13 }
 0x6d9   :  { %2143 = vmatprep.subr.bf16.mxu1 %v2142_v15 }
 0x6dc   :  { %2145 = vmatpush3.bf16.msra.mxu1 %v2142_v15 }
 0x79a   :  { %v1904_v44 = vpop.f32.mrb[18].mxu1 }
 0x79b   :  { %v1275_v45 = vadd.f32 %v1923_v18, %v1904_v44  ;;  %v1188_v46 = vpop.f32.mrb[19].mxu1  ;;  %v2146_v18 = vpack.c.bf16 %v1357_v17, %v1356_v16 }
 0x79c   :  { %v1270_v47 = vadd.f32 %v1269_v19, %v1188_v46  ;;  %v1358_v19 = vld [vmem:[#allocation15 + $0x70] sm:$0xff] }
 0x79d   :  { %v1301_v48 = vadd.f32 %v1275_v45, %v2710_v51  ;;  %v1295_v51 = vlaneseq  ;;  %2147 = vmatprep.subr.bf16.mxu1 %v2146_v18  ;;  %v2150_v21 = vpack.c.bf16 %v1359_v20, %v1358_v19 }
 0x79e   :  { %v1300_v49 = vadd.f32 %v1270_v47, %v2707_v29  ;;  %2149 = vmatpush3.bf16.msra.mxu1 %v2146_v18 }
 0x79f   :  { %1304 = vadd.xlane.f32.xlu0 %v1301_v48  ;;  %v2789_v61 = vand.u32 127, %v1295_v51  ;;  %2151 = vmatprep.subr.bf16.mxu1 %v2150_v21  ;;  %v1458_v51 = vld [vmem:[#allocation17 + $0x70] sm:$0xff] }
 0x7a0   :  { %1302 = vadd.xlane.f32.xlu1 %v1300_v49 }
 0x7a1   :  { %vm1297_vm3 = vcmp.lt.s32.totalorder %v2789_v61, 32 }
 0x7a2   :  { %2153 = vmatpush3.bf16.msra.mxu1 %v2150_v21 }
 0x82c   :  { %v1305_v29 = vpop.xlane.xlu0 %1304 }
 0x82d   :  { %v1307_v62 = vmul.f32 0.03125, %v1305_v29  ;;  %v1303_v63 = vpop.xlane.xlu1 %1302  ;;  %v1459_v29 = vld [vmem:[#allocation17 + $0x78] sm:$0xff] }
 0x82e   :  { %v1306_v0 = vmul.f32 0.03125, %v1303_v63  ;;  %v1613_v63 = vld [vmem:[%s2845_s8] ss:$0 sm:$0xff]  ;;  %s2473_s8 = smov [#allocation18]  }
 0x82f   :  { %v1309_v1 = vsub.f32 %v1301_v48, %v1307_v62  ;;  %v2182_v62 = vpack.c.bf16 %v1459_v29, %v1458_v51 }
 0x830   :  { %v1308_v2 = vsub.f32 %v1300_v49, %v1306_v0 }
 0x831   :  { %v2794_v3 = vsel %vm1297_vm3, %v1309_v1, 0.0  ;;  %2183 = vmatprep.subr.bf16.mxu0 %v2182_v62 }
 0x832   :  { %v1315_v4 = vmul.f32 %v2794_v3, %v2794_v3  ;;  %v2800_v5 = vsel %vm1297_vm3, %v1308_v2, 0.0  ;;  %2185 = vmatpush3.bf16.msra.mxu0 %v2182_v62 }
 0x833   :  { %v1314_v6 = vmul.f32 %v2800_v5, %v2800_v5 }
 0x834   :  { %1318 = vadd.xlane.f32.xlu1 %v1315_v4 }
 0x835   :  { %1316 = vadd.xlane.f32.xlu0 %v1314_v6  ;;  %v1614_v6 = vld [vmem:[%s2847_s10] ss:$0 sm:$0xff]  ;;  %s1579_s10 = sshll.u32 %s2473_s8, 4  ;;  %s1580_s10 = int_to_ptr.vmem [resolvable:$true] %s1579_s10 }
 0x836   :  { %s2425_s0 = scalar_lea.vmem %s1580_s10, 256  ;;  %p2430_p3 = scmp.lt.s32.totalorder %s1580_s10, %s1580_s10 }
 0x837   :  { %p2426_p2 = scmp.ne.s32.totalorder %s1580_s10, %s2425_s0  ;;  %p2431_p4 = scmp.lt.s32.totalorder %s2425_s0, %s2425_s0 }
 0x839   :  { %p2432_p5 = por %p2431_p4, %p2430_p3 }
 0x83b   :  { %p2433_p6 = pnand %p2432_p5, %p2426_p2 }
 0x8c1   :  { %v1319_v43 = vpop.xlane.xlu1 %1318 }
 0x8c2   :  { %v1321_v44 = vmul.f32 0.03125, %v1319_v43  ;;  %v1317_v45 = vpop.xlane.xlu0 %1316 }
 0x8c3   :  { %v1320_v46 = vmul.f32 0.03125, %v1317_v45 }
 0x8c4   :  { %v1323_v47 = vadd.f32 1e-05, %v1321_v44 }
 0x8c5   :  { %v1322_v48 = vadd.f32 1e-05, %v1320_v46 }
 0x8c6   :  { %2219 = vrsqrt.f32 %v1323_v47 }
 0x8c7   :  { %2221 = vrsqrt.f32 %v1322_v48 }
 0x8d0   :  { %v2220_v49 = vpop.eup %2219 }
 0x8d1   :  { %v2222_v53 = vpop.eup %2221  ;;  %v1327_v54 = vmul.f32 %v2220_v49, %v2794_v3 }
 0x8d2   :  { %v1326_v55 = vmul.f32 %v2222_v53, %v2800_v5 }
 0x8d3   :  { %v1335_v57 = vmul.f32 %v1611_v50, %v1327_v54 }
 0x8d4   :  { %v1334_v58 = vmul.f32 %v1611_v50, %v1326_v55 }
 0x8d5   :  { %v1343_v60 = vadd.f32 %v1612_v56, %v1335_v57 }
 0x8d6   :  { %v1342_v59 = vadd.f32 %v1612_v56, %v1334_v58 }
 0x8d8   :  { %1956 = vmatprep.mubr.f32.mxu1 %v1342_v59 }
 0x8d9   :  { %1957 = vmatmul.mubr.f32.vlgmr.msra.gmra.mrb[20].mxu1 %v1343_v60 }
 0x9ac   :  { %v1958_v0 = vpop.f32.mrb[20].mxu1 }
 0x9ad   :  { %v1439_v1 = vadd.f32 %v1958_v0, %v1613_v63  ;;  %v1433_v2 = vpop.f32.mrb[21].mxu1 }
 0x9ae   :  { %v1434_v3 = vadd.f32 %v1613_v63, %v1433_v2 }
 0x9af   :  { %v1443_v5 = vmax.f32 %v1439_v1, 0.0 }
 0x9b0   :  { %v1442_v4 = vmax.f32 %v1434_v3, 0.0 }
 0x9b2   :  { %1991 = vmatprep.mubr.f32.mxu0 %v1442_v4 }
 0x9b3   :  { %1992 = vmatmul.mubr.f32.vlgmr.msra.gmra.mrb[6].mxu0 %v1443_v5 }
 0xa86   :  { %v1993_v7 = vpop.f32.mrb[6].mxu0 }
 0xa87   :  { %v1539_v8 = vadd.f32 %v1993_v7, %v1614_v6  ;;  %v1533_v9 = vpop.f32.mrb[7].mxu0 }
 0xa88   :  { %v1534_v10 = vadd.f32 %v1614_v6, %v1533_v9 }
 0xa89   :  { %v1543_v11 = vadd.f32 %v1539_v8, %v1343_v60 }
 0xa8a   :  { %v1542_v12 = vadd.f32 %v1534_v10, %v1342_v59 }
 0xa8b   :  { %1546 = vadd.xlane.f32.xlu1 %v1543_v11 }
 0xa8c   :  { %1544 = vadd.xlane.f32.xlu0 %v1542_v12 }
 0xb18   :  { %v1547_v13 = vpop.xlane.xlu1 %1546 }
 0xb19   :  { %v1549_v14 = vmul.f32 0.03125, %v1547_v13  ;;  %v1545_v15 = vpop.xlane.xlu0 %1544 }
 0xb1a   :  { %v1548_v16 = vmul.f32 0.03125, %v1545_v15 }
 0xb1b   :  { %v1551_v17 = vsub.f32 %v1543_v11, %v1549_v14 }
 0xb1c   :  { %v1550_v18 = vsub.f32 %v1542_v12, %v1548_v16 }
 0xb1d   :  { %v1553_v19 = vsel %vm1297_vm3, %v1551_v17, 0.0 }
 0xb1e   :  { %v1555_v20 = vmul.f32 %v1553_v19, %v1553_v19  ;;  %v1552_v21 = vsel %vm1297_vm3, %v1550_v18, 0.0 }
 0xb1f   :  { %v1554_v22 = vmul.f32 %v1552_v21, %v1552_v21 }
 0xb20   :  { %1558 = vadd.xlane.f32.xlu1 %v1555_v20 }
 0xb21   :  { %1556 = vadd.xlane.f32.xlu0 %v1554_v22 }
 0xbad   :  { %v1559_v23 = vpop.xlane.xlu1 %1558 }
 0xbae   :  { %v1561_v24 = vmul.f32 0.03125, %v1559_v23  ;;  %v1557_v25 = vpop.xlane.xlu0 %1556 }
 0xbaf   :  { %v1560_v26 = vmul.f32 0.03125, %v1557_v25 }
 0xbb0   :  { %v1563_v27 = vadd.f32 1e-05, %v1561_v24 }
 0xbb1   :  { %v1562_v28 = vadd.f32 1e-05, %v1560_v26 }
 0xbb2   :  { %2223 = vrsqrt.f32 %v1563_v27 }
 0xbb3   :  { %2225 = vrsqrt.f32 %v1562_v28 }
 0xbbc   :  { %v2224_v30 = vpop.eup %2223 }
 0xbbd   :  { %v2226_v31 = vpop.eup %2225  ;;  %v1567_v32 = vmul.f32 %v2224_v30, %v1553_v19 }
 0xbbe   :  { %v1566_v33 = vmul.f32 %v2226_v31, %v1552_v21 }
 0xbbf   :  { %v1569_v34 = vmul.f32 %v1611_v50, %v1567_v32 }
 0xbc0   :  { %v1568_v61 = vmul.f32 %v1611_v50, %v1566_v33 }
 0xbc1   :  { %v1571_v35 = vadd.f32 %v1612_v56, %v1569_v34 }
 0xbc2   :  { %v1570_v36 = vadd.f32 %v1612_v56, %v1568_v61 }
 0xbc3   :  { %1573 = vst [vmem:[#allocation18 + $0x8] sm:$0xff] %v1571_v35 }
 0xbc4   :  { %1572 = vst [vmem:[#allocation18] sm:$0xff] %v1570_v36 }
 0xbc5   :  { %2436 = shalt.err (!%p2433_p6)
}
 0xbc6   :  { %s2437_s4 = scalar_lea.hbm %s2850_s13, 256 }
 0xbc7   :  { %p2438_p7 = scmp.ne.s32.totalorder %s2850_s13, %s2437_s4  ;;  %p2441_p8 = scmp.lt.u32.totalorder %s2437_s4, %s2850_s13 }
 0xbc9   :  { %p2443_p9 = pnand %p2441_p8, %p2438_p7 }
 0xbcb   :  { %2446 = shalt.err (!%p2443_p9)
}
 0xbcc   :  { %1585 = dma.vmem_to_hbm [thread:$0]  %s1580_s10, 256, %s2850_s13, [#allocation5], %s2461_s20, %s2461_s20, %s2462_s21  }
 0xbcd   :  { %2457 = dma.done.wait [#allocation5], 256  }
 0xbce   :  { %2458 = vsyncadd [#allocation5], 4294967040 }
 0xbcf   :  { %1589 = vsyncpa [#allocation4], 1 }
 0xbd0   :  { %1590 = vsyncpa [#allocation7], 1 }
 0xbd1   :  { %1591 = vsyncpa [#allocation10], 1 }
 0xbd2   :  { %1592 = vsyncpa [#allocation13], 1 }
 0xbd3   :  { %1593 = vsyncpa [#allocation16], 1 }
 0xbd4   :  { %1594 = vsyncpa [#allocation5], 1 }

</bundles_post_ra>
